<compile_context>
chip_gen: v7x
topology: tpu7x:2x2x1
jax: 0.10.0
libtpu: 0.0.40
codegen_flags: <defaults>
</compile_context>

<pallas_src>
import numpy as np
import jax
import jax.numpy as jnp
from jax import lax
from jax.experimental import pallas as pl
from jax.experimental.pallas import tpu as pltpu


# ---------------------------------------------------------------------------
# Fused GRU-stack + head kernel (grid = time chunks, sequential).
# ---------------------------------------------------------------------------
def make_fused_gru_kernel(num_layers, time_chunk, bp, hp):
    """Per grid step (one chunk of `time_chunk` timesteps):
         1. one big MXU matmul = layer-0 input projection for the whole chunk,
         2. fully unrolled time loop running every layer's recurrence,
            hidden states carried across chunks in VMEM scratch,
         3. on the last chunk: mean over layers + per-unit affine + tanh head.
    """

    def kernel(*refs):
        if num_layers > 1:
            (x_ref, wih0_ref, bih0_ref, whh_ref, bhh_ref,
             wihr_ref, bihr_ref, whd_ref, bhd_ref,
             hmean_ref, yhat_ref, h_scr) = refs
        else:
            (x_ref, wih0_ref, bih0_ref, whh_ref, bhh_ref,
             whd_ref, bhd_ref, hmean_ref, yhat_ref, h_scr) = refs
            wihr_ref = bihr_ref = None

        c = pl.program_id(0)

        @pl.when(c == 0)
        def _init():
            h_scr[...] = jnp.zeros_like(h_scr)

        # ---- hoisted input projection: all timesteps of the chunk, all 3 gates.
        # x_ref: (time_chunk*bp, D) time-major rows; wih0: (D, 3*hp) fused r|z|n.
        proj = jnp.dot(x_ref[...], wih0_ref[...],
                       preferred_element_type=jnp.float32) + bih0_ref[...]

        h = [h_scr[l] for l in range(num_layers)]

        def gru_cell(gi, gh, h_prev):
            # PyTorch gate order r, z, n; b_ih folded into gi, b_hh into gh.
            r = jax.nn.sigmoid(gi[:, 0:hp] + gh[:, 0:hp])
            z = jax.nn.sigmoid(gi[:, hp:2 * hp] + gh[:, hp:2 * hp])
            n = jnp.tanh(gi[:, 2 * hp:3 * hp] + r * gh[:, 2 * hp:3 * hp])
            return (1.0 - z) * n + z * h_prev

        # Short fixed trip count -> fully unrolled; per-timestep slices of `proj`
        # start at multiples of bp (a multiple of 8), so they are sublane aligned.
        for t in range(time_chunk):
            gi = proj[t * bp:(t + 1) * bp, :]              # layer-0 input gates
            for l in range(num_layers):
                if l > 0:
                    gi = jnp.dot(h[l - 1], wihr_ref[l - 1],
                                 preferred_element_type=jnp.float32) + bihr_ref[l - 1]
                gh = jnp.dot(h[l], whh_ref[l],
                             preferred_element_type=jnp.float32) + bhh_ref[l]
                h[l] = gru_cell(gi, gh, h[l])

        for l in range(num_layers):
            h_scr[l] = h[l]

        @pl.when(c == pl.num_programs(0) - 1)
        def _final():
            hm = h[0]
            for l in range(1, num_layers):
                hm = hm + h[l]
            hm = hm * (1.0 / num_layers)                   # mean over layers
            hmean_ref[...] = hm
            # TODO(synk): F.dropout(H, p) omitted — drop_prob defaults to 0.0 (identity).
            yhat_ref[...] = jnp.tanh(hm * whd_ref[...] + bhd_ref[...])

    return kernel


# ---------------------------------------------------------------------------
# Parameter packing: fuse the 3 gates into lane-dense (rows, 3*hp) blocks.
# ---------------------------------------------------------------------------
def _pack_params(layer_params, w_head, b_head, hp):
    L = len(layer_params)
    H = layer_params[0][1].shape[-1]
    G = 3 * hp

    def fuse_w(w3, rows):          # (3, R, H) -> (rows, 3*hp), zero padded
        out = jnp.zeros((rows, G), jnp.float32)
        for g in range(3):
            out = out.at[:w3.shape[1], g * hp:g * hp + H].set(w3[g])
        return out

    def fuse_b(b3):                # (3, 1, H) -> (1, 3*hp)
        out = jnp.zeros((1, G), jnp.float32)
        for g in range(3):
            out = out.at[:, g * hp:g * hp + H].set(b3[g])
        return out

    wih0, _, bih0, _ = layer_params[0]
    D = wih0.shape[1]
    wih0_f = fuse_w(wih0, D)                                          # (D, G)
    bih0_f = fuse_b(bih0)                                             # (1, G)
    whh_f = jnp.stack([fuse_w(p[1], hp) for p in layer_params], 0)    # (L, hp, G)
    bhh_f = jnp.stack([fuse_b(p[3]) for p in layer_params], 0)        # (L, 1, G)
    if L > 1:
        wihr_f = jnp.stack([fuse_w(p[0], hp) for p in layer_params[1:]], 0)  # (L-1, hp, G)
        bihr_f = jnp.stack([fuse_b(p[2]) for p in layer_params[1:]], 0)      # (L-1, 1, G)
    else:
        wihr_f = bihr_f = None
    whd = jnp.zeros((1, hp), jnp.float32).at[:, :H].set(w_head)
    bhd = jnp.zeros((1, hp), jnp.float32).at[:, :H].set(b_head)
    return wih0_f, bih0_f, whh_f, bhh_f, wihr_f, bihr_f, whd, bhd


# ---------------------------------------------------------------------------
# Full RNNEncoder forward.
# ---------------------------------------------------------------------------
def rnn_encoder_forward(x_btd, layer_params, w_head, b_head, *, time_chunk=8):
    """x_btd: (B, T, D) batch-first, like nn.GRU(batch_first=True).
    Returns (y_hat, H_mean, [zeros(2, 3)])."""
    B, T, D = x_btd.shape
    H = layer_params[0][1].shape[-1]
    L = len(layer_params)
    hp = pl.cdiv(H, 128) * 128            # lane-dense padded hidden width
    bp = pl.cdiv(B, 8) * 8                # sublane-aligned padded batch
    G = 3 * hp

    # Largest time chunk (<= requested) that evenly divides T.
    tc = max(1, min(time_chunk, T))
    while T % tc:
        tc -= 1
    nc = T // tc

    (wih0_f, bih0_f, whh_f, bhh_f,
     wihr_f, bihr_f, whd, bhd) = _pack_params(layer_params, w_head, b_head, hp)

    # Time-major, batch padded to bp: row index = t*bp + b. One (tc*bp, D) slab
    # per grid step; every per-timestep slice inside the kernel is tile aligned.
    x_tm = jnp.swapaxes(x_btd, 0, 1).astype(jnp.float32)      # (T, B, D)
    if bp != B:
        x_tm = jnp.concatenate(
            [x_tm, jnp.zeros((T, bp - B, D), jnp.float32)], axis=1)
    x_flat = x_tm.reshape(T * bp, D)

    in_specs = [
        pl.BlockSpec((tc * bp, D), lambda c: (c, 0)),         # x chunk
        pl.BlockSpec((D, G), lambda c: (0, 0)),               # fused W_ih layer 0 (resident)
        pl.BlockSpec((1, G), lambda c: (0, 0)),               # fused b_ih layer 0
        pl.BlockSpec((L, hp, G), lambda c: (0, 0, 0)),        # fused W_hh all layers
        pl.BlockSpec((L, 1, G), lambda c: (0, 0, 0)),         # fused b_hh all layers
    ]
    args = [x_flat, wih0_f, bih0_f, whh_f, bhh_f]
    if L > 1:
        in_specs += [pl.BlockSpec((L - 1, hp, G), lambda c: (0, 0, 0)),  # W_ih layers 1..L-1
                     pl.BlockSpec((L - 1, 1, G), lambda c: (0, 0, 0))]   # b_ih layers 1..L-1
        args += [wihr_f, bihr_f]
    in_specs += [pl.BlockSpec((1, hp), lambda c: (0, 0)),     # head weight (per-unit)
                 pl.BlockSpec((1, hp), lambda c: (0, 0))]     # head bias
    args += [whd, bhd]

    out_specs = [pl.BlockSpec((bp, hp), lambda c: (0, 0)),    # H mean (resident)
                 pl.BlockSpec((bp, hp), lambda c: (0, 0))]    # y_hat (resident)
    out_shape = (jax.ShapeDtypeStruct((bp, hp), jnp.float32),
                 jax.ShapeDtypeStruct((bp, hp), jnp.float32))

    kernel = make_fused_gru_kernel(L, tc, bp, hp)

    h_mean_p, y_hat_p = pl.pallas_call(
        kernel,
        out_shape=out_shape,
        grid_spec=pltpu.PrefetchScalarGridSpec(
            num_scalar_prefetch=0,
            grid=(nc,),
            in_specs=in_specs,
            out_specs=out_specs,
            scratch_shapes=[pltpu.VMEM((L, bp, hp), jnp.float32)],
        ),
        # Time chunks are the serial recurrence axis. (For large B add a leading
        # "parallel" batch axis to shard across v7x's two TensorCores.)
        compiler_params=pltpu.CompilerParams(dimension_semantics=("arbitrary",)),
    )(*args)

    h_mean = h_mean_p[:B, :H]
    y_hat = y_hat_p[:B, :H]
    return y_hat, h_mean, [jnp.zeros((2, 3), jnp.float32)]


# ---------------------------------------------------------------------------
# Pure-JAX reference for validation.
# ---------------------------------------------------------------------------
def rnn_encoder_ref(x_btd, layer_params, w_head, b_head):
    inp = jnp.swapaxes(x_btd, 0, 1)      # (T, B, D)
    h_finals = []
    for (wih, whh, bih, bhh) in layer_params:
        B = inp.shape[1]
        H = whh.shape[-1]

        def step(h, x_t):
            r = jax.nn.sigmoid(x_t @ wih[0] + bih[0] + h @ whh[0] + bhh[0])
            z = jax.nn.sigmoid(x_t @ wih[1] + bih[1] + h @ whh[1] + bhh[1])
            n = jnp.tanh(x_t @ wih[2] + bih[2] + r * (h @ whh[2] + bhh[2]))
            h_new = (1.0 - z) * n + z * h
            return h_new, h_new

        h_fin, ys = lax.scan(step, jnp.zeros((B, H), jnp.float32), inp)
        h_finals.append(h_fin)
        inp = ys
    h_mean = jnp.mean(jnp.stack(h_finals, 0), axis=0)
    y_hat = jnp.tanh(h_mean * w_head + b_head)
    return y_hat, h_mean


# ---------------------------------------------------------------------------
# Deterministic parameter construction (mirrors nn.GRU / Linear(1,1) shapes).
# ---------------------------------------------------------------------------
def make_params(key, input_size, hidden_size, num_layers):
    layer_params = []
    k = 1.0 / np.sqrt(hidden_size)
    for l in range(num_layers):
        d_in = input_size if l == 0 else hidden_size
        key, k1, k2, k3, k4 = jax.random.split(key, 5)
        wih = jax.random.uniform(k1, (3, d_in, hidden_size), jnp.float32, -k, k)
        whh = jax.random.uniform(k2, (3, hidden_size, hidden_size), jnp.float32, -k, k)
        bih = jax.random.uniform(k3, (3, 1, hidden_size), jnp.float32, -k, k)
        bhh = jax.random.uniform(k4, (3, 1, hidden_size), jnp.float32, -k, k)
        layer_params.append((wih, whh, bih, bhh))
    # cl1: hidden_size independent Linear(1, 1) modules -> per-unit scale + bias.
    key, kw, kb = jax.random.split(key, 3)
    w_head = jax.random.uniform(kw, (1, hidden_size), jnp.float32, -1.0, 1.0)
    b_head = jax.random.uniform(kb, (1, hidden_size), jnp.float32, -1.0, 1.0)
    return layer_params, w_head, b_head


if __name__ == "__main__":
    B, T, D, H, L = 2, 8, 16, 32, 2
    key = jax.random.PRNGKey(0)
    key, kx = jax.random.split(key)
    x = jax.random.normal(kx, (B, T, D), jnp.float32)

    layer_params, w_head, b_head = make_params(key, D, H, L)

    y_hat, h_mean, extras = rnn_encoder_forward(x, layer_params, w_head, b_head,
                                                time_chunk=8)
    jax.block_until_ready(y_hat)
    jax.block_until_ready(h_mean)

    y_ref, h_ref = rnn_encoder_ref(x, layer_params, w_head, b_head)
    np.testing.assert_allclose(np.asarray(h_mean), np.asarray(h_ref),
                               rtol=1e-4, atol=1e-4)
    np.testing.assert_allclose(np.asarray(y_hat), np.asarray(y_ref),
                               rtol=1e-4, atol=1e-4)
    assert extras[0].shape == (2, 3)

    print("KERNEL_OK")
</pallas_src>

<mosaic_0001>
module attributes {stable_mosaic.version = 11 : i64} {
  func.func @kernel(%arg0: i32, %arg1: memref<64x16xf32, #tpu.memory_space<vmem>>, %arg2: memref<16x384xf32, #tpu.memory_space<vmem>>, %arg3: memref<1x384xf32, #tpu.memory_space<vmem>>, %arg4: memref<2x128x384xf32, #tpu.memory_space<vmem>>, %arg5: memref<2x1x384xf32, #tpu.memory_space<vmem>>, %arg6: memref<1x128x384xf32, #tpu.memory_space<vmem>>, %arg7: memref<1x1x384xf32, #tpu.memory_space<vmem>>, %arg8: memref<1x128xf32, #tpu.memory_space<vmem>>, %arg9: memref<1x128xf32, #tpu.memory_space<vmem>>, %arg10: memref<8x128xf32, #tpu.memory_space<vmem>>, %arg11: memref<8x128xf32, #tpu.memory_space<vmem>>, %arg12: memref<2x8x128xf32, #tpu.memory_space<vmem>>) attributes {dimension_semantics = [#tpu.dimension_semantics<arbitrary>], iteration_bounds = array<i64: 1>, scalar_prefetch = 0 : i64, scratch_operands = 1 : i64, tpu.core_type = #tpu.core_type<tc>, window_params = [{transform_indices = @transform_0, window_bounds = array<i64: 64, 16>}, {pipeline_mode = #tpu.pipeline_mode<synchronous>, transform_indices = @transform_1, window_bounds = array<i64: 16, 384>}, {pipeline_mode = #tpu.pipeline_mode<synchronous>, transform_indices = @transform_2, window_bounds = array<i64: 1, 384>}, {pipeline_mode = #tpu.pipeline_mode<synchronous>, transform_indices = @transform_3, window_bounds = array<i64: 2, 128, 384>}, {pipeline_mode = #tpu.pipeline_mode<synchronous>, transform_indices = @transform_4, window_bounds = array<i64: 2, 1, 384>}, {pipeline_mode = #tpu.pipeline_mode<synchronous>, transform_indices = @transform_5, window_bounds = array<i64: 1, 128, 384>}, {pipeline_mode = #tpu.pipeline_mode<synchronous>, transform_indices = @transform_6, window_bounds = array<i64: 1, 1, 384>}, {pipeline_mode = #tpu.pipeline_mode<synchronous>, transform_indices = @transform_7, window_bounds = array<i64: 1, 128>}, {pipeline_mode = #tpu.pipeline_mode<synchronous>, transform_indices = @transform_8, window_bounds = array<i64: 1, 128>}, {pipeline_mode = #tpu.pipeline_mode<synchronous>, transform_indices = @transform_9, window_bounds = array<i64: 8, 128>}, {pipeline_mode = #tpu.pipeline_mode<synchronous>, transform_indices = @transform_10, window_bounds = array<i64: 8, 128>}]} {
    %c0_i32 = arith.constant 0 : i32
    %0 = arith.cmpi eq, %arg0, %c0_i32 : i32
    %1 = arith.extui %0 : i1 to i32
    %c0_i32_0 = arith.constant 0 : i32
    %2 = arith.cmpi ne, %1, %c0_i32_0 : i32
    scf.if %2 {
      %cst_235 = arith.constant 0.000000e+00 : f32
      %614 = vector.broadcast %cst_235 : f32 to vector<2x8x128xf32>
      %c0_236 = arith.constant 0 : index
      %c0_237 = arith.constant 0 : index
      %c0_238 = arith.constant 0 : index
      %615 = vector.load %arg12[%c0_236, %c0_237, %c0_238] : memref<2x8x128xf32, #tpu.memory_space<vmem>>, vector<2x8x128xf32>
      tpu.vector_store %arg12[%c0_236, %c0_237, %c0_238], %614 {strides = array<i32>} : memref<2x8x128xf32, #tpu.memory_space<vmem>>, vector<2x8x128xf32>,
    } else {
    }
    %c0 = arith.constant 0 : index
    %c0_1 = arith.constant 0 : index
    %3 = vector.load %arg1[%c0, %c0_1] : memref<64x16xf32, #tpu.memory_space<vmem>>, vector<64x16xf32>
    %c0_2 = arith.constant 0 : index
    %c0_3 = arith.constant 0 : index
    %4 = vector.load %arg2[%c0_2, %c0_3] : memref<16x384xf32, #tpu.memory_space<vmem>>, vector<16x384xf32>
    %cst = arith.constant dense<0.000000e+00> : vector<64x384xf32>
    %5 = tpu.matmul %3, %4, %cst {dimension_numbers = #tpu.dot_dimension_numbers<[1], [0], [0], [1], [0, 0, 1, 1], [], []>} : vector<64x16xf32>, vector<16x384xf32>, vector<64x384xf32> -> vector<64x384xf32>
    %c0_4 = arith.constant 0 : index
    %c0_5 = arith.constant 0 : index
    %6 = vector.load %arg3[%c0_4, %c0_5] : memref<1x384xf32, #tpu.memory_space<vmem>>, vector<1x384xf32>
    %7 = vector.broadcast %6 : vector<1x384xf32> to vector<64x384xf32>
    %8 = arith.addf %5, %7 : vector<64x384xf32>
    %c0_6 = arith.constant 0 : index
    %c0_7 = arith.constant 0 : index
    %c0_8 = arith.constant 0 : index
    %9 = vector.load %arg12[%c0_6, %c0_7, %c0_8] : memref<2x8x128xf32, #tpu.memory_space<vmem>>, vector<1x8x128xf32>
    %10 = vector.shape_cast %9 : vector<1x8x128xf32> to vector<8x128xf32>
    %c1 = arith.constant 1 : index
    %c0_9 = arith.constant 0 : index
    %c0_10 = arith.constant 0 : index
    %11 = vector.load %arg12[%c1, %c0_9, %c0_10] : memref<2x8x128xf32, #tpu.memory_space<vmem>>, vector<1x8x128xf32>
    %12 = vector.shape_cast %11 : vector<1x8x128xf32> to vector<8x128xf32>
    %13 = vector.extract_strided_slice %8 {offsets = [0, 0], sizes = [8, 384], strides = [1, 1]} : vector<64x384xf32> to vector<8x384xf32>
    %c0_11 = arith.constant 0 : index
    %c0_12 = arith.constant 0 : index
    %c0_13 = arith.constant 0 : index
    %14 = vector.load %arg4[%c0_11, %c0_12, %c0_13] : memref<2x128x384xf32, #tpu.memory_space<vmem>>, vector<1x128x384xf32>
    %15 = vector.shape_cast %14 : vector<1x128x384xf32> to vector<128x384xf32>
    %cst_14 = arith.constant dense<0.000000e+00> : vector<8x384xf32>
    %16 = tpu.matmul %10, %15, %cst_14 {dimension_numbers = #tpu.dot_dimension_numbers<[1], [0], [0], [1], [0, 0, 1, 1], [], []>} : vector<8x128xf32>, vector<128x384xf32>, vector<8x384xf32> -> vector<8x384xf32>
    %c0_15 = arith.constant 0 : index
    %c0_16 = arith.constant 0 : index
    %c0_17 = arith.constant 0 : index
    %17 = vector.load %arg5[%c0_15, %c0_16, %c0_17] : memref<2x1x384xf32, #tpu.memory_space<vmem>>, vector<1x1x384xf32>
    %18 = vector.shape_cast %17 : vector<1x1x384xf32> to vector<1x384xf32>
    %19 = vector.broadcast %18 : vector<1x384xf32> to vector<8x384xf32>
    %20 = arith.addf %16, %19 : vector<8x384xf32>
    %21 = vector.extract_strided_slice %13 {offsets = [0, 0], sizes = [8, 128], strides = [1, 1]} : vector<8x384xf32> to vector<8x128xf32>
    %22 = vector.extract_strided_slice %20 {offsets = [0, 0], sizes = [8, 128], strides = [1, 1]} : vector<8x384xf32> to vector<8x128xf32>
    %23 = arith.addf %21, %22 : vector<8x128xf32>
    %24 = arith.negf %23 : vector<8x128xf32>
    %25 = math.exp %24 : vector<8x128xf32>
    %cst_18 = arith.constant 1.000000e+00 : f32
    %26 = vector.broadcast %cst_18 : f32 to vector<8x128xf32>
    %27 = arith.addf %26, %25 : vector<8x128xf32>
    %28 = arith.divf %26, %27 : vector<8x128xf32>
    %29 = vector.extract_strided_slice %13 {offsets = [0, 128], sizes = [8, 128], strides = [1, 1]} : vector<8x384xf32> to vector<8x128xf32>
    %30 = vector.extract_strided_slice %20 {offsets = [0, 128], sizes = [8, 128], strides = [1, 1]} : vector<8x384xf32> to vector<8x128xf32>
    %31 = arith.addf %29, %30 : vector<8x128xf32>
    %32 = arith.negf %31 : vector<8x128xf32>
    %33 = math.exp %32 : vector<8x128xf32>
    %cst_19 = arith.constant 1.000000e+00 : f32
    %34 = vector.broadcast %cst_19 : f32 to vector<8x128xf32>
    %35 = arith.addf %34, %33 : vector<8x128xf32>
    %36 = arith.divf %34, %35 : vector<8x128xf32>
    %37 = vector.extract_strided_slice %13 {offsets = [0, 256], sizes = [8, 128], strides = [1, 1]} : vector<8x384xf32> to vector<8x128xf32>
    %38 = vector.extract_strided_slice %20 {offsets = [0, 256], sizes = [8, 128], strides = [1, 1]} : vector<8x384xf32> to vector<8x128xf32>
    %39 = arith.mulf %28, %38 : vector<8x128xf32>
    %40 = arith.addf %37, %39 : vector<8x128xf32>
    %41 = math.tanh %40 : vector<8x128xf32>
    %cst_20 = arith.constant 1.000000e+00 : f32
    %42 = vector.broadcast %cst_20 : f32 to vector<8x128xf32>
    %43 = arith.subf %42, %36 : vector<8x128xf32>
    %44 = arith.mulf %43, %41 : vector<8x128xf32>
    %45 = arith.mulf %36, %10 : vector<8x128xf32>
    %46 = arith.addf %44, %45 : vector<8x128xf32>
    %c0_21 = arith.constant 0 : index
    %c0_22 = arith.constant 0 : index
    %c0_23 = arith.constant 0 : index
    %47 = vector.load %arg6[%c0_21, %c0_22, %c0_23] : memref<1x128x384xf32, #tpu.memory_space<vmem>>, vector<1x128x384xf32>
    %48 = vector.shape_cast %47 : vector<1x128x384xf32> to vector<128x384xf32>
    %cst_24 = arith.constant dense<0.000000e+00> : vector<8x384xf32>
    %49 = tpu.matmul %46, %48, %cst_24 {dimension_numbers = #tpu.dot_dimension_numbers<[1], [0], [0], [1], [0, 0, 1, 1], [], []>} : vector<8x128xf32>, vector<128x384xf32>, vector<8x384xf32> -> vector<8x384xf32>
    %c0_25 = arith.constant 0 : index
    %c0_26 = arith.constant 0 : index
    %c0_27 = arith.constant 0 : index
    %50 = vector.load %arg7[%c0_25, %c0_26, %c0_27] : memref<1x1x384xf32, #tpu.memory_space<vmem>>, vector<1x1x384xf32>
    %51 = vector.shape_cast %50 : vector<1x1x384xf32> to vector<1x384xf32>
    %52 = vector.broadcast %51 : vector<1x384xf32> to vector<8x384xf32>
    %53 = arith.addf %49, %52 : vector<8x384xf32>
    %c1_28 = arith.constant 1 : index
    %c0_29 = arith.constant 0 : index
    %c0_30 = arith.constant 0 : index
    %54 = vector.load %arg4[%c1_28, %c0_29, %c0_30] : memref<2x128x384xf32, #tpu.memory_space<vmem>>, vector<1x128x384xf32>
    %55 = vector.shape_cast %54 : vector<1x128x384xf32> to vector<128x384xf32>
    %cst_31 = arith.constant dense<0.000000e+00> : vector<8x384xf32>
    %56 = tpu.matmul %12, %55, %cst_31 {dimension_numbers = #tpu.dot_dimension_numbers<[1], [0], [0], [1], [0, 0, 1, 1], [], []>} : vector<8x128xf32>, vector<128x384xf32>, vector<8x384xf32> -> vector<8x384xf32>
    %c1_32 = arith.constant 1 : index
    %c0_33 = arith.constant 0 : index
    %c0_34 = arith.constant 0 : index
    %57 = vector.load %arg5[%c1_32, %c0_33, %c0_34] : memref<2x1x384xf32, #tpu.memory_space<vmem>>, vector<1x1x384xf32>
    %58 = vector.shape_cast %57 : vector<1x1x384xf32> to vector<1x384xf32>
    %59 = vector.broadcast %58 : vector<1x384xf32> to vector<8x384xf32>
    %60 = arith.addf %56, %59 : vector<8x384xf32>
    %61 = vector.extract_strided_slice %53 {offsets = [0, 0], sizes = [8, 128], strides = [1, 1]} : vector<8x384xf32> to vector<8x128xf32>
    %62 = vector.extract_strided_slice %60 {offsets = [0, 0], sizes = [8, 128], strides = [1, 1]} : vector<8x384xf32> to vector<8x128xf32>
    %63 = arith.addf %61, %62 : vector<8x128xf32>
    %64 = arith.negf %63 : vector<8x128xf32>
    %65 = math.exp %64 : vector<8x128xf32>
    %cst_35 = arith.constant 1.000000e+00 : f32
    %66 = vector.broadcast %cst_35 : f32 to vector<8x128xf32>
    %67 = arith.addf %66, %65 : vector<8x128xf32>
    %68 = arith.divf %66, %67 : vector<8x128xf32>
    %69 = vector.extract_strided_slice %53 {offsets = [0, 128], sizes = [8, 128], strides = [1, 1]} : vector<8x384xf32> to vector<8x128xf32>
    %70 = vector.extract_strided_slice %60 {offsets = [0, 128], sizes = [8, 128], strides = [1, 1]} : vector<8x384xf32> to vector<8x128xf32>
    %71 = arith.addf %69, %70 : vector<8x128xf32>
    %72 = arith.negf %71 : vector<8x128xf32>
    %73 = math.exp %72 : vector<8x128xf32>
    %cst_36 = arith.constant 1.000000e+00 : f32
    %74 = vector.broadcast %cst_36 : f32 to vector<8x128xf32>
    %75 = arith.addf %74, %73 : vector<8x128xf32>
    %76 = arith.divf %74, %75 : vector<8x128xf32>
    %77 = vector.extract_strided_slice %53 {offsets = [0, 256], sizes = [8, 128], strides = [1, 1]} : vector<8x384xf32> to vector<8x128xf32>
    %78 = vector.extract_strided_slice %60 {offsets = [0, 256], sizes = [8, 128], strides = [1, 1]} : vector<8x384xf32> to vector<8x128xf32>
    %79 = arith.mulf %68, %78 : vector<8x128xf32>
    %80 = arith.addf %77, %79 : vector<8x128xf32>
    %81 = math.tanh %80 : vector<8x128xf32>
    %cst_37 = arith.constant 1.000000e+00 : f32
    %82 = vector.broadcast %cst_37 : f32 to vector<8x128xf32>
    %83 = arith.subf %82, %76 : vector<8x128xf32>
    %84 = arith.mulf %83, %81 : vector<8x128xf32>
    %85 = arith.mulf %76, %12 : vector<8x128xf32>
    %86 = arith.addf %84, %85 : vector<8x128xf32>
    %87 = vector.extract_strided_slice %8 {offsets = [8, 0], sizes = [8, 384], strides = [1, 1]} : vector<64x384xf32> to vector<8x384xf32>
    %c0_38 = arith.constant 0 : index
    %c0_39 = arith.constant 0 : index
    %c0_40 = arith.constant 0 : index
    %88 = vector.load %arg4[%c0_38, %c0_39, %c0_40] : memref<2x128x384xf32, #tpu.memory_space<vmem>>, vector<1x128x384xf32>
    %89 = vector.shape_cast %88 : vector<1x128x384xf32> to vector<128x384xf32>
    %cst_41 = arith.constant dense<0.000000e+00> : vector<8x384xf32>
    %90 = tpu.matmul %46, %89, %cst_41 {dimension_numbers = #tpu.dot_dimension_numbers<[1], [0], [0], [1], [0, 0, 1, 1], [], []>} : vector<8x128xf32>, vector<128x384xf32>, vector<8x384xf32> -> vector<8x384xf32>
    %c0_42 = arith.constant 0 : index
    %c0_43 = arith.constant 0 : index
    %c0_44 = arith.constant 0 : index
    %91 = vector.load %arg5[%c0_42, %c0_43, %c0_44] : memref<2x1x384xf32, #tpu.memory_space<vmem>>, vector<1x1x384xf32>
    %92 = vector.shape_cast %91 : vector<1x1x384xf32> to vector<1x384xf32>
    %93 = vector.broadcast %92 : vector<1x384xf32> to vector<8x384xf32>
    %94 = arith.addf %90, %93 : vector<8x384xf32>
    %95 = vector.extract_strided_slice %87 {offsets = [0, 0], sizes = [8, 128], strides = [1, 1]} : vector<8x384xf32> to vector<8x128xf32>
    %96 = vector.extract_strided_slice %94 {offsets = [0, 0], sizes = [8, 128], strides = [1, 1]} : vector<8x384xf32> to vector<8x128xf32>
    %97 = arith.addf %95, %96 : vector<8x128xf32>
    %98 = arith.negf %97 : vector<8x128xf32>
    %99 = math.exp %98 : vector<8x128xf32>
    %cst_45 = arith.constant 1.000000e+00 : f32
    %100 = vector.broadcast %cst_45 : f32 to vector<8x128xf32>
    %101 = arith.addf %100, %99 : vector<8x128xf32>
    %102 = arith.divf %100, %101 : vector<8x128xf32>
    %103 = vector.extract_strided_slice %87 {offsets = [0, 128], sizes = [8, 128], strides = [1, 1]} : vector<8x384xf32> to vector<8x128xf32>
    %104 = vector.extract_strided_slice %94 {offsets = [0, 128], sizes = [8, 128], strides = [1, 1]} : vector<8x384xf32> to vector<8x128xf32>
    %105 = arith.addf %103, %104 : vector<8x128xf32>
    %106 = arith.negf %105 : vector<8x128xf32>
    %107 = math.exp %106 : vector<8x128xf32>
    %cst_46 = arith.constant 1.000000e+00 : f32
    %108 = vector.broadcast %cst_46 : f32 to vector<8x128xf32>
    %109 = arith.addf %108, %107 : vector<8x128xf32>
    %110 = arith.divf %108, %109 : vector<8x128xf32>
    %111 = vector.extract_strided_slice %87 {offsets = [0, 256], sizes = [8, 128], strides = [1, 1]} : vector<8x384xf32> to vector<8x128xf32>
    %112 = vector.extract_strided_slice %94 {offsets = [0, 256], sizes = [8, 128], strides = [1, 1]} : vector<8x384xf32> to vector<8x128xf32>
    %113 = arith.mulf %102, %112 : vector<8x128xf32>
    %114 = arith.addf %111, %113 : vector<8x128xf32>
    %115 = math.tanh %114 : vector<8x128xf32>
    %cst_47 = arith.constant 1.000000e+00 : f32
    %116 = vector.broadcast %cst_47 : f32 to vector<8x128xf32>
    %117 = arith.subf %116, %110 : vector<8x128xf32>
    %118 = arith.mulf %117, %115 : vector<8x128xf32>
    %119 = arith.mulf %110, %46 : vector<8x128xf32>
    %120 = arith.addf %118, %119 : vector<8x128xf32>
    %c0_48 = arith.constant 0 : index
    %c0_49 = arith.constant 0 : index
    %c0_50 = arith.constant 0 : index
    %121 = vector.load %arg6[%c0_48, %c0_49, %c0_50] : memref<1x128x384xf32, #tpu.memory_space<vmem>>, vector<1x128x384xf32>
    %122 = vector.shape_cast %121 : vector<1x128x384xf32> to vector<128x384xf32>
    %cst_51 = arith.constant dense<0.000000e+00> : vector<8x384xf32>
    %123 = tpu.matmul %120, %122, %cst_51 {dimension_numbers = #tpu.dot_dimension_numbers<[1], [0], [0], [1], [0, 0, 1, 1], [], []>} : vector<8x128xf32>, vector<128x384xf32>, vector<8x384xf32> -> vector<8x384xf32>
    %c0_52 = arith.constant 0 : index
    %c0_53 = arith.constant 0 : index
    %c0_54 = arith.constant 0 : index
    %124 = vector.load %arg7[%c0_52, %c0_53, %c0_54] : memref<1x1x384xf32, #tpu.memory_space<vmem>>, vector<1x1x384xf32>
    %125 = vector.shape_cast %124 : vector<1x1x384xf32> to vector<1x384xf32>
    %126 = vector.broadcast %125 : vector<1x384xf32> to vector<8x384xf32>
    %127 = arith.addf %123, %126 : vector<8x384xf32>
    %c1_55 = arith.constant 1 : index
    %c0_56 = arith.constant 0 : index
    %c0_57 = arith.constant 0 : index
    %128 = vector.load %arg4[%c1_55, %c0_56, %c0_57] : memref<2x128x384xf32, #tpu.memory_space<vmem>>, vector<1x128x384xf32>
    %129 = vector.shape_cast %128 : vector<1x128x384xf32> to vector<128x384xf32>
    %cst_58 = arith.constant dense<0.000000e+00> : vector<8x384xf32>
    %130 = tpu.matmul %86, %129, %cst_58 {dimension_numbers = #tpu.dot_dimension_numbers<[1], [0], [0], [1], [0, 0, 1, 1], [], []>} : vector<8x128xf32>, vector<128x384xf32>, vector<8x384xf32> -> vector<8x384xf32>
    %c1_59 = arith.constant 1 : index
    %c0_60 = arith.constant 0 : index
    %c0_61 = arith.constant 0 : index
    %131 = vector.load %arg5[%c1_59, %c0_60, %c0_61] : memref<2x1x384xf32, #tpu.memory_space<vmem>>, vector<1x1x384xf32>
    %132 = vector.shape_cast %131 : vector<1x1x384xf32> to vector<1x384xf32>
    %133 = vector.broadcast %132 : vector<1x384xf32> to vector<8x384xf32>
    %134 = arith.addf %130, %133 : vector<8x384xf32>
    %135 = vector.extract_strided_slice %127 {offsets = [0, 0], sizes = [8, 128], strides = [1, 1]} : vector<8x384xf32> to vector<8x128xf32>
    %136 = vector.extract_strided_slice %134 {offsets = [0, 0], sizes = [8, 128], strides = [1, 1]} : vector<8x384xf32> to vector<8x128xf32>
    %137 = arith.addf %135, %136 : vector<8x128xf32>
    %138 = arith.negf %137 : vector<8x128xf32>
    %139 = math.exp %138 : vector<8x128xf32>
    %cst_62 = arith.constant 1.000000e+00 : f32
    %140 = vector.broadcast %cst_62 : f32 to vector<8x128xf32>
    %141 = arith.addf %140, %139 : vector<8x128xf32>
    %142 = arith.divf %140, %141 : vector<8x128xf32>
    %143 = vector.extract_strided_slice %127 {offsets = [0, 128], sizes = [8, 128], strides = [1, 1]} : vector<8x384xf32> to vector<8x128xf32>
    %144 = vector.extract_strided_slice %134 {offsets = [0, 128], sizes = [8, 128], strides = [1, 1]} : vector<8x384xf32> to vector<8x128xf32>
    %145 = arith.addf %143, %144 : vector<8x128xf32>
    %146 = arith.negf %145 : vector<8x128xf32>
    %147 = math.exp %146 : vector<8x128xf32>
    %cst_63 = arith.constant 1.000000e+00 : f32
    %148 = vector.broadcast %cst_63 : f32 to vector<8x128xf32>
    %149 = arith.addf %148, %147 : vector<8x128xf32>
    %150 = arith.divf %148, %149 : vector<8x128xf32>
    %151 = vector.extract_strided_slice %127 {offsets = [0, 256], sizes = [8, 128], strides = [1, 1]} : vector<8x384xf32> to vector<8x128xf32>
    %152 = vector.extract_strided_slice %134 {offsets = [0, 256], sizes = [8, 128], strides = [1, 1]} : vector<8x384xf32> to vector<8x128xf32>
    %153 = arith.mulf %142, %152 : vector<8x128xf32>
    %154 = arith.addf %151, %153 : vector<8x128xf32>
    %155 = math.tanh %154 : vector<8x128xf32>
    %cst_64 = arith.constant 1.000000e+00 : f32
    %156 = vector.broadcast %cst_64 : f32 to vector<8x128xf32>
    %157 = arith.subf %156, %150 : vector<8x128xf32>
    %158 = arith.mulf %157, %155 : vector<8x128xf32>
    %159 = arith.mulf %150, %86 : vector<8x128xf32>
    %160 = arith.addf %158, %159 : vector<8x128xf32>
    %161 = vector.extract_strided_slice %8 {offsets = [16, 0], sizes = [8, 384], strides = [1, 1]} : vector<64x384xf32> to vector<8x384xf32>
    %c0_65 = arith.constant 0 : index
    %c0_66 = arith.constant 0 : index
    %c0_67 = arith.constant 0 : index
    %162 = vector.load %arg4[%c0_65, %c0_66, %c0_67] : memref<2x128x384xf32, #tpu.memory_space<vmem>>, vector<1x128x384xf32>
    %163 = vector.shape_cast %162 : vector<1x128x384xf32> to vector<128x384xf32>
    %cst_68 = arith.constant dense<0.000000e+00> : vector<8x384xf32>
    %164 = tpu.matmul %120, %163, %cst_68 {dimension_numbers = #tpu.dot_dimension_numbers<[1], [0], [0], [1], [0, 0, 1, 1], [], []>} : vector<8x128xf32>, vector<128x384xf32>, vector<8x384xf32> -> vector<8x384xf32>
    %c0_69 = arith.constant 0 : index
    %c0_70 = arith.constant 0 : index
    %c0_71 = arith.constant 0 : index
    %165 = vector.load %arg5[%c0_69, %c0_70, %c0_71] : memref<2x1x384xf32, #tpu.memory_space<vmem>>, vector<1x1x384xf32>
    %166 = vector.shape_cast %165 : vector<1x1x384xf32> to vector<1x384xf32>
    %167 = vector.broadcast %166 : vector<1x384xf32> to vector<8x384xf32>
    %168 = arith.addf %164, %167 : vector<8x384xf32>
    %169 = vector.extract_strided_slice %161 {offsets = [0, 0], sizes = [8, 128], strides = [1, 1]} : vector<8x384xf32> to vector<8x128xf32>
    %170 = vector.extract_strided_slice %168 {offsets = [0, 0], sizes = [8, 128], strides = [1, 1]} : vector<8x384xf32> to vector<8x128xf32>
    %171 = arith.addf %169, %170 : vector<8x128xf32>
    %172 = arith.negf %171 : vector<8x128xf32>
    %173 = math.exp %172 : vector<8x128xf32>
    %cst_72 = arith.constant 1.000000e+00 : f32
    %174 = vector.broadcast %cst_72 : f32 to vector<8x128xf32>
    %175 = arith.addf %174, %173 : vector<8x128xf32>
    %176 = arith.divf %174, %175 : vector<8x128xf32>
    %177 = vector.extract_strided_slice %161 {offsets = [0, 128], sizes = [8, 128], strides = [1, 1]} : vector<8x384xf32> to vector<8x128xf32>
    %178 = vector.extract_strided_slice %168 {offsets = [0, 128], sizes = [8, 128], strides = [1, 1]} : vector<8x384xf32> to vector<8x128xf32>
    %179 = arith.addf %177, %178 : vector<8x128xf32>
    %180 = arith.negf %179 : vector<8x128xf32>
    %181 = math.exp %180 : vector<8x128xf32>
    %cst_73 = arith.constant 1.000000e+00 : f32
    %182 = vector.broadcast %cst_73 : f32 to vector<8x128xf32>
    %183 = arith.addf %182, %181 : vector<8x128xf32>
    %184 = arith.divf %182, %183 : vector<8x128xf32>
    %185 = vector.extract_strided_slice %161 {offsets = [0, 256], sizes = [8, 128], strides = [1, 1]} : vector<8x384xf32> to vector<8x128xf32>
    %186 = vector.extract_strided_slice %168 {offsets = [0, 256], sizes = [8, 128], strides = [1, 1]} : vector<8x384xf32> to vector<8x128xf32>
    %187 = arith.mulf %176, %186 : vector<8x128xf32>
    %188 = arith.addf %185, %187 : vector<8x128xf32>
    %189 = math.tanh %188 : vector<8x128xf32>
    %cst_74 = arith.constant 1.000000e+00 : f32
    %190 = vector.broadcast %cst_74 : f32 to vector<8x128xf32>
    %191 = arith.subf %190, %184 : vector<8x128xf32>
    %192 = arith.mulf %191, %189 : vector<8x128xf32>
    %193 = arith.mulf %184, %120 : vector<8x128xf32>
    %194 = arith.addf %192, %193 : vector<8x128xf32>
    %c0_75 = arith.constant 0 : index
    %c0_76 = arith.constant 0 : index
    %c0_77 = arith.constant 0 : index
    %195 = vector.load %arg6[%c0_75, %c0_76, %c0_77] : memref<1x128x384xf32, #tpu.memory_space<vmem>>, vector<1x128x384xf32>
    %196 = vector.shape_cast %195 : vector<1x128x384xf32> to vector<128x384xf32>
    %cst_78 = arith.constant dense<0.000000e+00> : vector<8x384xf32>
    %197 = tpu.matmul %194, %196, %cst_78 {dimension_numbers = #tpu.dot_dimension_numbers<[1], [0], [0], [1], [0, 0, 1, 1], [], []>} : vector<8x128xf32>, vector<128x384xf32>, vector<8x384xf32> -> vector<8x384xf32>
    %c0_79 = arith.constant 0 : index
    %c0_80 = arith.constant 0 : index
    %c0_81 = arith.constant 0 : index
    %198 = vector.load %arg7[%c0_79, %c0_80, %c0_81] : memref<1x1x384xf32, #tpu.memory_space<vmem>>, vector<1x1x384xf32>
    %199 = vector.shape_cast %198 : vector<1x1x384xf32> to vector<1x384xf32>
    %200 = vector.broadcast %199 : vector<1x384xf32> to vector<8x384xf32>
    %201 = arith.addf %197, %200 : vector<8x384xf32>
    %c1_82 = arith.constant 1 : index
    %c0_83 = arith.constant 0 : index
    %c0_84 = arith.constant 0 : index
    %202 = vector.load %arg4[%c1_82, %c0_83, %c0_84] : memref<2x128x384xf32, #tpu.memory_space<vmem>>, vector<1x128x384xf32>
    %203 = vector.shape_cast %202 : vector<1x128x384xf32> to vector<128x384xf32>
    %cst_85 = arith.constant dense<0.000000e+00> : vector<8x384xf32>
    %204 = tpu.matmul %160, %203, %cst_85 {dimension_numbers = #tpu.dot_dimension_numbers<[1], [0], [0], [1], [0, 0, 1, 1], [], []>} : vector<8x128xf32>, vector<128x384xf32>, vector<8x384xf32> -> vector<8x384xf32>
    %c1_86 = arith.constant 1 : index
    %c0_87 = arith.constant 0 : index
    %c0_88 = arith.constant 0 : index
    %205 = vector.load %arg5[%c1_86, %c0_87, %c0_88] : memref<2x1x384xf32, #tpu.memory_space<vmem>>, vector<1x1x384xf32>
    %206 = vector.shape_cast %205 : vector<1x1x384xf32> to vector<1x384xf32>
    %207 = vector.broadcast %206 : vector<1x384xf32> to vector<8x384xf32>
    %208 = arith.addf %204, %207 : vector<8x384xf32>
    %209 = vector.extract_strided_slice %201 {offsets = [0, 0], sizes = [8, 128], strides = [1, 1]} : vector<8x384xf32> to vector<8x128xf32>
    %210 = vector.extract_strided_slice %208 {offsets = [0, 0], sizes = [8, 128], strides = [1, 1]} : vector<8x384xf32> to vector<8x128xf32>
    %211 = arith.addf %209, %210 : vector<8x128xf32>
    %212 = arith.negf %211 : vector<8x128xf32>
    %213 = math.exp %212 : vector<8x128xf32>
    %cst_89 = arith.constant 1.000000e+00 : f32
    %214 = vector.broadcast %cst_89 : f32 to vector<8x128xf32>
    %215 = arith.addf %214, %213 : vector<8x128xf32>
    %216 = arith.divf %214, %215 : vector<8x128xf32>
    %217 = vector.extract_strided_slice %201 {offsets = [0, 128], sizes = [8, 128], strides = [1, 1]} : vector<8x384xf32> to vector<8x128xf32>
    %218 = vector.extract_strided_slice %208 {offsets = [0, 128], sizes = [8, 128], strides = [1, 1]} : vector<8x384xf32> to vector<8x128xf32>
    %219 = arith.addf %217, %218 : vector<8x128xf32>
    %220 = arith.negf %219 : vector<8x128xf32>
    %221 = math.exp %220 : vector<8x128xf32>
    %cst_90 = arith.constant 1.000000e+00 : f32
    %222 = vector.broadcast %cst_90 : f32 to vector<8x128xf32>
    %223 = arith.addf %222, %221 : vector<8x128xf32>
    %224 = arith.divf %222, %223 : vector<8x128xf32>
    %225 = vector.extract_strided_slice %201 {offsets = [0, 256], sizes = [8, 128], strides = [1, 1]} : vector<8x384xf32> to vector<8x128xf32>
    %226 = vector.extract_strided_slice %208 {offsets = [0, 256], sizes = [8, 128], strides = [1, 1]} : vector<8x384xf32> to vector<8x128xf32>
    %227 = arith.mulf %216, %226 : vector<8x128xf32>
    %228 = arith.addf %225, %227 : vector<8x128xf32>
    %229 = math.tanh %228 : vector<8x128xf32>
    %cst_91 = arith.constant 1.000000e+00 : f32
    %230 = vector.broadcast %cst_91 : f32 to vector<8x128xf32>
    %231 = arith.subf %230, %224 : vector<8x128xf32>
    %232 = arith.mulf %231, %229 : vector<8x128xf32>
    %233 = arith.mulf %224, %160 : vector<8x128xf32>
    %234 = arith.addf %232, %233 : vector<8x128xf32>
    %235 = vector.extract_strided_slice %8 {offsets = [24, 0], sizes = [8, 384], strides = [1, 1]} : vector<64x384xf32> to vector<8x384xf32>
    %c0_92 = arith.constant 0 : index
    %c0_93 = arith.constant 0 : index
    %c0_94 = arith.constant 0 : index
    %236 = vector.load %arg4[%c0_92, %c0_93, %c0_94] : memref<2x128x384xf32, #tpu.memory_space<vmem>>, vector<1x128x384xf32>
    %237 = vector.shape_cast %236 : vector<1x128x384xf32> to vector<128x384xf32>
    %cst_95 = arith.constant dense<0.000000e+00> : vector<8x384xf32>
    %238 = tpu.matmul %194, %237, %cst_95 {dimension_numbers = #tpu.dot_dimension_numbers<[1], [0], [0], [1], [0, 0, 1, 1], [], []>} : vector<8x128xf32>, vector<128x384xf32>, vector<8x384xf32> -> vector<8x384xf32>
    %c0_96 = arith.constant 0 : index
    %c0_97 = arith.constant 0 : index
    %c0_98 = arith.constant 0 : index
    %239 = vector.load %arg5[%c0_96, %c0_97, %c0_98] : memref<2x1x384xf32, #tpu.memory_space<vmem>>, vector<1x1x384xf32>
    %240 = vector.shape_cast %239 : vector<1x1x384xf32> to vector<1x384xf32>
    %241 = vector.broadcast %240 : vector<1x384xf32> to vector<8x384xf32>
    %242 = arith.addf %238, %241 : vector<8x384xf32>
    %243 = vector.extract_strided_slice %235 {offsets = [0, 0], sizes = [8, 128], strides = [1, 1]} : vector<8x384xf32> to vector<8x128xf32>
    %244 = vector.extract_strided_slice %242 {offsets = [0, 0], sizes = [8, 128], strides = [1, 1]} : vector<8x384xf32> to vector<8x128xf32>
    %245 = arith.addf %243, %244 : vector<8x128xf32>
    %246 = arith.negf %245 : vector<8x128xf32>
    %247 = math.exp %246 : vector<8x128xf32>
    %cst_99 = arith.constant 1.000000e+00 : f32
    %248 = vector.broadcast %cst_99 : f32 to vector<8x128xf32>
    %249 = arith.addf %248, %247 : vector<8x128xf32>
    %250 = arith.divf %248, %249 : vector<8x128xf32>
    %251 = vector.extract_strided_slice %235 {offsets = [0, 128], sizes = [8, 128], strides = [1, 1]} : vector<8x384xf32> to vector<8x128xf32>
    %252 = vector.extract_strided_slice %242 {offsets = [0, 128], sizes = [8, 128], strides = [1, 1]} : vector<8x384xf32> to vector<8x128xf32>
    %253 = arith.addf %251, %252 : vector<8x128xf32>
    %254 = arith.negf %253 : vector<8x128xf32>
    %255 = math.exp %254 : vector<8x128xf32>
    %cst_100 = arith.constant 1.000000e+00 : f32
    %256 = vector.broadcast %cst_100 : f32 to vector<8x128xf32>
    %257 = arith.addf %256, %255 : vector<8x128xf32>
    %258 = arith.divf %256, %257 : vector<8x128xf32>
    %259 = vector.extract_strided_slice %235 {offsets = [0, 256], sizes = [8, 128], strides = [1, 1]} : vector<8x384xf32> to vector<8x128xf32>
    %260 = vector.extract_strided_slice %242 {offsets = [0, 256], sizes = [8, 128], strides = [1, 1]} : vector<8x384xf32> to vector<8x128xf32>
    %261 = arith.mulf %250, %260 : vector<8x128xf32>
    %262 = arith.addf %259, %261 : vector<8x128xf32>
    %263 = math.tanh %262 : vector<8x128xf32>
    %cst_101 = arith.constant 1.000000e+00 : f32
    %264 = vector.broadcast %cst_101 : f32 to vector<8x128xf32>
    %265 = arith.subf %264, %258 : vector<8x128xf32>
    %266 = arith.mulf %265, %263 : vector<8x128xf32>
    %267 = arith.mulf %258, %194 : vector<8x128xf32>
    %268 = arith.addf %266, %267 : vector<8x128xf32>
    %c0_102 = arith.constant 0 : index
    %c0_103 = arith.constant 0 : index
    %c0_104 = arith.constant 0 : index
    %269 = vector.load %arg6[%c0_102, %c0_103, %c0_104] : memref<1x128x384xf32, #tpu.memory_space<vmem>>, vector<1x128x384xf32>
    %270 = vector.shape_cast %269 : vector<1x128x384xf32> to vector<128x384xf32>
    %cst_105 = arith.constant dense<0.000000e+00> : vector<8x384xf32>
    %271 = tpu.matmul %268, %270, %cst_105 {dimension_numbers = #tpu.dot_dimension_numbers<[1], [0], [0], [1], [0, 0, 1, 1], [], []>} : vector<8x128xf32>, vector<128x384xf32>, vector<8x384xf32> -> vector<8x384xf32>
    %c0_106 = arith.constant 0 : index
    %c0_107 = arith.constant 0 : index
    %c0_108 = arith.constant 0 : index
    %272 = vector.load %arg7[%c0_106, %c0_107, %c0_108] : memref<1x1x384xf32, #tpu.memory_space<vmem>>, vector<1x1x384xf32>
    %273 = vector.shape_cast %272 : vector<1x1x384xf32> to vector<1x384xf32>
    %274 = vector.broadcast %273 : vector<1x384xf32> to vector<8x384xf32>
    %275 = arith.addf %271, %274 : vector<8x384xf32>
    %c1_109 = arith.constant 1 : index
    %c0_110 = arith.constant 0 : index
    %c0_111 = arith.constant 0 : index
    %276 = vector.load %arg4[%c1_109, %c0_110, %c0_111] : memref<2x128x384xf32, #tpu.memory_space<vmem>>, vector<1x128x384xf32>
    %277 = vector.shape_cast %276 : vector<1x128x384xf32> to vector<128x384xf32>
    %cst_112 = arith.constant dense<0.000000e+00> : vector<8x384xf32>
    %278 = tpu.matmul %234, %277, %cst_112 {dimension_numbers = #tpu.dot_dimension_numbers<[1], [0], [0], [1], [0, 0, 1, 1], [], []>} : vector<8x128xf32>, vector<128x384xf32>, vector<8x384xf32> -> vector<8x384xf32>
    %c1_113 = arith.constant 1 : index
    %c0_114 = arith.constant 0 : index
    %c0_115 = arith.constant 0 : index
    %279 = vector.load %arg5[%c1_113, %c0_114, %c0_115] : memref<2x1x384xf32, #tpu.memory_space<vmem>>, vector<1x1x384xf32>
    %280 = vector.shape_cast %279 : vector<1x1x384xf32> to vector<1x384xf32>
    %281 = vector.broadcast %280 : vector<1x384xf32> to vector<8x384xf32>
    %282 = arith.addf %278, %281 : vector<8x384xf32>
    %283 = vector.extract_strided_slice %275 {offsets = [0, 0], sizes = [8, 128], strides = [1, 1]} : vector<8x384xf32> to vector<8x128xf32>
    %284 = vector.extract_strided_slice %282 {offsets = [0, 0], sizes = [8, 128], strides = [1, 1]} : vector<8x384xf32> to vector<8x128xf32>
    %285 = arith.addf %283, %284 : vector<8x128xf32>
    %286 = arith.negf %285 : vector<8x128xf32>
    %287 = math.exp %286 : vector<8x128xf32>
    %cst_116 = arith.constant 1.000000e+00 : f32
    %288 = vector.broadcast %cst_116 : f32 to vector<8x128xf32>
    %289 = arith.addf %288, %287 : vector<8x128xf32>
    %290 = arith.divf %288, %289 : vector<8x128xf32>
    %291 = vector.extract_strided_slice %275 {offsets = [0, 128], sizes = [8, 128], strides = [1, 1]} : vector<8x384xf32> to vector<8x128xf32>
    %292 = vector.extract_strided_slice %282 {offsets = [0, 128], sizes = [8, 128], strides = [1, 1]} : vector<8x384xf32> to vector<8x128xf32>
    %293 = arith.addf %291, %292 : vector<8x128xf32>
    %294 = arith.negf %293 : vector<8x128xf32>
    %295 = math.exp %294 : vector<8x128xf32>
    %cst_117 = arith.constant 1.000000e+00 : f32
    %296 = vector.broadcast %cst_117 : f32 to vector<8x128xf32>
    %297 = arith.addf %296, %295 : vector<8x128xf32>
    %298 = arith.divf %296, %297 : vector<8x128xf32>
    %299 = vector.extract_strided_slice %275 {offsets = [0, 256], sizes = [8, 128], strides = [1, 1]} : vector<8x384xf32> to vector<8x128xf32>
    %300 = vector.extract_strided_slice %282 {offsets = [0, 256], sizes = [8, 128], strides = [1, 1]} : vector<8x384xf32> to vector<8x128xf32>
    %301 = arith.mulf %290, %300 : vector<8x128xf32>
    %302 = arith.addf %299, %301 : vector<8x128xf32>
    %303 = math.tanh %302 : vector<8x128xf32>
    %cst_118 = arith.constant 1.000000e+00 : f32
    %304 = vector.broadcast %cst_118 : f32 to vector<8x128xf32>
    %305 = arith.subf %304, %298 : vector<8x128xf32>
    %306 = arith.mulf %305, %303 : vector<8x128xf32>
    %307 = arith.mulf %298, %234 : vector<8x128xf32>
    %308 = arith.addf %306, %307 : vector<8x128xf32>
    %309 = vector.extract_strided_slice %8 {offsets = [32, 0], sizes = [8, 384], strides = [1, 1]} : vector<64x384xf32> to vector<8x384xf32>
    %c0_119 = arith.constant 0 : index
    %c0_120 = arith.constant 0 : index
    %c0_121 = arith.constant 0 : index
    %310 = vector.load %arg4[%c0_119, %c0_120, %c0_121] : memref<2x128x384xf32, #tpu.memory_space<vmem>>, vector<1x128x384xf32>
    %311 = vector.shape_cast %310 : vector<1x128x384xf32> to vector<128x384xf32>
    %cst_122 = arith.constant dense<0.000000e+00> : vector<8x384xf32>
    %312 = tpu.matmul %268, %311, %cst_122 {dimension_numbers = #tpu.dot_dimension_numbers<[1], [0], [0], [1], [0, 0, 1, 1], [], []>} : vector<8x128xf32>, vector<128x384xf32>, vector<8x384xf32> -> vector<8x384xf32>
    %c0_123 = arith.constant 0 : index
    %c0_124 = arith.constant 0 : index
    %c0_125 = arith.constant 0 : index
    %313 = vector.load %arg5[%c0_123, %c0_124, %c0_125] : memref<2x1x384xf32, #tpu.memory_space<vmem>>, vector<1x1x384xf32>
    %314 = vector.shape_cast %313 : vector<1x1x384xf32> to vector<1x384xf32>
    %315 = vector.broadcast %314 : vector<1x384xf32> to vector<8x384xf32>
    %316 = arith.addf %312, %315 : vector<8x384xf32>
    %317 = vector.extract_strided_slice %309 {offsets = [0, 0], sizes = [8, 128], strides = [1, 1]} : vector<8x384xf32> to vector<8x128xf32>
    %318 = vector.extract_strided_slice %316 {offsets = [0, 0], sizes = [8, 128], strides = [1, 1]} : vector<8x384xf32> to vector<8x128xf32>
    %319 = arith.addf %317, %318 : vector<8x128xf32>
    %320 = arith.negf %319 : vector<8x128xf32>
    %321 = math.exp %320 : vector<8x128xf32>
    %cst_126 = arith.constant 1.000000e+00 : f32
    %322 = vector.broadcast %cst_126 : f32 to vector<8x128xf32>
    %323 = arith.addf %322, %321 : vector<8x128xf32>
    %324 = arith.divf %322, %323 : vector<8x128xf32>
    %325 = vector.extract_strided_slice %309 {offsets = [0, 128], sizes = [8, 128], strides = [1, 1]} : vector<8x384xf32> to vector<8x128xf32>
    %326 = vector.extract_strided_slice %316 {offsets = [0, 128], sizes = [8, 128], strides = [1, 1]} : vector<8x384xf32> to vector<8x128xf32>
    %327 = arith.addf %325, %326 : vector<8x128xf32>
    %328 = arith.negf %327 : vector<8x128xf32>
    %329 = math.exp %328 : vector<8x128xf32>
    %cst_127 = arith.constant 1.000000e+00 : f32
    %330 = vector.broadcast %cst_127 : f32 to vector<8x128xf32>
    %331 = arith.addf %330, %329 : vector<8x128xf32>
    %332 = arith.divf %330, %331 : vector<8x128xf32>
    %333 = vector.extract_strided_slice %309 {offsets = [0, 256], sizes = [8, 128], strides = [1, 1]} : vector<8x384xf32> to vector<8x128xf32>
    %334 = vector.extract_strided_slice %316 {offsets = [0, 256], sizes = [8, 128], strides = [1, 1]} : vector<8x384xf32> to vector<8x128xf32>
    %335 = arith.mulf %324, %334 : vector<8x128xf32>
    %336 = arith.addf %333, %335 : vector<8x128xf32>
    %337 = math.tanh %336 : vector<8x128xf32>
    %cst_128 = arith.constant 1.000000e+00 : f32
    %338 = vector.broadcast %cst_128 : f32 to vector<8x128xf32>
    %339 = arith.subf %338, %332 : vector<8x128xf32>
    %340 = arith.mulf %339, %337 : vector<8x128xf32>
    %341 = arith.mulf %332, %268 : vector<8x128xf32>
    %342 = arith.addf %340, %341 : vector<8x128xf32>
    %c0_129 = arith.constant 0 : index
    %c0_130 = arith.constant 0 : index
    %c0_131 = arith.constant 0 : index
    %343 = vector.load %arg6[%c0_129, %c0_130, %c0_131] : memref<1x128x384xf32, #tpu.memory_space<vmem>>, vector<1x128x384xf32>
    %344 = vector.shape_cast %343 : vector<1x128x384xf32> to vector<128x384xf32>
    %cst_132 = arith.constant dense<0.000000e+00> : vector<8x384xf32>
    %345 = tpu.matmul %342, %344, %cst_132 {dimension_numbers = #tpu.dot_dimension_numbers<[1], [0], [0], [1], [0, 0, 1, 1], [], []>} : vector<8x128xf32>, vector<128x384xf32>, vector<8x384xf32> -> vector<8x384xf32>
    %c0_133 = arith.constant 0 : index
    %c0_134 = arith.constant 0 : index
    %c0_135 = arith.constant 0 : index
    %346 = vector.load %arg7[%c0_133, %c0_134, %c0_135] : memref<1x1x384xf32, #tpu.memory_space<vmem>>, vector<1x1x384xf32>
    %347 = vector.shape_cast %346 : vector<1x1x384xf32> to vector<1x384xf32>
    %348 = vector.broadcast %347 : vector<1x384xf32> to vector<8x384xf32>
    %349 = arith.addf %345, %348 : vector<8x384xf32>
    %c1_136 = arith.constant 1 : index
    %c0_137 = arith.constant 0 : index
    %c0_138 = arith.constant 0 : index
    %350 = vector.load %arg4[%c1_136, %c0_137, %c0_138] : memref<2x128x384xf32, #tpu.memory_space<vmem>>, vector<1x128x384xf32>
    %351 = vector.shape_cast %350 : vector<1x128x384xf32> to vector<128x384xf32>
    %cst_139 = arith.constant dense<0.000000e+00> : vector<8x384xf32>
    %352 = tpu.matmul %308, %351, %cst_139 {dimension_numbers = #tpu.dot_dimension_numbers<[1], [0], [0], [1], [0, 0, 1, 1], [], []>} : vector<8x128xf32>, vector<128x384xf32>, vector<8x384xf32> -> vector<8x384xf32>
    %c1_140 = arith.constant 1 : index
    %c0_141 = arith.constant 0 : index
    %c0_142 = arith.constant 0 : index
    %353 = vector.load %arg5[%c1_140, %c0_141, %c0_142] : memref<2x1x384xf32, #tpu.memory_space<vmem>>, vector<1x1x384xf32>
    %354 = vector.shape_cast %353 : vector<1x1x384xf32> to vector<1x384xf32>
    %355 = vector.broadcast %354 : vector<1x384xf32> to vector<8x384xf32>
    %356 = arith.addf %352, %355 : vector<8x384xf32>
    %357 = vector.extract_strided_slice %349 {offsets = [0, 0], sizes = [8, 128], strides = [1, 1]} : vector<8x384xf32> to vector<8x128xf32>
    %358 = vector.extract_strided_slice %356 {offsets = [0, 0], sizes = [8, 128], strides = [1, 1]} : vector<8x384xf32> to vector<8x128xf32>
    %359 = arith.addf %357, %358 : vector<8x128xf32>
    %360 = arith.negf %359 : vector<8x128xf32>
    %361 = math.exp %360 : vector<8x128xf32>
    %cst_143 = arith.constant 1.000000e+00 : f32
    %362 = vector.broadcast %cst_143 : f32 to vector<8x128xf32>
    %363 = arith.addf %362, %361 : vector<8x128xf32>
    %364 = arith.divf %362, %363 : vector<8x128xf32>
    %365 = vector.extract_strided_slice %349 {offsets = [0, 128], sizes = [8, 128], strides = [1, 1]} : vector<8x384xf32> to vector<8x128xf32>
    %366 = vector.extract_strided_slice %356 {offsets = [0, 128], sizes = [8, 128], strides = [1, 1]} : vector<8x384xf32> to vector<8x128xf32>
    %367 = arith.addf %365, %366 : vector<8x128xf32>
    %368 = arith.negf %367 : vector<8x128xf32>
    %369 = math.exp %368 : vector<8x128xf32>
    %cst_144 = arith.constant 1.000000e+00 : f32
    %370 = vector.broadcast %cst_144 : f32 to vector<8x128xf32>
    %371 = arith.addf %370, %369 : vector<8x128xf32>
    %372 = arith.divf %370, %371 : vector<8x128xf32>
    %373 = vector.extract_strided_slice %349 {offsets = [0, 256], sizes = [8, 128], strides = [1, 1]} : vector<8x384xf32> to vector<8x128xf32>
    %374 = vector.extract_strided_slice %356 {offsets = [0, 256], sizes = [8, 128], strides = [1, 1]} : vector<8x384xf32> to vector<8x128xf32>
    %375 = arith.mulf %364, %374 : vector<8x128xf32>
    %376 = arith.addf %373, %375 : vector<8x128xf32>
    %377 = math.tanh %376 : vector<8x128xf32>
    %cst_145 = arith.constant 1.000000e+00 : f32
    %378 = vector.broadcast %cst_145 : f32 to vector<8x128xf32>
    %379 = arith.subf %378, %372 : vector<8x128xf32>
    %380 = arith.mulf %379, %377 : vector<8x128xf32>
    %381 = arith.mulf %372, %308 : vector<8x128xf32>
    %382 = arith.addf %380, %381 : vector<8x128xf32>
    %383 = vector.extract_strided_slice %8 {offsets = [40, 0], sizes = [8, 384], strides = [1, 1]} : vector<64x384xf32> to vector<8x384xf32>
    %c0_146 = arith.constant 0 : index
    %c0_147 = arith.constant 0 : index
    %c0_148 = arith.constant 0 : index
    %384 = vector.load %arg4[%c0_146, %c0_147, %c0_148] : memref<2x128x384xf32, #tpu.memory_space<vmem>>, vector<1x128x384xf32>
    %385 = vector.shape_cast %384 : vector<1x128x384xf32> to vector<128x384xf32>
    %cst_149 = arith.constant dense<0.000000e+00> : vector<8x384xf32>
    %386 = tpu.matmul %342, %385, %cst_149 {dimension_numbers = #tpu.dot_dimension_numbers<[1], [0], [0], [1], [0, 0, 1, 1], [], []>} : vector<8x128xf32>, vector<128x384xf32>, vector<8x384xf32> -> vector<8x384xf32>
    %c0_150 = arith.constant 0 : index
    %c0_151 = arith.constant 0 : index
    %c0_152 = arith.constant 0 : index
    %387 = vector.load %arg5[%c0_150, %c0_151, %c0_152] : memref<2x1x384xf32, #tpu.memory_space<vmem>>, vector<1x1x384xf32>
    %388 = vector.shape_cast %387 : vector<1x1x384xf32> to vector<1x384xf32>
    %389 = vector.broadcast %388 : vector<1x384xf32> to vector<8x384xf32>
    %390 = arith.addf %386, %389 : vector<8x384xf32>
    %391 = vector.extract_strided_slice %383 {offsets = [0, 0], sizes = [8, 128], strides = [1, 1]} : vector<8x384xf32> to vector<8x128xf32>
    %392 = vector.extract_strided_slice %390 {offsets = [0, 0], sizes = [8, 128], strides = [1, 1]} : vector<8x384xf32> to vector<8x128xf32>
    %393 = arith.addf %391, %392 : vector<8x128xf32>
    %394 = arith.negf %393 : vector<8x128xf32>
    %395 = math.exp %394 : vector<8x128xf32>
    %cst_153 = arith.constant 1.000000e+00 : f32
    %396 = vector.broadcast %cst_153 : f32 to vector<8x128xf32>
    %397 = arith.addf %396, %395 : vector<8x128xf32>
    %398 = arith.divf %396, %397 : vector<8x128xf32>
    %399 = vector.extract_strided_slice %383 {offsets = [0, 128], sizes = [8, 128], strides = [1, 1]} : vector<8x384xf32> to vector<8x128xf32>
    %400 = vector.extract_strided_slice %390 {offsets = [0, 128], sizes = [8, 128], strides = [1, 1]} : vector<8x384xf32> to vector<8x128xf32>
    %401 = arith.addf %399, %400 : vector<8x128xf32>
    %402 = arith.negf %401 : vector<8x128xf32>
    %403 = math.exp %402 : vector<8x128xf32>
    %cst_154 = arith.constant 1.000000e+00 : f32
    %404 = vector.broadcast %cst_154 : f32 to vector<8x128xf32>
    %405 = arith.addf %404, %403 : vector<8x128xf32>
    %406 = arith.divf %404, %405 : vector<8x128xf32>
    %407 = vector.extract_strided_slice %383 {offsets = [0, 256], sizes = [8, 128], strides = [1, 1]} : vector<8x384xf32> to vector<8x128xf32>
    %408 = vector.extract_strided_slice %390 {offsets = [0, 256], sizes = [8, 128], strides = [1, 1]} : vector<8x384xf32> to vector<8x128xf32>
    %409 = arith.mulf %398, %408 : vector<8x128xf32>
    %410 = arith.addf %407, %409 : vector<8x128xf32>
    %411 = math.tanh %410 : vector<8x128xf32>
    %cst_155 = arith.constant 1.000000e+00 : f32
    %412 = vector.broadcast %cst_155 : f32 to vector<8x128xf32>
    %413 = arith.subf %412, %406 : vector<8x128xf32>
    %414 = arith.mulf %413, %411 : vector<8x128xf32>
    %415 = arith.mulf %406, %342 : vector<8x128xf32>
    %416 = arith.addf %414, %415 : vector<8x128xf32>
    %c0_156 = arith.constant 0 : index
    %c0_157 = arith.constant 0 : index
    %c0_158 = arith.constant 0 : index
    %417 = vector.load %arg6[%c0_156, %c0_157, %c0_158] : memref<1x128x384xf32, #tpu.memory_space<vmem>>, vector<1x128x384xf32>
    %418 = vector.shape_cast %417 : vector<1x128x384xf32> to vector<128x384xf32>
    %cst_159 = arith.constant dense<0.000000e+00> : vector<8x384xf32>
    %419 = tpu.matmul %416, %418, %cst_159 {dimension_numbers = #tpu.dot_dimension_numbers<[1], [0], [0], [1], [0, 0, 1, 1], [], []>} : vector<8x128xf32>, vector<128x384xf32>, vector<8x384xf32> -> vector<8x384xf32>
    %c0_160 = arith.constant 0 : index
    %c0_161 = arith.constant 0 : index
    %c0_162 = arith.constant 0 : index
    %420 = vector.load %arg7[%c0_160, %c0_161, %c0_162] : memref<1x1x384xf32, #tpu.memory_space<vmem>>, vector<1x1x384xf32>
    %421 = vector.shape_cast %420 : vector<1x1x384xf32> to vector<1x384xf32>
    %422 = vector.broadcast %421 : vector<1x384xf32> to vector<8x384xf32>
    %423 = arith.addf %419, %422 : vector<8x384xf32>
    %c1_163 = arith.constant 1 : index
    %c0_164 = arith.constant 0 : index
    %c0_165 = arith.constant 0 : index
    %424 = vector.load %arg4[%c1_163, %c0_164, %c0_165] : memref<2x128x384xf32, #tpu.memory_space<vmem>>, vector<1x128x384xf32>
    %425 = vector.shape_cast %424 : vector<1x128x384xf32> to vector<128x384xf32>
    %cst_166 = arith.constant dense<0.000000e+00> : vector<8x384xf32>
    %426 = tpu.matmul %382, %425, %cst_166 {dimension_numbers = #tpu.dot_dimension_numbers<[1], [0], [0], [1], [0, 0, 1, 1], [], []>} : vector<8x128xf32>, vector<128x384xf32>, vector<8x384xf32> -> vector<8x384xf32>
    %c1_167 = arith.constant 1 : index
    %c0_168 = arith.constant 0 : index
    %c0_169 = arith.constant 0 : index
    %427 = vector.load %arg5[%c1_167, %c0_168, %c0_169] : memref<2x1x384xf32, #tpu.memory_space<vmem>>, vector<1x1x384xf32>
    %428 = vector.shape_cast %427 : vector<1x1x384xf32> to vector<1x384xf32>
    %429 = vector.broadcast %428 : vector<1x384xf32> to vector<8x384xf32>
    %430 = arith.addf %426, %429 : vector<8x384xf32>
    %431 = vector.extract_strided_slice %423 {offsets = [0, 0], sizes = [8, 128], strides = [1, 1]} : vector<8x384xf32> to vector<8x128xf32>
    %432 = vector.extract_strided_slice %430 {offsets = [0, 0], sizes = [8, 128], strides = [1, 1]} : vector<8x384xf32> to vector<8x128xf32>
    %433 = arith.addf %431, %432 : vector<8x128xf32>
    %434 = arith.negf %433 : vector<8x128xf32>
    %435 = math.exp %434 : vector<8x128xf32>
    %cst_170 = arith.constant 1.000000e+00 : f32
    %436 = vector.broadcast %cst_170 : f32 to vector<8x128xf32>
    %437 = arith.addf %436, %435 : vector<8x128xf32>
    %438 = arith.divf %436, %437 : vector<8x128xf32>
    %439 = vector.extract_strided_slice %423 {offsets = [0, 128], sizes = [8, 128], strides = [1, 1]} : vector<8x384xf32> to vector<8x128xf32>
    %440 = vector.extract_strided_slice %430 {offsets = [0, 128], sizes = [8, 128], strides = [1, 1]} : vector<8x384xf32> to vector<8x128xf32>
    %441 = arith.addf %439, %440 : vector<8x128xf32>
    %442 = arith.negf %441 : vector<8x128xf32>
    %443 = math.exp %442 : vector<8x128xf32>
    %cst_171 = arith.constant 1.000000e+00 : f32
    %444 = vector.broadcast %cst_171 : f32 to vector<8x128xf32>
    %445 = arith.addf %444, %443 : vector<8x128xf32>
    %446 = arith.divf %444, %445 : vector<8x128xf32>
    %447 = vector.extract_strided_slice %423 {offsets = [0, 256], sizes = [8, 128], strides = [1, 1]} : vector<8x384xf32> to vector<8x128xf32>
    %448 = vector.extract_strided_slice %430 {offsets = [0, 256], sizes = [8, 128], strides = [1, 1]} : vector<8x384xf32> to vector<8x128xf32>
    %449 = arith.mulf %438, %448 : vector<8x128xf32>
    %450 = arith.addf %447, %449 : vector<8x128xf32>
    %451 = math.tanh %450 : vector<8x128xf32>
    %cst_172 = arith.constant 1.000000e+00 : f32
    %452 = vector.broadcast %cst_172 : f32 to vector<8x128xf32>
    %453 = arith.subf %452, %446 : vector<8x128xf32>
    %454 = arith.mulf %453, %451 : vector<8x128xf32>
    %455 = arith.mulf %446, %382 : vector<8x128xf32>
    %456 = arith.addf %454, %455 : vector<8x128xf32>
    %457 = vector.extract_strided_slice %8 {offsets = [48, 0], sizes = [8, 384], strides = [1, 1]} : vector<64x384xf32> to vector<8x384xf32>
    %c0_173 = arith.constant 0 : index
    %c0_174 = arith.constant 0 : index
    %c0_175 = arith.constant 0 : index
    %458 = vector.load %arg4[%c0_173, %c0_174, %c0_175] : memref<2x128x384xf32, #tpu.memory_space<vmem>>, vector<1x128x384xf32>
    %459 = vector.shape_cast %458 : vector<1x128x384xf32> to vector<128x384xf32>
    %cst_176 = arith.constant dense<0.000000e+00> : vector<8x384xf32>
    %460 = tpu.matmul %416, %459, %cst_176 {dimension_numbers = #tpu.dot_dimension_numbers<[1], [0], [0], [1], [0, 0, 1, 1], [], []>} : vector<8x128xf32>, vector<128x384xf32>, vector<8x384xf32> -> vector<8x384xf32>
    %c0_177 = arith.constant 0 : index
    %c0_178 = arith.constant 0 : index
    %c0_179 = arith.constant 0 : index
    %461 = vector.load %arg5[%c0_177, %c0_178, %c0_179] : memref<2x1x384xf32, #tpu.memory_space<vmem>>, vector<1x1x384xf32>
    %462 = vector.shape_cast %461 : vector<1x1x384xf32> to vector<1x384xf32>
    %463 = vector.broadcast %462 : vector<1x384xf32> to vector<8x384xf32>
    %464 = arith.addf %460, %463 : vector<8x384xf32>
    %465 = vector.extract_strided_slice %457 {offsets = [0, 0], sizes = [8, 128], strides = [1, 1]} : vector<8x384xf32> to vector<8x128xf32>
    %466 = vector.extract_strided_slice %464 {offsets = [0, 0], sizes = [8, 128], strides = [1, 1]} : vector<8x384xf32> to vector<8x128xf32>
    %467 = arith.addf %465, %466 : vector<8x128xf32>
    %468 = arith.negf %467 : vector<8x128xf32>
    %469 = math.exp %468 : vector<8x128xf32>
    %cst_180 = arith.constant 1.000000e+00 : f32
    %470 = vector.broadcast %cst_180 : f32 to vector<8x128xf32>
    %471 = arith.addf %470, %469 : vector<8x128xf32>
    %472 = arith.divf %470, %471 : vector<8x128xf32>
    %473 = vector.extract_strided_slice %457 {offsets = [0, 128], sizes = [8, 128], strides = [1, 1]} : vector<8x384xf32> to vector<8x128xf32>
    %474 = vector.extract_strided_slice %464 {offsets = [0, 128], sizes = [8, 128], strides = [1, 1]} : vector<8x384xf32> to vector<8x128xf32>
    %475 = arith.addf %473, %474 : vector<8x128xf32>
    %476 = arith.negf %475 : vector<8x128xf32>
    %477 = math.exp %476 : vector<8x128xf32>
    %cst_181 = arith.constant 1.000000e+00 : f32
    %478 = vector.broadcast %cst_181 : f32 to vector<8x128xf32>
    %479 = arith.addf %478, %477 : vector<8x128xf32>
    %480 = arith.divf %478, %479 : vector<8x128xf32>
    %481 = vector.extract_strided_slice %457 {offsets = [0, 256], sizes = [8, 128], strides = [1, 1]} : vector<8x384xf32> to vector<8x128xf32>
    %482 = vector.extract_strided_slice %464 {offsets = [0, 256], sizes = [8, 128], strides = [1, 1]} : vector<8x384xf32> to vector<8x128xf32>
    %483 = arith.mulf %472, %482 : vector<8x128xf32>
    %484 = arith.addf %481, %483 : vector<8x128xf32>
    %485 = math.tanh %484 : vector<8x128xf32>
    %cst_182 = arith.constant 1.000000e+00 : f32
    %486 = vector.broadcast %cst_182 : f32 to vector<8x128xf32>
    %487 = arith.subf %486, %480 : vector<8x128xf32>
    %488 = arith.mulf %487, %485 : vector<8x128xf32>
    %489 = arith.mulf %480, %416 : vector<8x128xf32>
    %490 = arith.addf %488, %489 : vector<8x128xf32>
    %c0_183 = arith.constant 0 : index
    %c0_184 = arith.constant 0 : index
    %c0_185 = arith.constant 0 : index
    %491 = vector.load %arg6[%c0_183, %c0_184, %c0_185] : memref<1x128x384xf32, #tpu.memory_space<vmem>>, vector<1x128x384xf32>
    %492 = vector.shape_cast %491 : vector<1x128x384xf32> to vector<128x384xf32>
    %cst_186 = arith.constant dense<0.000000e+00> : vector<8x384xf32>
    %493 = tpu.matmul %490, %492, %cst_186 {dimension_numbers = #tpu.dot_dimension_numbers<[1], [0], [0], [1], [0, 0, 1, 1], [], []>} : vector<8x128xf32>, vector<128x384xf32>, vector<8x384xf32> -> vector<8x384xf32>
    %c0_187 = arith.constant 0 : index
    %c0_188 = arith.constant 0 : index
    %c0_189 = arith.constant 0 : index
    %494 = vector.load %arg7[%c0_187, %c0_188, %c0_189] : memref<1x1x384xf32, #tpu.memory_space<vmem>>, vector<1x1x384xf32>
    %495 = vector.shape_cast %494 : vector<1x1x384xf32> to vector<1x384xf32>
    %496 = vector.broadcast %495 : vector<1x384xf32> to vector<8x384xf32>
    %497 = arith.addf %493, %496 : vector<8x384xf32>
    %c1_190 = arith.constant 1 : index
    %c0_191 = arith.constant 0 : index
    %c0_192 = arith.constant 0 : index
    %498 = vector.load %arg4[%c1_190, %c0_191, %c0_192] : memref<2x128x384xf32, #tpu.memory_space<vmem>>, vector<1x128x384xf32>
    %499 = vector.shape_cast %498 : vector<1x128x384xf32> to vector<128x384xf32>
    %cst_193 = arith.constant dense<0.000000e+00> : vector<8x384xf32>
    %500 = tpu.matmul %456, %499, %cst_193 {dimension_numbers = #tpu.dot_dimension_numbers<[1], [0], [0], [1], [0, 0, 1, 1], [], []>} : vector<8x128xf32>, vector<128x384xf32>, vector<8x384xf32> -> vector<8x384xf32>
    %c1_194 = arith.constant 1 : index
    %c0_195 = arith.constant 0 : index
    %c0_196 = arith.constant 0 : index
    %501 = vector.load %arg5[%c1_194, %c0_195, %c0_196] : memref<2x1x384xf32, #tpu.memory_space<vmem>>, vector<1x1x384xf32>
    %502 = vector.shape_cast %501 : vector<1x1x384xf32> to vector<1x384xf32>
    %503 = vector.broadcast %502 : vector<1x384xf32> to vector<8x384xf32>
    %504 = arith.addf %500, %503 : vector<8x384xf32>
    %505 = vector.extract_strided_slice %497 {offsets = [0, 0], sizes = [8, 128], strides = [1, 1]} : vector<8x384xf32> to vector<8x128xf32>
    %506 = vector.extract_strided_slice %504 {offsets = [0, 0], sizes = [8, 128], strides = [1, 1]} : vector<8x384xf32> to vector<8x128xf32>
    %507 = arith.addf %505, %506 : vector<8x128xf32>
    %508 = arith.negf %507 : vector<8x128xf32>
    %509 = math.exp %508 : vector<8x128xf32>
    %cst_197 = arith.constant 1.000000e+00 : f32
    %510 = vector.broadcast %cst_197 : f32 to vector<8x128xf32>
    %511 = arith.addf %510, %509 : vector<8x128xf32>
    %512 = arith.divf %510, %511 : vector<8x128xf32>
    %513 = vector.extract_strided_slice %497 {offsets = [0, 128], sizes = [8, 128], strides = [1, 1]} : vector<8x384xf32> to vector<8x128xf32>
    %514 = vector.extract_strided_slice %504 {offsets = [0, 128], sizes = [8, 128], strides = [1, 1]} : vector<8x384xf32> to vector<8x128xf32>
    %515 = arith.addf %513, %514 : vector<8x128xf32>
    %516 = arith.negf %515 : vector<8x128xf32>
    %517 = math.exp %516 : vector<8x128xf32>
    %cst_198 = arith.constant 1.000000e+00 : f32
    %518 = vector.broadcast %cst_198 : f32 to vector<8x128xf32>
    %519 = arith.addf %518, %517 : vector<8x128xf32>
    %520 = arith.divf %518, %519 : vector<8x128xf32>
    %521 = vector.extract_strided_slice %497 {offsets = [0, 256], sizes = [8, 128], strides = [1, 1]} : vector<8x384xf32> to vector<8x128xf32>
    %522 = vector.extract_strided_slice %504 {offsets = [0, 256], sizes = [8, 128], strides = [1, 1]} : vector<8x384xf32> to vector<8x128xf32>
    %523 = arith.mulf %512, %522 : vector<8x128xf32>
    %524 = arith.addf %521, %523 : vector<8x128xf32>
    %525 = math.tanh %524 : vector<8x128xf32>
    %cst_199 = arith.constant 1.000000e+00 : f32
    %526 = vector.broadcast %cst_199 : f32 to vector<8x128xf32>
    %527 = arith.subf %526, %520 : vector<8x128xf32>
    %528 = arith.mulf %527, %525 : vector<8x128xf32>
    %529 = arith.mulf %520, %456 : vector<8x128xf32>
    %530 = arith.addf %528, %529 : vector<8x128xf32>
    %531 = vector.extract_strided_slice %8 {offsets = [56, 0], sizes = [8, 384], strides = [1, 1]} : vector<64x384xf32> to vector<8x384xf32>
    %c0_200 = arith.constant 0 : index
    %c0_201 = arith.constant 0 : index
    %c0_202 = arith.constant 0 : index
    %532 = vector.load %arg4[%c0_200, %c0_201, %c0_202] : memref<2x128x384xf32, #tpu.memory_space<vmem>>, vector<1x128x384xf32>
    %533 = vector.shape_cast %532 : vector<1x128x384xf32> to vector<128x384xf32>
    %cst_203 = arith.constant dense<0.000000e+00> : vector<8x384xf32>
    %534 = tpu.matmul %490, %533, %cst_203 {dimension_numbers = #tpu.dot_dimension_numbers<[1], [0], [0], [1], [0, 0, 1, 1], [], []>} : vector<8x128xf32>, vector<128x384xf32>, vector<8x384xf32> -> vector<8x384xf32>
    %c0_204 = arith.constant 0 : index
    %c0_205 = arith.constant 0 : index
    %c0_206 = arith.constant 0 : index
    %535 = vector.load %arg5[%c0_204, %c0_205, %c0_206] : memref<2x1x384xf32, #tpu.memory_space<vmem>>, vector<1x1x384xf32>
    %536 = vector.shape_cast %535 : vector<1x1x384xf32> to vector<1x384xf32>
    %537 = vector.broadcast %536 : vector<1x384xf32> to vector<8x384xf32>
    %538 = arith.addf %534, %537 : vector<8x384xf32>
    %539 = vector.extract_strided_slice %531 {offsets = [0, 0], sizes = [8, 128], strides = [1, 1]} : vector<8x384xf32> to vector<8x128xf32>
    %540 = vector.extract_strided_slice %538 {offsets = [0, 0], sizes = [8, 128], strides = [1, 1]} : vector<8x384xf32> to vector<8x128xf32>
    %541 = arith.addf %539, %540 : vector<8x128xf32>
    %542 = arith.negf %541 : vector<8x128xf32>
    %543 = math.exp %542 : vector<8x128xf32>
    %cst_207 = arith.constant 1.000000e+00 : f32
    %544 = vector.broadcast %cst_207 : f32 to vector<8x128xf32>
    %545 = arith.addf %544, %543 : vector<8x128xf32>
    %546 = arith.divf %544, %545 : vector<8x128xf32>
    %547 = vector.extract_strided_slice %531 {offsets = [0, 128], sizes = [8, 128], strides = [1, 1]} : vector<8x384xf32> to vector<8x128xf32>
    %548 = vector.extract_strided_slice %538 {offsets = [0, 128], sizes = [8, 128], strides = [1, 1]} : vector<8x384xf32> to vector<8x128xf32>
    %549 = arith.addf %547, %548 : vector<8x128xf32>
    %550 = arith.negf %549 : vector<8x128xf32>
    %551 = math.exp %550 : vector<8x128xf32>
    %cst_208 = arith.constant 1.000000e+00 : f32
    %552 = vector.broadcast %cst_208 : f32 to vector<8x128xf32>
    %553 = arith.addf %552, %551 : vector<8x128xf32>
    %554 = arith.divf %552, %553 : vector<8x128xf32>
    %555 = vector.extract_strided_slice %531 {offsets = [0, 256], sizes = [8, 128], strides = [1, 1]} : vector<8x384xf32> to vector<8x128xf32>
    %556 = vector.extract_strided_slice %538 {offsets = [0, 256], sizes = [8, 128], strides = [1, 1]} : vector<8x384xf32> to vector<8x128xf32>
    %557 = arith.mulf %546, %556 : vector<8x128xf32>
    %558 = arith.addf %555, %557 : vector<8x128xf32>
    %559 = math.tanh %558 : vector<8x128xf32>
    %cst_209 = arith.constant 1.000000e+00 : f32
    %560 = vector.broadcast %cst_209 : f32 to vector<8x128xf32>
    %561 = arith.subf %560, %554 : vector<8x128xf32>
    %562 = arith.mulf %561, %559 : vector<8x128xf32>
    %563 = arith.mulf %554, %490 : vector<8x128xf32>
    %564 = arith.addf %562, %563 : vector<8x128xf32>
    %c0_210 = arith.constant 0 : index
    %c0_211 = arith.constant 0 : index
    %c0_212 = arith.constant 0 : index
    %565 = vector.load %arg6[%c0_210, %c0_211, %c0_212] : memref<1x128x384xf32, #tpu.memory_space<vmem>>, vector<1x128x384xf32>
    %566 = vector.shape_cast %565 : vector<1x128x384xf32> to vector<128x384xf32>
    %cst_213 = arith.constant dense<0.000000e+00> : vector<8x384xf32>
    %567 = tpu.matmul %564, %566, %cst_213 {dimension_numbers = #tpu.dot_dimension_numbers<[1], [0], [0], [1], [0, 0, 1, 1], [], []>} : vector<8x128xf32>, vector<128x384xf32>, vector<8x384xf32> -> vector<8x384xf32>
    %c0_214 = arith.constant 0 : index
    %c0_215 = arith.constant 0 : index
    %c0_216 = arith.constant 0 : index
    %568 = vector.load %arg7[%c0_214, %c0_215, %c0_216] : memref<1x1x384xf32, #tpu.memory_space<vmem>>, vector<1x1x384xf32>
    %569 = vector.shape_cast %568 : vector<1x1x384xf32> to vector<1x384xf32>
    %570 = vector.broadcast %569 : vector<1x384xf32> to vector<8x384xf32>
    %571 = arith.addf %567, %570 : vector<8x384xf32>
    %c1_217 = arith.constant 1 : index
    %c0_218 = arith.constant 0 : index
    %c0_219 = arith.constant 0 : index
    %572 = vector.load %arg4[%c1_217, %c0_218, %c0_219] : memref<2x128x384xf32, #tpu.memory_space<vmem>>, vector<1x128x384xf32>
    %573 = vector.shape_cast %572 : vector<1x128x384xf32> to vector<128x384xf32>
    %cst_220 = arith.constant dense<0.000000e+00> : vector<8x384xf32>
    %574 = tpu.matmul %530, %573, %cst_220 {dimension_numbers = #tpu.dot_dimension_numbers<[1], [0], [0], [1], [0, 0, 1, 1], [], []>} : vector<8x128xf32>, vector<128x384xf32>, vector<8x384xf32> -> vector<8x384xf32>
    %c1_221 = arith.constant 1 : index
    %c0_222 = arith.constant 0 : index
    %c0_223 = arith.constant 0 : index
    %575 = vector.load %arg5[%c1_221, %c0_222, %c0_223] : memref<2x1x384xf32, #tpu.memory_space<vmem>>, vector<1x1x384xf32>
    %576 = vector.shape_cast %575 : vector<1x1x384xf32> to vector<1x384xf32>
    %577 = vector.broadcast %576 : vector<1x384xf32> to vector<8x384xf32>
    %578 = arith.addf %574, %577 : vector<8x384xf32>
    %579 = vector.extract_strided_slice %571 {offsets = [0, 0], sizes = [8, 128], strides = [1, 1]} : vector<8x384xf32> to vector<8x128xf32>
    %580 = vector.extract_strided_slice %578 {offsets = [0, 0], sizes = [8, 128], strides = [1, 1]} : vector<8x384xf32> to vector<8x128xf32>
    %581 = arith.addf %579, %580 : vector<8x128xf32>
    %582 = arith.negf %581 : vector<8x128xf32>
    %583 = math.exp %582 : vector<8x128xf32>
    %cst_224 = arith.constant 1.000000e+00 : f32
    %584 = vector.broadcast %cst_224 : f32 to vector<8x128xf32>
    %585 = arith.addf %584, %583 : vector<8x128xf32>
    %586 = arith.divf %584, %585 : vector<8x128xf32>
    %587 = vector.extract_strided_slice %571 {offsets = [0, 128], sizes = [8, 128], strides = [1, 1]} : vector<8x384xf32> to vector<8x128xf32>
    %588 = vector.extract_strided_slice %578 {offsets = [0, 128], sizes = [8, 128], strides = [1, 1]} : vector<8x384xf32> to vector<8x128xf32>
    %589 = arith.addf %587, %588 : vector<8x128xf32>
    %590 = arith.negf %589 : vector<8x128xf32>
    %591 = math.exp %590 : vector<8x128xf32>
    %cst_225 = arith.constant 1.000000e+00 : f32
    %592 = vector.broadcast %cst_225 : f32 to vector<8x128xf32>
    %593 = arith.addf %592, %591 : vector<8x128xf32>
    %594 = arith.divf %592, %593 : vector<8x128xf32>
    %595 = vector.extract_strided_slice %571 {offsets = [0, 256], sizes = [8, 128], strides = [1, 1]} : vector<8x384xf32> to vector<8x128xf32>
    %596 = vector.extract_strided_slice %578 {offsets = [0, 256], sizes = [8, 128], strides = [1, 1]} : vector<8x384xf32> to vector<8x128xf32>
    %597 = arith.mulf %586, %596 : vector<8x128xf32>
    %598 = arith.addf %595, %597 : vector<8x128xf32>
    %599 = math.tanh %598 : vector<8x128xf32>
    %cst_226 = arith.constant 1.000000e+00 : f32
    %600 = vector.broadcast %cst_226 : f32 to vector<8x128xf32>
    %601 = arith.subf %600, %594 : vector<8x128xf32>
    %602 = arith.mulf %601, %599 : vector<8x128xf32>
    %603 = arith.mulf %594, %530 : vector<8x128xf32>
    %604 = arith.addf %602, %603 : vector<8x128xf32>
    %c0_227 = arith.constant 0 : index
    %c0_228 = arith.constant 0 : index
    %c0_229 = arith.constant 0 : index
    %605 = vector.load %arg12[%c0_227, %c0_228, %c0_229] : memref<2x8x128xf32, #tpu.memory_space<vmem>>, vector<1x8x128xf32>
    %606 = vector.shape_cast %605 : vector<1x8x128xf32> to vector<8x128xf32>
    %607 = vector.shape_cast %564 : vector<8x128xf32> to vector<1x8x128xf32>
    tpu.vector_store %arg12[%c0_227, %c0_228, %c0_229], %607 {strides = array<i32>} : memref<2x8x128xf32, #tpu.memory_space<vmem>>, vector<1x8x128xf32>,
    %c1_230 = arith.constant 1 : index
    %c0_231 = arith.constant 0 : index
    %c0_232 = arith.constant 0 : index
    %608 = vector.load %arg12[%c1_230, %c0_231, %c0_232] : memref<2x8x128xf32, #tpu.memory_space<vmem>>, vector<1x8x128xf32>
    %609 = vector.shape_cast %608 : vector<1x8x128xf32> to vector<8x128xf32>
    %610 = vector.shape_cast %604 : vector<8x128xf32> to vector<1x8x128xf32>
    tpu.vector_store %arg12[%c1_230, %c0_231, %c0_232], %610 {strides = array<i32>} : memref<2x8x128xf32, #tpu.memory_space<vmem>>, vector<1x8x128xf32>,
    %c0_i32_233 = arith.constant 0 : i32
    %611 = arith.cmpi eq, %arg0, %c0_i32_233 : i32
    %612 = arith.extui %611 : i1 to i32
    %c0_i32_234 = arith.constant 0 : i32
    %613 = arith.cmpi ne, %612, %c0_i32_234 : i32
    scf.if %613 {
      %614 = arith.addf %564, %604 : vector<8x128xf32>
      %cst_235 = arith.constant 5.000000e-01 : f32
      %615 = vector.broadcast %cst_235 : f32 to vector<8x128xf32>
      %616 = arith.mulf %614, %615 : vector<8x128xf32>
      %c0_236 = arith.constant 0 : index
      %c0_237 = arith.constant 0 : index
      %617 = vector.load %arg10[%c0_236, %c0_237] : memref<8x128xf32, #tpu.memory_space<vmem>>, vector<8x128xf32>
      tpu.vector_store %arg10[%c0_236, %c0_237], %616 {strides = array<i32>} : memref<8x128xf32, #tpu.memory_space<vmem>>, vector<8x128xf32>,
      %c0_238 = arith.constant 0 : index
      %c0_239 = arith.constant 0 : index
      %618 = vector.load %arg8[%c0_238, %c0_239] : memref<1x128xf32, #tpu.memory_space<vmem>>, vector<1x128xf32>
      %619 = vector.broadcast %618 : vector<1x128xf32> to vector<8x128xf32>
      %620 = arith.mulf %616, %619 : vector<8x128xf32>
      %c0_240 = arith.constant 0 : index
      %c0_241 = arith.constant 0 : index
      %621 = vector.load %arg9[%c0_240, %c0_241] : memref<1x128xf32, #tpu.memory_space<vmem>>, vector<1x128xf32>
      %622 = vector.broadcast %621 : vector<1x128xf32> to vector<8x128xf32>
      %623 = arith.addf %620, %622 : vector<8x128xf32>
      %624 = math.tanh %623 : vector<8x128xf32>
      %c0_242 = arith.constant 0 : index
      %c0_243 = arith.constant 0 : index
      %625 = vector.load %arg11[%c0_242, %c0_243] : memref<8x128xf32, #tpu.memory_space<vmem>>, vector<8x128xf32>
      tpu.vector_store %arg11[%c0_242, %c0_243], %624 {strides = array<i32>} : memref<8x128xf32, #tpu.memory_space<vmem>>, vector<8x128xf32>,
    } else {
    }
    return
  }
  func.func @transform_0(%arg0: i32) -> (i32, i32) {
    %c0_i32 = arith.constant 0 : i32
    %c0_i32_0 = arith.constant 0 : i32
    return %arg0, %c0_i32 : i32, i32
  }
  func.func @transform_1(%arg0: i32) -> (i32, i32) {
    %c0_i32 = arith.constant 0 : i32
    %c0_i32_0 = arith.constant 0 : i32
    %c0_i32_1 = arith.constant 0 : i32
    return %c0_i32, %c0_i32_0 : i32, i32
  }
  func.func @transform_2(%arg0: i32) -> (i32, i32) {
    %c0_i32 = arith.constant 0 : i32
    %c0_i32_0 = arith.constant 0 : i32
    %c0_i32_1 = arith.constant 0 : i32
    return %c0_i32, %c0_i32_0 : i32, i32
  }
  func.func @transform_3(%arg0: i32) -> (i32, i32, i32) {
    %c0_i32 = arith.constant 0 : i32
    %c0_i32_0 = arith.constant 0 : i32
    %c0_i32_1 = arith.constant 0 : i32
    %c0_i32_2 = arith.constant 0 : i32
    return %c0_i32, %c0_i32_0, %c0_i32_1 : i32, i32, i32
  }
  func.func @transform_4(%arg0: i32) -> (i32, i32, i32) {
    %c0_i32 = arith.constant 0 : i32
    %c0_i32_0 = arith.constant 0 : i32
    %c0_i32_1 = arith.constant 0 : i32
    %c0_i32_2 = arith.constant 0 : i32
    return %c0_i32, %c0_i32_0, %c0_i32_1 : i32, i32, i32
  }
  func.func @transform_5(%arg0: i32) -> (i32, i32, i32) {
    %c0_i32 = arith.constant 0 : i32
    %c0_i32_0 = arith.constant 0 : i32
    %c0_i32_1 = arith.constant 0 : i32
    %c0_i32_2 = arith.constant 0 : i32
    return %c0_i32, %c0_i32_0, %c0_i32_1 : i32, i32, i32
  }
  func.func @transform_6(%arg0: i32) -> (i32, i32, i32) {
    %c0_i32 = arith.constant 0 : i32
    %c0_i32_0 = arith.constant 0 : i32
    %c0_i32_1 = arith.constant 0 : i32
    %c0_i32_2 = arith.constant 0 : i32
    return %c0_i32, %c0_i32_0, %c0_i32_1 : i32, i32, i32
  }
  func.func @transform_7(%arg0: i32) -> (i32, i32) {
    %c0_i32 = arith.constant 0 : i32
    %c0_i32_0 = arith.constant 0 : i32
    %c0_i32_1 = arith.constant 0 : i32
    return %c0_i32, %c0_i32_0 : i32, i32
  }
  func.func @transform_8(%arg0: i32) -> (i32, i32) {
    %c0_i32 = arith.constant 0 : i32
    %c0_i32_0 = arith.constant 0 : i32
    %c0_i32_1 = arith.constant 0 : i32
    return %c0_i32, %c0_i32_0 : i32, i32
  }
  func.func @transform_9(%arg0: i32) -> (i32, i32) {
    %c0_i32 = arith.constant 0 : i32
    %c0_i32_0 = arith.constant 0 : i32
    %c0_i32_1 = arith.constant 0 : i32
    return %c0_i32, %c0_i32_0 : i32, i32
  }
  func.func @transform_10(%arg0: i32) -> (i32, i32) {
    %c0_i32 = arith.constant 0 : i32
    %c0_i32_0 = arith.constant 0 : i32
    %c0_i32_1 = arith.constant 0 : i32
    return %c0_i32, %c0_i32_0 : i32, i32
  }
}

</mosaic_0001>

<bundles_post_ra>
// kernel: tpu_custom_call.1
= control target key start
LH: loop header
LB: loop body
LE: loop exit
PB: predicated region body
PF: predicated region fallthrough
CT: control target
= control target key end

     0   :  { %16 = vsyncpa [#allocation4], 0  ;;  %s8742_s0 = inlined_call_operand.vmem [shape: f32[64,16], index: 0, kind: input, shape index: {}]   ;;  %s8743_s1 = inlined_call_operand.vmem [shape: f32[16,384], index: 1, kind: input, shape index: {}]   ;;  %s8744_s2 = inlined_call_operand.vmem [shape: f32[1,384], index: 2, kind: input, shape index: {}]   ;;  %s8745_s3 = inlined_call_operand.hbm [shape: f32[2,128,384], index: 3, kind: input, shape index: {}]   ;;  %s8746_s4 = inlined_call_operand.vmem [shape: f32[2,1,384], index: 4, kind: input, shape index: {}]   ;;  %s8747_s5 = inlined_call_operand.hbm [shape: f32[1,128,384], index: 5, kind: input, shape index: {}]   ;;  %s8748_s6 = inlined_call_operand.vmem [shape: f32[1,1,384], index: 6, kind: input, shape index: {}]   ;;  %s8749_s7 = inlined_call_operand.vmem [shape: f32[1,128], index: 7, kind: input, shape index: {}]   ;;  %s8750_s8 = inlined_call_operand.vmem [shape: f32[1,128], index: 8, kind: input, shape index: {}]   ;;  %s8751_s9 = inlined_call_operand.hbm [shape: f32[8,128], index: 9, kind: output, shape index: {0}]   ;;  %s8752_s10 = inlined_call_operand.hbm [shape: f32[8,128], index: 10, kind: output, shape index: {1}]  }
   0x1   :  { %17 = vsyncpa [#allocation7], 0 }
   0x2   :  { %18 = vsyncpa [#allocation5], 0 }
   0x3   :  { %19 = vsyncpa [#allocation10], 0  ;;  %s7360_s13 = smov [#allocation3]   ;;  %s7264_s17 = scalar_lea.hbm %s8745_s3, 12288 }
   0x4   :  { %s31_s14 = sshll.u32 %s7360_s13, 4  ;;  %p7265_p0 = scmp.ne.s32.totalorder %s8745_s3, %s7264_s17  ;;  %s32_s14 = int_to_ptr.vmem [resolvable:$true] %s31_s14 }
   0x5   :  { %p7268_p1 = scmp.lt.u32.totalorder %s7264_s17, %s8745_s3 }
   0x7   :  { %p7270_p2 = pnand %p7268_p1, %p7265_p0 }
   0x9   :  { %7273 = shalt.err (!%p7270_p2)
}
   0xa   :  { %s7274_s22 = scalar_lea.vmem %s32_s14, 12288  ;;  %p7279_p4 = scmp.lt.s32.totalorder %s32_s14, %s32_s14 }
   0xb   :  { %p7275_p3 = scmp.ne.s32.totalorder %s32_s14, %s7274_s22  ;;  %p7280_p5 = scmp.lt.s32.totalorder %s7274_s22, %s7274_s22 }
   0xd   :  { %p7281_p6 = por %p7280_p5, %p7279_p4 }
   0xf   :  { %p7282_p7 = pnand %p7281_p6, %p7275_p3 }
  0x11   :  { %7285 = shalt.err (!%p7282_p7)
}
  0x12   :  { %s7361_s23 = smov 384   ;;  %s7362_s24 = smov 24  }
  0x13   :  { %37 = dma.hbm_to_vmem [thread:$0]  %s8745_s3, 12288, %s32_s14, [#allocation4], %s7361_s23, %s7361_s23, %s7362_s24  }
  0x14   :  { %s7363_s27 = smov [#allocation6]   ;;  %s7286_s11 = scalar_lea.hbm %s8747_s5, 6144 }
  0x15   :  { %s45_s28 = sshll.u32 %s7363_s27, 4  ;;  %p7287_p8 = scmp.ne.s32.totalorder %s8747_s5, %s7286_s11  ;;  %s46_s28 = int_to_ptr.vmem [resolvable:$true] %s45_s28 }
  0x16   :  { %p7290_p9 = scmp.lt.u32.totalorder %s7286_s11, %s8747_s5 }
  0x18   :  { %p7292_p10 = pnand %p7290_p9, %p7287_p8 }
  0x1a   :  { %7295 = shalt.err (!%p7292_p10)
}
  0x1b   :  { %s7296_s17 = scalar_lea.vmem %s46_s28, 6144  ;;  %p7301_p12 = scmp.lt.s32.totalorder %s46_s28, %s46_s28 }
  0x1c   :  { %p7297_p11 = scmp.ne.s32.totalorder %s46_s28, %s7296_s17  ;;  %p7302_p13 = scmp.lt.s32.totalorder %s7296_s17, %s7296_s17 }
  0x1e   :  { %p7303_p0 = por %p7302_p13, %p7301_p12 }
  0x20   :  { %p7304_p1 = pnand %p7303_p0, %p7297_p11 }
  0x22   :  { %7307 = shalt.err (!%p7304_p1)
}
  0x23   :  { %51 = dma.hbm_to_vmem [thread:$0]  %s8747_s5, 6144, %s46_s28, [#allocation7], %s7361_s23, %s7361_s23, %s7362_s24  }
  0x24   :  { %7352 = dma.done.wait [#allocation4], 12288  }
  0x25   :  { %7353 = vsyncadd [#allocation4], 4294955008 }
  0x26   :  { %7354 = dma.done.wait [#allocation7], 6144  }
  0x27   :  { %7355 = vsyncadd [#allocation7], 4294961152  ;;  %v8753_v0 = vmov 0.0   ;;  %v79_v1 = vld [vmem:[%s8743_s1 + $0x8] sm:$0xff]  ;;  %v82_v2 = vld [vmem:[%s8743_s1 + $0x20] sm:$0xff]  ;;  %vm101_vm0 = vcmask 130048  }
  0x28   :  { %190 = vmatprep.mubr.f32.mxu0 %v8753_v0  ;;  %v78_v3 = vld [vmem:[%s8743_s1] sm:$0xff]  ;;  %v5645_v4 = vpack.c.bf16 %v82_v2, %v79_v1  ;;  %v81_v5 = vld [vmem:[%s8743_s1 + $0x18] sm:$0xff]  ;;  %v351_v9 = vld [vmem:[#allocation3 + $0x20] sm:$0xff]  ;;  %v8755_v48 = vmov 0.0|0.0   ;;  %vm7366_vm1 = vmmov 0  }
  0x29   :  { %v70_v6 = vld [vmem:[%s8742_s0] sm:$0xff]  ;;  %v348_v7 = vld [vmem:[#allocation3 + $0x8] sm:$0xff]  ;;  %v5647_v8 = vpack.c.bf16 %v81_v5, %v78_v3  ;;  %v347_v10 = vld [vmem:[#allocation3] sm:$0xff] }
  0x2a   :  { %v350_v11 = vld [vmem:[#allocation3 + $0x18] sm:$0xff]  ;;  %4793 = vmatprep.mubr.msk.f32.mxu1 %vm101_vm0, %v70_v6  ;;  %5646 = vmatprep.subr.bf16.mxu0 %v5645_v4  ;;  %v7465_v12 = vpack.c.bf16 %v351_v9, %v348_v7  ;;  %v357_v14 = vld [vmem:[#allocation3 + $0x50] sm:$0xff]  ;;  %v356_v18 = vld [vmem:[#allocation3 + $0x48] sm:$0xff] }
  0x2b   :  { %v354_v13 = vld [vmem:[#allocation3 + $0x38] sm:$0xff]  ;;  %5648 = vmatpush1.bf16.msra.mxu0 %v5647_v8  ;;  %v7467_v15 = vpack.c.bf16 %v350_v11, %v347_v10  ;;  %v353_v17 = vld [vmem:[#allocation3 + $0x30] sm:$0xff]  ;;  %v360_v19 = vld [vmem:[#allocation3 + $0x68] sm:$0xff] }
  0x2c   :  { %5654 = vmatprep.subr.bf16.mxu0 %v7465_v12  ;;  %v7470_v16 = vpack.c.bf16 %v357_v14, %v354_v13  ;;  %v363_v20 = vld [vmem:[#allocation3 + $0x80] sm:$0xff]  ;;  %v71_v21 = vld [vmem:[%s8742_s0 + $0x8] sm:$0xff]  ;;  %v7478_v22 = vpack.c.bf16 %v356_v18, %v353_v17  ;;  %v369_v27 = vld [vmem:[#allocation3 + $0xb0] sm:$0xff] }
  0x2d   :  { %v7481_v23 = vpack.c.bf16 %v363_v20, %v360_v19  ;;  %v359_v24 = vld [vmem:[#allocation3 + $0x60] sm:$0xff]  ;;  %v362_v25 = vld [vmem:[#allocation3 + $0x78] sm:$0xff]  ;;  %v365_v34 = vld [vmem:[#allocation3 + $0x90] sm:$0xff] }
  0x2e   :  { %4320 = vmatmul.mubr.msk.f32.vlgmr.msra.gmra.mrb[0].mxu0 %vm101_vm0, %v70_v6  ;;  %v366_v26 = vld [vmem:[#allocation3 + $0x98] sm:$0xff]  ;;  %v80_v28 = vld [vmem:[%s8743_s1 + $0x10] sm:$0xff]  ;;  %v7495_v31 = vpack.c.bf16 %v362_v25, %v359_v24  ;;  %v368_v35 = vld [vmem:[#allocation3 + $0xa8] sm:$0xff] }
  0x2f   :  { %5656 = vmatpush1.bf16.msra.mxu0 %v7467_v15  ;;  %196 = vmatprep.mubr.f32.mxu0 %v8753_v0  ;;  %v83_v29 = vld [vmem:[%s8743_s1 + $0x28] sm:$0xff]  ;;  %v72_v30 = vld [vmem:[%s8742_s0 + $0x10] sm:$0xff]  ;;  %v7498_v33 = vpack.c.bf16 %v369_v27, %v366_v26  ;;  %v349_v36 = vld [vmem:[#allocation3 + $0x10] sm:$0xff]  ;;  %v7508_v42 = vpack.c.bf16 %v368_v35, %v365_v34 }
  0x30   :  { %5658 = vmatprep.subr.bf16.mxu0 %v7470_v16  ;;  %v5649_v32 = vpack.c.bf16 %v83_v29, %v80_v28  ;;  %v372_v37 = vld [vmem:[#allocation3 + $0xc8] sm:$0xff]  ;;  %v375_v38 = vld [vmem:[#allocation3 + $0xe0] sm:$0xff]  ;;  %v358_v44 = vld [vmem:[#allocation3 + $0x58] sm:$0xff] }
  0x31   :  { %v352_v39 = vld [vmem:[#allocation3 + $0x28] sm:$0xff]  ;;  %v355_v43 = vld [vmem:[#allocation3 + $0x40] sm:$0xff]  ;;  %v7511_v45 = vpack.c.bf16 %v375_v38, %v372_v37  ;;  %v374_v47 = vld [vmem:[#allocation3 + $0xd8] sm:$0xff] }
  0x32   :  { %4321 = vmatmul.mubr.msk.f32.gmra.mrb[2].mxu0 %vm101_vm0, %v71_v21  ;;  %5650 = vmatprep.subr.bf16.mxu1 %v5649_v32  ;;  %v7501_v40 = vpack.c.bf16 %v352_v39, %v349_v36  ;;  %v73_v41 = vld [vmem:[%s8742_s0 + $0x18] sm:$0xff]  ;;  %v371_v46 = vld [vmem:[#allocation3 + $0xc0] sm:$0xff]  ;;  %v378_v49 = vld [vmem:[#allocation3 + $0xf8] sm:$0xff]  ;;  %v7517_v51 = vpack.c.bf16 %v358_v44, %v355_v43 }
  0x33   :  { %5660 = vmatpush1.bf16.msra.mxu0 %v7478_v22  ;;  %202 = vmatprep.mubr.f32.mxu0 %v8753_v0  ;;  %v381_v50 = vld [vmem:[#allocation3 + $0x110] sm:$0xff]  ;;  %v7524_v53 = vpack.c.bf16 %v374_v47, %v371_v46  ;;  %v364_v55 = vld [vmem:[#allocation3 + $0x88] sm:$0xff]  ;;  %v387_v60 = vld [vmem:[#allocation3 + $0x140] sm:$0xff] }
  0x34   :  { %5662 = vmatprep.subr.bf16.mxu0 %v7481_v23  ;;  %5652 = vmatpush3.bf16.msra.mxu1 %v5649_v32  ;;  %v74_v52 = vld [vmem:[%s8742_s0 + $0x20] sm:$0xff]  ;;  %v7527_v56 = vpack.c.bf16 %v381_v50, %v378_v49  ;;  %v380_v58 = vld [vmem:[#allocation3 + $0x108] sm:$0xff]  ;;  %v75_v62 = vld [vmem:[%s8742_s0 + $0x28] sm:$0xff] }
  0x35   :  { %5685 = vmatprep.subr.bf16.mxu1 %v8755_v48  ;;  %8873 = vst [vmem:[#allocation15_spill] sm:$0xff] %v7524_v53  ;;  %v361_v54 = vld [vmem:[#allocation3 + $0x70] sm:$0xff]  ;;  %v384_v59 = vld [vmem:[#allocation3 + $0x128] sm:$0xff]  ;;  %v367_v1 = vld [vmem:[#allocation3 + $0xa0] sm:$0xff] }
  0x36   :  { %4322 = vmatmul.mubr.msk.f32.gmra.mrb[4].mxu0 %vm101_vm0, %v72_v30  ;;  %8874 = vst [vmem:[#allocation16_spill] sm:$0xff] %v7527_v56  ;;  %v377_v57 = vld [vmem:[#allocation3 + $0xf0] sm:$0xff]  ;;  %v7533_v61 = vpack.c.bf16 %v364_v55, %v361_v54  ;;  %v370_v2 = vld [vmem:[#allocation3 + $0xb8] sm:$0xff]  ;;  %v7543_v3 = vpack.c.bf16 %v387_v60, %v384_v59  ;;  %v383_v4 = vld [vmem:[#allocation3 + $0x120] sm:$0xff] }
  0x37   :  { %5664 = vmatpush1.bf16.msra.mxu0 %v7495_v31  ;;  %208 = vmatprep.mubr.f32.mxu0 %v8753_v0  ;;  %v7540_v63 = vpack.c.bf16 %v380_v58, %v377_v57  ;;  %v386_v5 = vld [vmem:[#allocation3 + $0x138] sm:$0xff]  ;;  %v393_v7 = vld [vmem:[#allocation3 + $0x170] sm:$0xff]  ;;  %v7549_v8 = vpack.c.bf16 %v370_v2, %v367_v1  ;;  %v76_v9 = vld [vmem:[%s8742_s0 + $0x30] sm:$0xff] }
  0x38   :  { %5666 = vmatprep.subr.bf16.mxu0 %v7498_v33  ;;  %4794 = vmatmul.mubr.msk.f32.vlgmr.msra.gmra.mrb[0].mxu1 %vm101_vm0, %v71_v21  ;;  %8876 = vst [vmem:[#allocation18_spill] sm:$0xff] %v7543_v3  ;;  %v390_v6 = vld [vmem:[#allocation3 + $0x158] sm:$0xff]  ;;  %v7556_v10 = vpack.c.bf16 %v386_v5, %v383_v4  ;;  %v373_v11 = vld [vmem:[#allocation3 + $0xd0] sm:$0xff]  ;;  %v376_v13 = vld [vmem:[#allocation3 + $0xe8] sm:$0xff] }
  0x39   :  { %5687 = vmatpush3.bf16.msra.mxu1 %v7501_v40  ;;  %4796 = vmatprep.mubr.msk.f32.mxu1 %vm101_vm0, %v72_v30  ;;  %8875 = vst [vmem:[#allocation17_spill] sm:$0xff] %v7540_v63  ;;  %v7559_v14 = vpack.c.bf16 %v393_v7, %v390_v6  ;;  %v389_v17 = vld [vmem:[#allocation3 + $0x150] sm:$0xff]  ;;  %v392_v18 = vld [vmem:[#allocation3 + $0x168] sm:$0xff]  ;;  %v7565_v19 = vpack.c.bf16 %v376_v13, %v373_v11  ;;  %v379_v24 = vld [vmem:[#allocation3 + $0x100] sm:$0xff] }
  0x3a   :  { %4323 = vmatmul.mubr.msk.f32.gmra.mrb[6].mxu0 %vm101_vm0, %v73_v41  ;;  %5688 = vmatprep.subr.bf16.mxu1 %v8755_v48  ;;  %8877 = vst [vmem:[#allocation19_spill] sm:$0xff] %v7556_v10  ;;  %v77_v20 = vld [vmem:[%s8742_s0 + $0x38] sm:$0xff]  ;;  %v7572_v21 = vpack.c.bf16 %v392_v18, %v389_v17  ;;  %v382_v25 = vld [vmem:[#allocation3 + $0x118] sm:$0xff]  ;;  %v385_v27 = vld [vmem:[#allocation3 + $0x130] sm:$0xff] }
  0x3b   :  { %5668 = vmatpush1.bf16.msra.mxu0 %v7508_v42  ;;  %214 = vmatprep.mubr.f32.mxu0 %v8753_v0  ;;  %8878 = vst [vmem:[#allocation20_spill] sm:$0xff] %v7559_v14  ;;  %8879 = vst [vmem:[#allocation21_spill] sm:$0xff] %v7565_v19  ;;  %v7579_v26 = vpack.c.bf16 %v382_v25, %v379_v24  ;;  %v388_v28 = vld [vmem:[#allocation3 + $0x148] sm:$0xff]  ;;  %v391_v30 = vld [vmem:[#allocation3 + $0x160] sm:$0xff] }
  0x3c   :  { %5670 = vmatprep.subr.bf16.mxu0 %v7511_v45  ;;  %4797 = vmatmul.mubr.msk.f32.gmra.mrb[2].mxu1 %vm101_vm0, %v73_v41  ;;  %8880 = vst [vmem:[#allocation22_spill] sm:$0xff] %v7572_v21  ;;  %v7588_v29 = vpack.c.bf16 %v388_v28, %v385_v27  ;;  %v394_v32 = vld [vmem:[#allocation3 + $0x178] sm:$0xff]  ;;  %v575_v35 = vld [vmem:[#allocation6 + $0x8] sm:$0xff]  ;;  %v578_v36 = vld [vmem:[#allocation6 + $0x20] sm:$0xff] }
  0x3d   :  { %5690 = vmatpush3.bf16.msra.mxu1 %v7517_v51  ;;  %4799 = vmatprep.mubr.msk.f32.mxu1 %vm101_vm0, %v74_v52  ;;  %8881 = vst [vmem:[#allocation23_spill] sm:$0xff] %v7579_v26  ;;  %v7595_v34 = vpack.c.bf16 %v394_v32, %v391_v30  ;;  %v7603_v37 = vpack.c.bf16 %v578_v36, %v575_v35  ;;  %v574_v38 = vld [vmem:[#allocation6] sm:$0xff]  ;;  %v577_v39 = vld [vmem:[#allocation6 + $0x18] sm:$0xff]  ;;  %v576_v41 = vld [vmem:[#allocation6 + $0x10] sm:$0xff] }
  0x3e   :  { %4324 = vmatmul.mubr.msk.f32.gmra.mrb[8].mxu0 %vm101_vm0, %v74_v52  ;;  %5691 = vmatprep.subr.bf16.mxu1 %v8755_v48  ;;  %8882 = vst [vmem:[#allocation24_spill] sm:$0xff] %v7588_v29  ;;  %v7605_v43 = vpack.c.bf16 %v577_v39, %v574_v38  ;;  %v579_v44 = vld [vmem:[#allocation6 + $0x28] sm:$0xff]  ;;  %v581_v47 = vld [vmem:[#allocation6 + $0x38] sm:$0xff]  ;;  %v584_v49 = vld [vmem:[#allocation6 + $0x50] sm:$0xff] }
  0x3f   :  { %5672 = vmatpush1.bf16.msra.mxu0 %v7524_v53  ;;  %220 = vmatprep.mubr.f32.mxu0 %v8753_v0  ;;  %8883 = vst [vmem:[#allocation25_spill] sm:$0xff] %v7595_v34  ;;  %8884 = vst [vmem:[#allocation26_spill] sm:$0xff] %v7603_v37  ;;  %v7608_v46 = vpack.c.bf16 %v579_v44, %v576_v41  ;;  %v7612_v50 = vpack.c.bf16 %v584_v49, %v581_v47  ;;  %v580_v52 = vld [vmem:[#allocation6 + $0x30] sm:$0xff]  ;;  %v583_v54 = vld [vmem:[#allocation6 + $0x48] sm:$0xff] }
  0x40   :  { %5674 = vmatprep.subr.bf16.mxu0 %v7527_v56  ;;  %4800 = vmatmul.mubr.msk.f32.gmra.mrb[4].mxu1 %vm101_vm0, %v75_v62  ;;  %8885 = vst [vmem:[#allocation27_spill] sm:$0xff] %v7605_v43  ;;  %v582_v55 = vld [vmem:[#allocation6 + $0x40] sm:$0xff]  ;;  %v7615_v57 = vpack.c.bf16 %v583_v54, %v580_v52  ;;  %v585_v58 = vld [vmem:[#allocation6 + $0x58] sm:$0xff]  ;;  %v587_v60 = vld [vmem:[#allocation6 + $0x68] sm:$0xff] }
  0x41   :  { %5693 = vmatpush3.bf16.msra.mxu1 %v7533_v61  ;;  %4802 = vmatprep.mubr.msk.f32.mxu1 %vm101_vm0, %v76_v9  ;;  %8886 = vst [vmem:[#allocation28_spill] sm:$0xff] %v7608_v46  ;;  %8887 = vst [vmem:[#allocation29_spill] sm:$0xff] %v7612_v50  ;;  %v7618_v59 = vpack.c.bf16 %v585_v58, %v582_v55  ;;  %v586_v2 = vld [vmem:[#allocation6 + $0x60] sm:$0xff]  ;;  %v589_v4 = vld [vmem:[#allocation6 + $0x78] sm:$0xff] }
  0x42   :  { %4325 = vmatmul.mubr.msk.f32.gmra.mrb[10].mxu0 %vm101_vm0, %v75_v62  ;;  %5694 = vmatprep.subr.bf16.mxu1 %v8755_v48  ;;  %8888 = vst [vmem:[#allocation30_spill] sm:$0xff] %v7615_v57  ;;  %v590_v62 = vld [vmem:[#allocation6 + $0x80] sm:$0xff]  ;;  %v588_v5 = vld [vmem:[#allocation6 + $0x70] sm:$0xff]  ;;  %v7625_v6 = vpack.c.bf16 %v589_v4, %v586_v2  ;;  %v591_v7 = vld [vmem:[#allocation6 + $0x88] sm:$0xff] }
  0x43   :  { %5676 = vmatpush1.bf16.msra.mxu0 %v7540_v63  ;;  %226 = vmatprep.mubr.f32.mxu0 %v8753_v0  ;;  %8889 = vst [vmem:[#allocation31_spill] sm:$0xff] %v7618_v59  ;;  %v7622_v1 = vpack.c.bf16 %v590_v62, %v587_v60  ;;  %v593_v11 = vld [vmem:[#allocation6 + $0x98] sm:$0xff]  ;;  %v596_v13 = vld [vmem:[#allocation6 + $0xb0] sm:$0xff]  ;;  %v594_v24 = vld [vmem:[#allocation6 + $0xa0] sm:$0xff] }
  0x44   :  { %5678 = vmatprep.subr.bf16.mxu0 %v7543_v3  ;;  %4803 = vmatmul.mubr.msk.f32.gmra.mrb[6].mxu1 %vm101_vm0, %v77_v20  ;;  %8891 = vst [vmem:[#allocation33_spill] sm:$0xff] %v7625_v6  ;;  %v7632_v17 = vpack.c.bf16 %v596_v13, %v593_v11  ;;  %v592_v18 = vld [vmem:[#allocation6 + $0x90] sm:$0xff]  ;;  %v597_v27 = vld [vmem:[#allocation6 + $0xb8] sm:$0xff]  ;;  %v599_v30 = vld [vmem:[#allocation6 + $0xc8] sm:$0xff] }
  0x45   :  { %5696 = vmatpush3.bf16.msra.mxu1 %v7549_v8  ;;  %4837 = vmatprep.mubr.msk.f32.mxu1 %vm7366_vm1, %v8753_v0  ;;  %8890 = vst [vmem:[#allocation32_spill] sm:$0xff] %v7622_v1  ;;  %v7638_v28 = vpack.c.bf16 %v597_v27, %v594_v24  ;;  %v602_v32 = vld [vmem:[#allocation6 + $0xe0] sm:$0xff]  ;;  %v601_v38 = vld [vmem:[#allocation6 + $0xd8] sm:$0xff]  ;;  %v600_v39 = vld [vmem:[#allocation6 + $0xd0] sm:$0xff] }
  0x46   :  { %4326 = vmatmul.mubr.msk.f32.gmra.mrb[12].mxu0 %vm101_vm0, %v76_v9  ;;  %5697 = vmatprep.subr.bf16.mxu1 %v8755_v48  ;;  %v7628_v9 = vpack.c.bf16 %v591_v7, %v588_v5  ;;  %8893 = vst [vmem:[#allocation35_spill] sm:$0xff] %v7632_v17  ;;  %v7642_v35 = vpack.c.bf16 %v602_v32, %v599_v30  ;;  %v598_v36 = vld [vmem:[#allocation6 + $0xc0] sm:$0xff]  ;;  %v603_v44 = vld [vmem:[#allocation6 + $0xe8] sm:$0xff]  ;;  %v605_v49 = vld [vmem:[#allocation6 + $0xf8] sm:$0xff] }
  0x47   :  { %5680 = vmatpush1.bf16.msra.mxu0 %v7556_v10  ;;  %232 = vmatprep.mubr.f32.mxu0 %v8753_v0  ;;  %8895 = vst [vmem:[#allocation37_spill] sm:$0xff] %v7638_v28  ;;  %v7645_v41 = vpack.c.bf16 %v601_v38, %v598_v36  ;;  %v7648_v47 = vpack.c.bf16 %v603_v44, %v600_v39  ;;  %v608_v52 = vld [vmem:[#allocation6 + $0x110] sm:$0xff]  ;;  %v607_v58 = vld [vmem:[#allocation6 + $0x108] sm:$0xff]  ;;  %v606_v60 = vld [vmem:[#allocation6 + $0x100] sm:$0xff] }
  0x48   :  { %5682 = vmatprep.subr.bf16.mxu0 %v7559_v14  ;;  %8892 = vst [vmem:[#allocation34_spill] sm:$0xff] %v7628_v9  ;;  %8896 = vst [vmem:[#allocation38_spill] sm:$0xff] %v7642_v35  ;;  %v7652_v54 = vpack.c.bf16 %v608_v52, %v605_v49  ;;  %v604_v55 = vld [vmem:[#allocation6 + $0xf0] sm:$0xff]  ;;  %v609_v2 = vld [vmem:[#allocation6 + $0x118] sm:$0xff] }
  0x49   :  { %5699 = vmatpush3.bf16.msra.mxu1 %v7565_v19  ;;  %8897 = vst [vmem:[#allocation39_spill] sm:$0xff] %v7645_v41  ;;  %8898 = vst [vmem:[#allocation40_spill] sm:$0xff] %v7648_v47  ;;  %v7655_v62 = vpack.c.bf16 %v607_v58, %v604_v55  ;;  %v611_v4 = vld [vmem:[#allocation6 + $0x128] sm:$0xff]  ;;  %v614_v5 = vld [vmem:[#allocation6 + $0x140] sm:$0xff]  ;;  %v7658_v7 = vpack.c.bf16 %v609_v2, %v606_v60 }
  0x4a   :  { %4327 = vmatmul.mubr.msk.f32.gmra.mrb[14].mxu0 %vm101_vm0, %v77_v20  ;;  %5700 = vmatprep.subr.bf16.mxu1 %v8755_v48  ;;  %v595_v20 = vld [vmem:[#allocation6 + $0xa8] sm:$0xff]  ;;  %8899 = vst [vmem:[#allocation41_spill] sm:$0xff] %v7652_v54  ;;  %v7660_v11 = vpack.c.bf16 %v614_v5, %v611_v4  ;;  %v610_v13 = vld [vmem:[#allocation6 + $0x120] sm:$0xff]  ;;  %v617_v30 = vld [vmem:[#allocation6 + $0x158] sm:$0xff]  ;;  %v86_v5 = vlaneseq }
  0x4b   :  { %5684 = vmatpush1.bf16.msra.mxu0 %v7572_v21  ;;  %476 = vmatprep.mubr.f32.mxu0 %v8753_v0  ;;  %v7635_v25 = vpack.c.bf16 %v595_v20, %v592_v18  ;;  %8900 = vst [vmem:[#allocation42_spill] sm:$0xff] %v7655_v62  ;;  %8901 = vst [vmem:[#allocation43_spill] sm:$0xff] %v7658_v7  ;;  %v613_v18 = vld [vmem:[#allocation6 + $0x138] sm:$0xff]  ;;  %v612_v20 = vld [vmem:[#allocation6 + $0x130] sm:$0xff] }
  0x4c   :  { %5710 = vmatprep.subr.bf16.mxu0 %v7603_v37  ;;  %8902 = vst [vmem:[#allocation44_spill] sm:$0xff] %v7660_v11  ;;  %v7663_v24 = vpack.c.bf16 %v613_v18, %v610_v13  ;;  %v615_v27 = vld [vmem:[#allocation6 + $0x148] sm:$0xff]  ;;  %v620_v32 = vld [vmem:[#allocation6 + $0x170] sm:$0xff]  ;;  %v618_v49 = vld [vmem:[#allocation6 + $0x160] sm:$0xff]  ;;  %v87_v13 = vshrl.u32 %v86_v5, 7 }
  0x4d   :  { %5702 = vmatpush3.bf16.msra.mxu1 %v7579_v26  ;;  %8894 = vst [vmem:[#allocation36_spill] sm:$0xff] %v7635_v25  ;;  %v7667_v36 = vpack.c.bf16 %v615_v27, %v612_v20  ;;  %v7669_v38 = vpack.c.bf16 %v620_v32, %v617_v30  ;;  %v616_v39 = vld [vmem:[#allocation6 + $0x150] sm:$0xff]  ;;  %v619_v44 = vld [vmem:[#allocation6 + $0x168] sm:$0xff]  ;;  %v621_v52 = vld [vmem:[#allocation6 + $0x178] sm:$0xff] }
  0x4e   :  { %477 = vmatmul.mubr.f32.vlgmr.msra.gmra.mrb[0].mxu0 %v8753_v0  ;;  %5703 = vmatprep.subr.bf16.mxu1 %v8755_v48  ;;  %8903 = vst [vmem:[#allocation45_spill] sm:$0xff] %v7663_v24  ;;  %v782_v55 = vld [vmem:[#allocation3 + $0x188] sm:$0xff]  ;;  %v785_v58 = vld [vmem:[#allocation3 + $0x1a0] sm:$0xff]  ;;  %v7673_v60 = vpack.c.bf16 %v619_v44, %v616_v39  ;;  %v7677_v2 = vpack.c.bf16 %v621_v52, %v618_v49  ;;  %v7686_v18 = vsub.s32 2, %v87_v13  ;;  %v84_v20 = vld [vmem:[%s8744_s2] sm:$0x7] }
  0x4f   :  { %703 = vmatprep.mubr.f32.mxu0 %v8753_v0  ;;  %5712 = vmatpush1.bf16.msra.mxu0 %v7605_v43  ;;  %8904 = vst [vmem:[#allocation46_spill] sm:$0xff] %v7667_v36  ;;  %8905 = vst [vmem:[#allocation47_spill] sm:$0xff] %v7669_v38  ;;  %v7679_v4 = vpack.c.bf16 %v785_v58, %v782_v55  ;;  %v7696_v55 = vsub.s32 0, %v87_v13  ;;  %v395_v5 = vld [vmem:[%s8746_s4] sm:$0x7] }
  0x50   :  { %5714 = vmatprep.subr.bf16.mxu0 %v7612_v50  ;;  %8906 = vst [vmem:[#allocation48_spill] sm:$0xff] %v7673_v60  ;;  %8907 = vst [vmem:[#allocation49_spill] sm:$0xff] %v7677_v2  ;;  %v97_v27 = vrot.slane %v84_v20, %v7686_v18 }
  0x51   :  { %5705 = vmatpush3.bf16.msra.mxu1 %v7588_v29  ;;  %8908 = vst [vmem:[#allocation50_spill] sm:$0xff] %v7679_v4  ;;  %8909 = vst [vmem:[#allocation51_spill] sm:$0xff] %v7686_v18 }
  0x52   :  { %5706 = vmatprep.subr.bf16.mxu1 %v8755_v48  ;;  %8912 = vst [vmem:[#allocation54_spill] sm:$0xff] %v7696_v55 }
  0x53   :  { %5716 = vmatpush1.bf16.msra.mxu0 %v7615_v57 }
  0x54   :  { %5718 = vmatprep.subr.bf16.mxu0 %v7622_v1 }
  0x55   :  { %5708 = vmatpush3.bf16.msra.mxu1 %v7595_v34 }
  0x56   :  { %5741 = vmatprep.subr.bf16.mxu1 %v8755_v48 }
  0x57   :  { %5720 = vmatpush1.bf16.msra.mxu0 %v7625_v6 }
  0x58   :  { %4838 = vmatmul.mubr.f32.vlgmr.msra.gmra.mrb[8].mxu1 %v8753_v0  ;;  %5722 = vmatprep.subr.bf16.mxu0 %v7632_v17 }
  0x59   :  { %4872 = vmatprep.mubr.msk.f32.mxu1 %vm7366_vm1, %v8753_v0  ;;  %5743 = vmatpush3.bf16.msra.mxu1 %v7608_v46  ;;  %v7703_v0 = vsub.s32 1, %v87_v13 }
  0x5a   :  { %5744 = vmatprep.subr.bf16.mxu1 %v8755_v48 }
  0x5b   :  { %5724 = vmatpush1.bf16.msra.mxu0 %v7635_v25  ;;  %8914 = vst [vmem:[#allocation56_spill] sm:$0xff] %v7703_v0 }
  0x5c   :  { %5726 = vmatprep.subr.bf16.mxu0 %v7642_v35 }
  0x5d   :  { %5746 = vmatpush3.bf16.msra.mxu1 %v7618_v59 }
  0x5e   :  { %5747 = vmatprep.subr.bf16.mxu1 %v8755_v48 }
  0x5f   :  { %5728 = vmatpush1.bf16.msra.mxu0 %v7645_v41 }
  0x60   :  { %5730 = vmatprep.subr.bf16.mxu0 %v7652_v54 }
  0x61   :  { %5749 = vmatpush3.bf16.msra.mxu1 %v7628_v9 }
  0x62   :  { %5750 = vmatprep.subr.bf16.mxu1 %v8755_v48 }
  0x63   :  { %5732 = vmatpush1.bf16.msra.mxu0 %v7655_v62 }
  0x64   :  { %5734 = vmatprep.subr.bf16.mxu0 %v7660_v11 }
  0x65   :  { %5752 = vmatpush3.bf16.msra.mxu1 %v7638_v28 }
  0x66   :  { %5753 = vmatprep.subr.bf16.mxu1 %v8755_v48 }
  0x67   :  { %5736 = vmatpush1.bf16.msra.mxu0 %v7663_v24 }
  0x68   :  { %5738 = vmatprep.subr.bf16.mxu0 %v7669_v38 }
  0x69   :  { %5755 = vmatpush3.bf16.msra.mxu1 %v7648_v47 }
  0x6a   :  { %5756 = vmatprep.subr.bf16.mxu1 %v8755_v48 }
  0x6b   :  { %5740 = vmatpush1.bf16.msra.mxu0 %v7673_v60 }
  0x6c   :  { %5766 = vmatprep.subr.bf16.mxu0 %v7679_v4  ;;  %v93_v4 = vrot.slane %v84_v20, %v7703_v0 }
  0x6d   :  { %5758 = vmatpush3.bf16.msra.mxu1 %v7658_v7 }
  0x6e   :  { %5759 = vmatprep.subr.bf16.mxu1 %v8755_v48 }
  0x71   :  { %5761 = vmatpush3.bf16.msra.mxu1 %v7667_v36 }
  0x72   :  { %5762 = vmatprep.subr.bf16.mxu1 %v8755_v48 }
  0x75   :  { %5764 = vmatpush3.bf16.msra.mxu1 %v7677_v2 }
  0x76   :  { %5797 = vmatprep.subr.bf16.mxu1 %v8755_v48  ;;  %v89_v48 = vrot.slane %v84_v20, %v7696_v55 }
 0x10b   :  { %v4795_v30 = vpop.f32.mrb[0].mxu1 }
 0x10c   :  { %v7692_v32 = vadd.f32 %v4795_v30, %v97_v27  ;;  %v305_v39 = vpop.f32.mrb[1].mxu1  ;;  %v400_v30 = vrot.slane %v395_v5, %v7696_v55 }
 0x10e   :  { %8910 = vst [vmem:[#allocation52_spill] sm:$0xff] %v7692_v32 }
 0x10f   :  { %v4798_v44 = vpop.f32.mrb[2].mxu1 }
 0x110   :  { %v7694_v49 = vadd.f32 %v4798_v44, %v97_v27  ;;  %v315_v52 = vpop.f32.mrb[3].mxu1  ;;  %v404_v44 = vrot.slane %v395_v5, %v7703_v0 }
 0x111   :  { %v7698_v58 = vadd.f32 %v315_v52, %v97_v27  ;;  %v7711_v52 = vadd.f32 %v400_v30, %v89_v48 }
 0x112   :  { %8911 = vst [vmem:[#allocation53_spill] sm:$0xff] %v7694_v49  ;;  %v7715_v13 = vadd.f32 %v404_v44, %v93_v4 }
 0x113   :  { %8913 = vst [vmem:[#allocation55_spill] sm:$0xff] %v7698_v58  ;;  %v4801_v32 = vpop.f32.mrb[4].mxu1  ;;  %8916 = vst [vmem:[#allocation58_spill] sm:$0xff] %v7711_v52 }
 0x114   :  { %v7709_v49 = vadd.f32 %v4801_v32, %v97_v27  ;;  %v325_v2 = vpop.f32.mrb[5].mxu1  ;;  %8918 = vst [vmem:[#allocation60_spill] sm:$0xff] %v7715_v13 }
 0x115   :  { %v7713_v58 = vadd.f32 %v325_v2, %v97_v27 }
 0x116   :  { %8915 = vst [vmem:[#allocation57_spill] sm:$0xff] %v7709_v49 }
 0x117   :  { %8917 = vst [vmem:[#allocation59_spill] sm:$0xff] %v7713_v58  ;;  %v4804_v60 = vpop.f32.mrb[6].mxu1 }
 0x118   :  { %v7717_v36 = vadd.f32 %v4804_v60, %v97_v27  ;;  %v335_v24 = vpop.f32.mrb[7].mxu1  ;;  %v7724_v60 = vrot.slane %v395_v5, %v7686_v18  ;;  %v791_v5 = vld [vmem:[#allocation3 + $0x1d0] sm:$0xff] }
 0x119   :  { %v7720_v20 = vadd.f32 %v335_v24, %v97_v27 }
 0x11a   :  { %8919 = vst [vmem:[#allocation61_spill] sm:$0xff] %v7717_v36  ;;  %v306_v36 = vadd.f32 %v305_v39, %v97_v27  ;;  %v787_v27 = vld [vmem:[#allocation3 + $0x1b0] sm:$0xff] }
 0x11b   :  { %8920 = vst [vmem:[#allocation62_spill] sm:$0xff] %v7720_v20  ;;  %v783_v20 = vld [vmem:[#allocation3 + $0x190] sm:$0xff] }
 0x121   :  { %v478_v38 = vpop.f32.mrb[0].mxu0 }
 0x122   :  { %v6998_v55 = vadd.f32 %v7711_v52, %v478_v38  ;;  %v480_v11 = vpop.f32.mrb[1].mxu0 }
 0x123   :  { %v7000_v32 = vadd.f32 %v7715_v13, %v480_v11  ;;  %v788_v13 = vld [vmem:[#allocation3 + $0x1b8] sm:$0xff] }
 0x124   :  { %v4336_v0 = vmul.f32 -1.442695, %v6998_v55 }
 0x125   :  { %v4337_v48 = vmul.f32 -1.442695, %v7000_v32  ;;  %v781_v32 = vld [vmem:[#allocation3 + $0x180] sm:$0xff] }
 0x126   :  { %7102 = vpow2.f32 %v4336_v0 }
 0x127   :  { %7104 = vpow2.f32 %v4337_v48 }
 0x12b   :  { %v549_v30 = vpop.f32.mrb[8].mxu1 }
 0x12c   :  { %v4839_v2 = vpop.f32.mrb[9].mxu1  ;;  %v550_v38 = vadd.f32 %v549_v30, %v7724_v60 }
 0x12d   :  { %v784_v2 = vld [vmem:[#allocation3 + $0x198] sm:$0xff] }
 0x130   :  { %v7103_v49 = vpop.eup %7102 }
 0x131   :  { %v557_v58 = vadd.f32 1.0, %v7103_v49  ;;  %v7105_v4 = vpop.eup %7104  ;;  %v786_v49 = vld [vmem:[#allocation3 + $0x1a8] sm:$0xff] }
 0x132   :  { %v564_v44 = vadd.f32 1.0, %v7105_v4  ;;  %v7727_v4 = vpack.c.bf16 %v784_v2, %v781_v32  ;;  %v7729_v30 = vpack.c.bf16 %v786_v49, %v783_v20  ;;  %v796_v32 = vld [vmem:[#allocation3 + $0x1f8] sm:$0xff]  ;;  %v798_v2 = vld [vmem:[#allocation3 + $0x208] sm:$0xff] }
 0x133   :  { %7106 = vrcp.f32 %v557_v58  ;;  %v800_v49 = vld [vmem:[#allocation3 + $0x218] sm:$0xff] }
 0x134   :  { %7108 = vrcp.f32 %v564_v44  ;;  %8921 = vst [vmem:[#allocation63_spill] sm:$0xff] %v7727_v4  ;;  %8922 = vst [vmem:[#allocation64_spill] sm:$0xff] %v7729_v30  ;;  %v790_v44 = vld [vmem:[#allocation3 + $0x1c8] sm:$0xff] }
 0x135   :  { %v7739_v20 = vpack.c.bf16 %v790_v44, %v787_v27 }
 0x137   :  { %8924 = vst [vmem:[#allocation66_spill] sm:$0xff] %v7739_v20 }
 0x13d   :  { %v7107_v24 = vpop.eup %7106 }
 0x13e   :  { %v567_v55 = vmul.f32 %v7107_v24, %v550_v38  ;;  %v7109_v0 = vpop.eup %7108  ;;  %v789_v38 = vld [vmem:[#allocation3 + $0x1c0] sm:$0xff]  ;;  %v792_v24 = vld [vmem:[#allocation3 + $0x1d8] sm:$0xff] }
 0x13f   :  { %v570_v48 = vsub.f32 1.0, %v7109_v0  ;;  %v572_v18 = vmul.f32 0.0, %v7109_v0  ;;  %v7741_v0 = vpack.c.bf16 %v792_v24, %v789_v38  ;;  %v799_v38 = vld [vmem:[#allocation3 + $0x210] sm:$0xff] }
 0x140   :  { %v568_v11 = vadd.f32 %v567_v55, %v306_v36  ;;  %v7733_v36 = vpack.c.bf16 %v791_v5, %v788_v13  ;;  %v794_v55 = vld [vmem:[#allocation3 + $0x1e8] sm:$0xff]  ;;  %v8928_v5 = vmov 0.0  }
 0x141   :  { %8925 = vst [vmem:[#allocation67_spill] sm:$0xff] %v7741_v0 }
 0x142   :  { %7110 = vtanh.f32 %v568_v11  ;;  %8923 = vst [vmem:[#allocation65_spill] sm:$0xff] %v7733_v36  ;;  %v797_v11 = vld [vmem:[#allocation3 + $0x200] sm:$0xff] }
 0x143   :  { %v7745_v13 = vpack.c.bf16 %v797_v11, %v794_v55  ;;  %v802_v55 = vld [vmem:[#allocation3 + $0x228] sm:$0xff]  ;;  %v801_v11 = vld [vmem:[#allocation3 + $0x220] sm:$0xff] }
 0x145   :  { %8927 = vst [vmem:[#allocation68_spill] sm:$0xff] %v7745_v13 }
 0x14c   :  { %v7111_v58 = vpop.eup %7110 }
 0x14d   :  { %v571_v52 = vmul.f32 %v7111_v58, %v570_v48  ;;  %v795_v48 = vld [vmem:[#allocation3 + $0x1f0] sm:$0xff] }
 0x14e   :  { %v803_v58 = vld [vmem:[#allocation3 + $0x230] sm:$0xff]  ;;  %v7754_v44 = vpack.c.bf16 %v798_v2, %v795_v48  ;;  %v805_v48 = vld [vmem:[#allocation3 + $0x240] sm:$0xff] }
 0x14f   :  { %v7731_v39 = vadd.f32 %v572_v18, %v571_v52  ;;  %v793_v18 = vld [vmem:[#allocation3 + $0x1e0] sm:$0xff]  ;;  %v8926_v52 = vmov 0.0|0.0   ;;  %v7758_v24 = vpack.c.bf16 %v803_v58, %v800_v49  ;;  %v808_v49 = vld [vmem:[#allocation3 + $0x258] sm:$0xff]  ;;  %v807_v58 = vld [vmem:[#allocation3 + $0x250] sm:$0xff] }
 0x150   :  { %v7752_v27 = vpack.c.bf16 %v796_v32, %v793_v18  ;;  %8930 = vst [vmem:[#allocation70_spill] sm:$0xff] %v7754_v44  ;;  %v7762_v18 = vpack.c.bf16 %v802_v55, %v799_v38  ;;  %v7772_v38 = vpack.c.bf16 %v808_v49, %v805_v48  ;;  %v811_v55 = vld [vmem:[#allocation3 + $0x270] sm:$0xff]  ;;  %v817_v49 = vld [vmem:[#allocation3 + $0x2a0] sm:$0xff] }
 0x151   :  { %704 = vmatmul.mubr.f32.vlgmr.msra.gmra.mrb[16].mxu0 %v7731_v39  ;;  %4873 = vmatmul.mubr.f32.vlgmr.msra.gmra.mrb[10].mxu1 %v7731_v39  ;;  %8931 = vst [vmem:[#allocation71_spill] sm:$0xff] %v7758_v24 }
 0x152   :  { %5768 = vmatpush1.bf16.msra.mxu0 %v7727_v4  ;;  %5799 = vmatpush3.bf16.msra.mxu1 %v7729_v30  ;;  %8929 = vst [vmem:[#allocation69_spill] sm:$0xff] %v7752_v27  ;;  %v806_v30 = vld [vmem:[#allocation3 + $0x248] sm:$0xff]  ;;  %v809_v4 = vld [vmem:[#allocation3 + $0x260] sm:$0xff]  ;;  %8932 = vst [vmem:[#allocation72_spill] sm:$0xff] %v7762_v18 }
 0x153   :  { %5770 = vmatprep.subr.bf16.mxu0 %v7733_v36  ;;  %5800 = vmatprep.subr.bf16.mxu1 %v8926_v52  ;;  %v804_v36 = vld [vmem:[#allocation3 + $0x238] sm:$0xff]  ;;  %v7768_v2 = vpack.c.bf16 %v809_v4, %v806_v30  ;;  %v814_v30 = vld [vmem:[#allocation3 + $0x288] sm:$0xff] }
 0x154   :  { %911 = vmatprep.mubr.f32.mxu0 %v8928_v5  ;;  %4907 = vmatprep.mubr.msk.f32.mxu1 %vm7366_vm1, %v8928_v5  ;;  %v7764_v32 = vpack.c.bf16 %v804_v36, %v801_v11  ;;  %v813_v11 = vld [vmem:[#allocation3 + $0x280] sm:$0xff]  ;;  %v7782_v48 = vpack.c.bf16 %v814_v30, %v811_v55  ;;  %v823_v30 = vld [vmem:[#allocation3 + $0x2d0] sm:$0xff] }
 0x155   :  { %8934 = vst [vmem:[#allocation74_spill] sm:$0xff] %v7768_v2 }
 0x156   :  { %5772 = vmatpush1.bf16.msra.mxu0 %v7739_v20  ;;  %5802 = vmatpush3.bf16.msra.mxu1 %v7741_v0  ;;  %8933 = vst [vmem:[#allocation73_spill] sm:$0xff] %v7764_v32  ;;  %v812_v0 = vld [vmem:[#allocation3 + $0x278] sm:$0xff]  ;;  %v815_v20 = vld [vmem:[#allocation3 + $0x290] sm:$0xff]  ;;  %8936 = vst [vmem:[#allocation76_spill] sm:$0xff] %v7782_v48 }
 0x157   :  { %5774 = vmatprep.subr.bf16.mxu0 %v7745_v13  ;;  %5803 = vmatprep.subr.bf16.mxu1 %v8926_v52  ;;  %v810_v13 = vld [vmem:[#allocation3 + $0x268] sm:$0xff]  ;;  %v7778_v4 = vpack.c.bf16 %v815_v20, %v812_v0  ;;  %v820_v0 = vld [vmem:[#allocation3 + $0x2b8] sm:$0xff] }
 0x158   :  { %v7774_v36 = vpack.c.bf16 %v810_v13, %v807_v58  ;;  %v819_v58 = vld [vmem:[#allocation3 + $0x2b0] sm:$0xff]  ;;  %v7792_v55 = vpack.c.bf16 %v820_v0, %v817_v49  ;;  %v8941_v0 = vld [vmem:[#allocation48_spill] sm:$0xff] }
 0x159   :  { %8935 = vst [vmem:[#allocation75_spill] sm:$0xff] %v7778_v4 }
 0x15a   :  { %5776 = vmatpush1.bf16.msra.mxu0 %v7752_v27  ;;  %5805 = vmatpush3.bf16.msra.mxu1 %v7754_v44  ;;  %v818_v44 = vld [vmem:[#allocation3 + $0x2a8] sm:$0xff]  ;;  %v821_v27 = vld [vmem:[#allocation3 + $0x2c0] sm:$0xff] }
 0x15b   :  { %5778 = vmatprep.subr.bf16.mxu0 %v7758_v24  ;;  %5806 = vmatprep.subr.bf16.mxu1 %v8926_v52  ;;  %v816_v24 = vld [vmem:[#allocation3 + $0x298] sm:$0xff]  ;;  %v7788_v20 = vpack.c.bf16 %v821_v27, %v818_v44  ;;  %v826_v44 = vld [vmem:[#allocation3 + $0x2e8] sm:$0xff] }
 0x15c   :  { %v7784_v13 = vpack.c.bf16 %v816_v24, %v813_v11  ;;  %v825_v11 = vld [vmem:[#allocation3 + $0x2e0] sm:$0xff] }
 0x15e   :  { %5780 = vmatpush1.bf16.msra.mxu0 %v7762_v18  ;;  %5808 = vmatpush3.bf16.msra.mxu1 %v7764_v32  ;;  %v824_v32 = vld [vmem:[#allocation3 + $0x2d8] sm:$0xff]  ;;  %v827_v18 = vld [vmem:[#allocation3 + $0x2f0] sm:$0xff] }
 0x15f   :  { %5782 = vmatprep.subr.bf16.mxu0 %v7768_v2  ;;  %5809 = vmatprep.subr.bf16.mxu1 %v8926_v52  ;;  %v822_v2 = vld [vmem:[#allocation3 + $0x2c8] sm:$0xff]  ;;  %v7798_v27 = vpack.c.bf16 %v827_v18, %v824_v32  ;;  %v8937_v18 = vld [vmem:[#allocation44_spill] sm:$0xff]  ;;  %v8938_v32 = vld [vmem:[#allocation45_spill] sm:$0xff] }
 0x160   :  { %v7794_v24 = vpack.c.bf16 %v822_v2, %v819_v58  ;;  %v8939_v2 = vld [vmem:[#allocation46_spill] sm:$0xff]  ;;  %v8942_v58 = vld [vmem:[#allocation49_spill] sm:$0xff] }
 0x162   :  { %5784 = vmatpush1.bf16.msra.mxu0 %v7772_v38  ;;  %5811 = vmatpush3.bf16.msra.mxu1 %v7774_v36 }
 0x163   :  { %5786 = vmatprep.subr.bf16.mxu0 %v7778_v4  ;;  %5812 = vmatprep.subr.bf16.mxu1 %v8926_v52  ;;  %v828_v4 = vld [vmem:[#allocation3 + $0x2f8] sm:$0xff] }
 0x164   :  { %v7804_v49 = vpack.c.bf16 %v828_v4, %v825_v11  ;;  %v8940_v4 = vld [vmem:[#allocation47_spill] sm:$0xff] }
 0x166   :  { %5788 = vmatpush1.bf16.msra.mxu0 %v7782_v48  ;;  %5814 = vmatpush3.bf16.msra.mxu1 %v7784_v13  ;;  %v7802_v48 = vpack.c.bf16 %v826_v44, %v823_v30  ;;  %v8943_v30 = vld [vmem:[#allocation50_spill] sm:$0xff] }
 0x167   :  { %5790 = vmatprep.subr.bf16.mxu0 %v7788_v20  ;;  %5815 = vmatprep.subr.bf16.mxu1 %v8926_v52 }
 0x16a   :  { %5792 = vmatpush1.bf16.msra.mxu0 %v7792_v55  ;;  %5817 = vmatpush3.bf16.msra.mxu1 %v7794_v24 }
 0x16b   :  { %5794 = vmatprep.subr.bf16.mxu0 %v7798_v27  ;;  %5818 = vmatprep.subr.bf16.mxu1 %v8926_v52 }
 0x16e   :  { %5796 = vmatpush1.bf16.msra.mxu0 %v7802_v48  ;;  %5820 = vmatpush3.bf16.msra.mxu1 %v7804_v49 }
 0x16f   :  { %5822 = vmatprep.subr.bf16.mxu0 %v7465_v12  ;;  %5853 = vmatprep.subr.bf16.mxu1 %v8926_v52 }
 0x171   :  { %912 = vmatmul.mubr.f32.vlgmr.msra.gmra.mrb[16].mxu0 %v8928_v5  ;;  %4908 = vmatmul.mubr.f32.vlgmr.msra.gmra.mrb[12].mxu1 %v8928_v5 }
 0x172   :  { %5824 = vmatpush1.bf16.msra.mxu0 %v7467_v15  ;;  %5855 = vmatpush3.bf16.msra.mxu1 %v7501_v40 }
 0x173   :  { %5826 = vmatprep.subr.bf16.mxu0 %v7470_v16  ;;  %5856 = vmatprep.subr.bf16.mxu1 %v8926_v52 }
 0x174   :  { %1073 = vmatprep.mubr.f32.mxu0 %v8928_v5  ;;  %4942 = vmatprep.mubr.msk.f32.mxu1 %vm7366_vm1, %v8928_v5 }
 0x176   :  { %5828 = vmatpush1.bf16.msra.mxu0 %v7478_v22  ;;  %5858 = vmatpush3.bf16.msra.mxu1 %v7517_v51 }
 0x177   :  { %5830 = vmatprep.subr.bf16.mxu0 %v7481_v23  ;;  %5859 = vmatprep.subr.bf16.mxu1 %v8926_v52 }
 0x17a   :  { %5832 = vmatpush1.bf16.msra.mxu0 %v7495_v31  ;;  %5861 = vmatpush3.bf16.msra.mxu1 %v7533_v61 }
 0x17b   :  { %5834 = vmatprep.subr.bf16.mxu0 %v7498_v33  ;;  %5862 = vmatprep.subr.bf16.mxu1 %v8926_v52 }
 0x17e   :  { %5836 = vmatpush1.bf16.msra.mxu0 %v7508_v42  ;;  %5864 = vmatpush3.bf16.msra.mxu1 %v7549_v8 }
 0x17f   :  { %5838 = vmatprep.subr.bf16.mxu0 %v7511_v45  ;;  %5865 = vmatprep.subr.bf16.mxu1 %v8926_v52 }
 0x182   :  { %5840 = vmatpush1.bf16.msra.mxu0 %v7524_v53  ;;  %5867 = vmatpush3.bf16.msra.mxu1 %v7565_v19 }
 0x183   :  { %5842 = vmatprep.subr.bf16.mxu0 %v7527_v56  ;;  %5868 = vmatprep.subr.bf16.mxu1 %v8926_v52 }
 0x186   :  { %5844 = vmatpush1.bf16.msra.mxu0 %v7540_v63  ;;  %5870 = vmatpush3.bf16.msra.mxu1 %v7579_v26 }
 0x187   :  { %5846 = vmatprep.subr.bf16.mxu0 %v7543_v3  ;;  %5871 = vmatprep.subr.bf16.mxu1 %v8926_v52 }
 0x18a   :  { %5848 = vmatpush1.bf16.msra.mxu0 %v7556_v10  ;;  %5873 = vmatpush3.bf16.msra.mxu1 %v7588_v29 }
 0x18b   :  { %5850 = vmatprep.subr.bf16.mxu0 %v7559_v14  ;;  %5874 = vmatprep.subr.bf16.mxu1 %v8926_v52 }
 0x18e   :  { %5852 = vmatpush1.bf16.msra.mxu0 %v7572_v21  ;;  %5876 = vmatpush3.bf16.msra.mxu1 %v7595_v34 }
 0x18f   :  { %5878 = vmatprep.subr.bf16.mxu0 %v7603_v37  ;;  %5909 = vmatprep.subr.bf16.mxu1 %v8926_v52 }
 0x191   :  { %1074 = vmatmul.mubr.f32.vlgmr.msra.gmra.mrb[2].mxu0 %v7731_v39  ;;  %4943 = vmatmul.mubr.f32.vlgmr.msra.gmra.mrb[14].mxu1 %v7731_v39 }
 0x192   :  { %5880 = vmatpush1.bf16.msra.mxu0 %v7605_v43  ;;  %5911 = vmatpush3.bf16.msra.mxu1 %v7608_v46 }
 0x193   :  { %5882 = vmatprep.subr.bf16.mxu0 %v7612_v50  ;;  %5912 = vmatprep.subr.bf16.mxu1 %v8926_v52 }
 0x194   :  { %1235 = vmatprep.mubr.f32.mxu0 %v8928_v5  ;;  %4977 = vmatprep.mubr.msk.f32.mxu1 %vm7366_vm1, %v8928_v5 }
 0x196   :  { %5884 = vmatpush1.bf16.msra.mxu0 %v7615_v57  ;;  %5914 = vmatpush3.bf16.msra.mxu1 %v7618_v59 }
 0x197   :  { %5886 = vmatprep.subr.bf16.mxu0 %v7622_v1  ;;  %5915 = vmatprep.subr.bf16.mxu1 %v8926_v52  ;;  %v8951_v1 = vld [vmem:[#allocation60_spill] sm:$0xff] }
 0x19a   :  { %5888 = vmatpush1.bf16.msra.mxu0 %v7625_v6  ;;  %5917 = vmatpush3.bf16.msra.mxu1 %v7628_v9 }
 0x19b   :  { %5890 = vmatprep.subr.bf16.mxu0 %v7632_v17  ;;  %5918 = vmatprep.subr.bf16.mxu1 %v8926_v52 }
 0x19e   :  { %5892 = vmatpush1.bf16.msra.mxu0 %v7635_v25  ;;  %5920 = vmatpush3.bf16.msra.mxu1 %v7638_v28 }
 0x19f   :  { %5894 = vmatprep.subr.bf16.mxu0 %v7642_v35  ;;  %5921 = vmatprep.subr.bf16.mxu1 %v8926_v52 }
 0x1a2   :  { %5896 = vmatpush1.bf16.msra.mxu0 %v7645_v41  ;;  %5923 = vmatpush3.bf16.msra.mxu1 %v7648_v47 }
 0x1a3   :  { %5898 = vmatprep.subr.bf16.mxu0 %v7652_v54  ;;  %5924 = vmatprep.subr.bf16.mxu1 %v8926_v52 }
 0x1a6   :  { %5900 = vmatpush1.bf16.msra.mxu0 %v7655_v62  ;;  %5926 = vmatpush3.bf16.msra.mxu1 %v7658_v7  ;;  %v8945_v7 = vld [vmem:[#allocation56_spill] sm:$0xff] }
 0x1a7   :  { %5902 = vmatprep.subr.bf16.mxu0 %v8937_v18  ;;  %5927 = vmatprep.subr.bf16.mxu1 %v8926_v52 }
 0x1aa   :  { %5904 = vmatpush1.bf16.msra.mxu0 %v8938_v32  ;;  %5929 = vmatpush3.bf16.msra.mxu1 %v8939_v2  ;;  %v4338_v32 = vld [vmem:[%s8746_s4 + $0x3] sm:$0x7]  ;;  %v8944_v2 = vld [vmem:[#allocation54_spill] sm:$0xff]  ;;  %s7367_s4 = smov [#allocation8]  }
 0x1ab   :  { %5906 = vmatprep.subr.bf16.mxu0 %v8940_v4  ;;  %5930 = vmatprep.subr.bf16.mxu1 %v8926_v52  ;;  %v622_v4 = vld [vmem:[%s8748_s6] sm:$0x7]  ;;  %s4296_s6 = sshll.u32 %s7367_s4, 4  ;;  %s4297_s6 = int_to_ptr.vmem [resolvable:$true] %s4296_s6 }
 0x1ac   :  { %v627_v18 = vrot.slane %v622_v4, %v8944_v2  ;;  %s7308_s12 = scalar_lea.vmem %s4297_s6, 128  ;;  %p7313_p3 = scmp.lt.s32.totalorder %s4297_s6, %s4297_s6 }
 0x1ad   :  { %p7309_p2 = scmp.ne.s32.totalorder %s4297_s6, %s7308_s12  ;;  %p7314_p4 = scmp.lt.s32.totalorder %s7308_s12, %s7308_s12 }
 0x1ae   :  { %5908 = vmatpush1.bf16.msra.mxu0 %v8941_v0  ;;  %5932 = vmatpush3.bf16.msra.mxu1 %v8942_v58  ;;  %v835_v0 = vrot.slane %v4338_v32, %v8944_v2  ;;  %v631_v58 = vrot.slane %v622_v4, %v8945_v7 }
 0x1af   :  { %5934 = vmatprep.subr.bf16.mxu0 %v8943_v30  ;;  %5965 = vmatprep.subr.bf16.mxu1 %v8926_v52  ;;  %v839_v30 = vrot.slane %v4338_v32, %v8945_v7  ;;  %v8948_v7 = vld [vmem:[#allocation51_spill] sm:$0xff]  ;;  %p7315_p5 = por %p7314_p4, %p7313_p3 }
 0x1b0   :  { %v7896_v62 = vadd.f32 %v835_v0, %v627_v18  ;;  %v7903_v18 = vrot.slane %v4338_v32, %v8948_v7 }
 0x1b1   :  { %p7316_p6 = pnand %p7315_p5, %p7309_p2 }
 0x1b2   :  { %8946 = vst [vmem:[#allocation54_spill] sm:$0xff] %v7896_v62  ;;  %8949 = vst [vmem:[#allocation51_spill] sm:$0xff] %v7903_v18 }
 0x224   :  { %v776_v44 = vpop.f32.mrb[10].mxu1 }
 0x225   :  { %v4874_v11 = vpop.f32.mrb[11].mxu1 }
 0x226   :  { %v7898_v11 = vadd.f32 %v839_v30, %v631_v58  ;;  %v7906_v58 = vrot.slane %v622_v4, %v8948_v7 }
 0x228   :  { %8947 = vst [vmem:[#allocation56_spill] sm:$0xff] %v7898_v11 }
 0x244   :  { %v913_v54 = vpop.f32.mrb[16].mxu0  ;;  %v984_v47 = vpop.f32.mrb[12].mxu1 }
 0x245   :  { %v7030_v41 = vadd.f32 %v7896_v62, %v913_v54  ;;  %v915_v35 = vpop.f32.mrb[17].mxu0  ;;  %v4909_v28 = vpop.f32.mrb[13].mxu1  ;;  %v985_v54 = vadd.f32 %v984_v47, %v7903_v18 }
 0x246   :  { %v7032_v17 = vadd.f32 %v7898_v11, %v915_v35 }
 0x247   :  { %v4339_v25 = vmul.f32 -1.442695, %v7030_v41  ;;  %v777_v41 = vadd.f32 %v776_v44, %v7906_v58 }
 0x248   :  { %v4340_v9 = vmul.f32 -1.442695, %v7032_v17 }
 0x249   :  { %7112 = vpow2.f32 %v4339_v25 }
 0x24a   :  { %7114 = vpow2.f32 %v4340_v9 }
 0x253   :  { %v7113_v2 = vpop.eup %7112 }
 0x254   :  { %v992_v6 = vadd.f32 1.0, %v7113_v2  ;;  %v7115_v0 = vpop.eup %7114 }
 0x255   :  { %v999_v30 = vadd.f32 1.0, %v7115_v0 }
 0x256   :  { %7116 = vrcp.f32 %v992_v6  ;;  %v8950_v6 = vld [vmem:[#allocation58_spill] sm:$0xff] }
 0x257   :  { %7118 = vrcp.f32 %v999_v30 }
 0x260   :  { %v7117_v28 = vpop.eup %7116 }
 0x261   :  { %v1002_v25 = vmul.f32 %v7117_v28, %v985_v54  ;;  %v7119_v7 = vpop.eup %7118 }
 0x262   :  { %v1005_v47 = vsub.f32 1.0, %v7119_v7  ;;  %v1007_v30 = vmul.f32 0.0, %v7119_v7 }
 0x263   :  { %v1003_v17 = vadd.f32 %v1002_v25, %v777_v41 }
 0x264   :  { %v1075_v9 = vpop.f32.mrb[2].mxu0  ;;  %v1146_v35 = vpop.f32.mrb[14].mxu1 }
 0x265   :  { %7120 = vtanh.f32 %v1003_v17  ;;  %v7002_v2 = vadd.f32 %v8950_v6, %v1075_v9  ;;  %v1077_v32 = vpop.f32.mrb[3].mxu0  ;;  %v4944_v11 = vpop.f32.mrb[15].mxu1 }
 0x266   :  { %v7004_v4 = vadd.f32 %v8951_v1, %v1077_v32  ;;  %v1147_v11 = vadd.f32 %v1146_v35, %v7724_v60  ;;  %v8954_v35 = vld [vmem:[#allocation64_spill] sm:$0xff] }
 0x267   :  { %v4341_v62 = vmul.f32 -1.442695, %v7002_v2 }
 0x268   :  { %v4342_v0 = vmul.f32 -1.442695, %v7004_v4 }
 0x269   :  { %7122 = vpow2.f32 %v4341_v62  ;;  %v8952_v62 = vld [vmem:[#allocation52_spill] sm:$0xff] }
 0x26a   :  { %7124 = vpow2.f32 %v4342_v0 }
 0x26f   :  { %v7121_v18 = vpop.eup %7120 }
 0x270   :  { %v1006_v44 = vmul.f32 %v7121_v18, %v1005_v47 }
 0x272   :  { %v7912_v54 = vadd.f32 %v1007_v30, %v1006_v44  ;;  %v8953_v44 = vld [vmem:[#allocation63_spill] sm:$0xff]  ;;  %v8955_v30 = vld [vmem:[#allocation65_spill] sm:$0xff] }
 0x273   :  { %v7123_v28 = vpop.eup %7122 }
 0x274   :  { %v1154_v41 = vadd.f32 1.0, %v7123_v28  ;;  %v7125_v25 = vpop.eup %7124  ;;  %v8958_v28 = vld [vmem:[#allocation68_spill] sm:$0xff] }
 0x275   :  { %v1161_v17 = vadd.f32 1.0, %v7125_v25  ;;  %v8960_v25 = vld [vmem:[#allocation70_spill] sm:$0xff] }
 0x276   :  { %7126 = vrcp.f32 %v1154_v41  ;;  %v8959_v41 = vld [vmem:[#allocation69_spill] sm:$0xff] }
 0x277   :  { %7128 = vrcp.f32 %v1161_v17  ;;  %v8961_v17 = vld [vmem:[#allocation71_spill] sm:$0xff] }
 0x280   :  { %v7127_v9 = vpop.eup %7126 }
 0x281   :  { %v1164_v2 = vmul.f32 %v7127_v9, %v1147_v11  ;;  %v7129_v4 = vpop.eup %7128  ;;  %v8962_v11 = vld [vmem:[#allocation72_spill] sm:$0xff]  ;;  %v8963_v9 = vld [vmem:[#allocation73_spill] sm:$0xff] }
 0x282   :  { %v1167_v1 = vsub.f32 1.0, %v7129_v4  ;;  %v1169_v7 = vmul.f32 %v7129_v4, %v7731_v39  ;;  %v8957_v39 = vld [vmem:[#allocation67_spill] sm:$0xff]  ;;  %v8967_v4 = vld [vmem:[#allocation32_spill] sm:$0xff] }
 0x283   :  { %v1165_v32 = vadd.f32 %v1164_v2, %v8952_v62  ;;  %v8964_v2 = vld [vmem:[#allocation74_spill] sm:$0xff]  ;;  %v8965_v62 = vld [vmem:[#allocation75_spill] sm:$0xff] }
 0x285   :  { %7130 = vtanh.f32 %v1165_v32  ;;  %v8966_v32 = vld [vmem:[#allocation76_spill] sm:$0xff] }
 0x28f   :  { %v7131_v0 = vpop.eup %7130 }
 0x290   :  { %v1168_v18 = vmul.f32 %v7131_v0, %v1167_v1  ;;  %v8956_v1 = vld [vmem:[#allocation66_spill] sm:$0xff]  ;;  %v8968_v0 = vld [vmem:[#allocation33_spill] sm:$0xff] }
 0x292   :  { %v7917_v47 = vadd.f32 %v1169_v7, %v1168_v18  ;;  %v8969_v18 = vld [vmem:[#allocation34_spill] sm:$0xff]  ;;  %v8970_v7 = vld [vmem:[#allocation35_spill] sm:$0xff] }
 0x294   :  { %1236 = vmatmul.mubr.f32.vlgmr.msra.gmra.mrb[18].mxu0 %v7917_v47  ;;  %4978 = vmatmul.mubr.f32.vlgmr.msra.gmra.mrb[16].mxu1 %v7917_v47 }
 0x295   :  { %5936 = vmatpush1.bf16.msra.mxu0 %v8953_v44  ;;  %5967 = vmatpush3.bf16.msra.mxu1 %v8954_v35 }
 0x296   :  { %5938 = vmatprep.subr.bf16.mxu0 %v8955_v30  ;;  %5968 = vmatprep.subr.bf16.mxu1 %v8926_v52 }
 0x297   :  { %1376 = vmatprep.mubr.f32.mxu0 %v8928_v5  ;;  %5012 = vmatprep.mubr.msk.f32.mxu1 %vm7366_vm1, %v8928_v5 }
 0x299   :  { %5940 = vmatpush1.bf16.msra.mxu0 %v8956_v1  ;;  %5970 = vmatpush3.bf16.msra.mxu1 %v8957_v39 }
 0x29a   :  { %5942 = vmatprep.subr.bf16.mxu0 %v8958_v28  ;;  %5971 = vmatprep.subr.bf16.mxu1 %v8926_v52 }
 0x29d   :  { %5944 = vmatpush1.bf16.msra.mxu0 %v8959_v41  ;;  %5973 = vmatpush3.bf16.msra.mxu1 %v8960_v25 }
 0x29e   :  { %5946 = vmatprep.subr.bf16.mxu0 %v8961_v17  ;;  %5974 = vmatprep.subr.bf16.mxu1 %v8926_v52 }
 0x2a1   :  { %5948 = vmatpush1.bf16.msra.mxu0 %v8962_v11  ;;  %5976 = vmatpush3.bf16.msra.mxu1 %v8963_v9 }
 0x2a2   :  { %5950 = vmatprep.subr.bf16.mxu0 %v8964_v2  ;;  %5977 = vmatprep.subr.bf16.mxu1 %v8926_v52 }
 0x2a5   :  { %5952 = vmatpush1.bf16.msra.mxu0 %v7772_v38  ;;  %5979 = vmatpush3.bf16.msra.mxu1 %v7774_v36 }
 0x2a6   :  { %5954 = vmatprep.subr.bf16.mxu0 %v8965_v62  ;;  %5980 = vmatprep.subr.bf16.mxu1 %v8926_v52 }
 0x2a9   :  { %5956 = vmatpush1.bf16.msra.mxu0 %v8966_v32  ;;  %5982 = vmatpush3.bf16.msra.mxu1 %v7784_v13 }
 0x2aa   :  { %5958 = vmatprep.subr.bf16.mxu0 %v7788_v20  ;;  %5983 = vmatprep.subr.bf16.mxu1 %v8926_v52 }
 0x2ad   :  { %5960 = vmatpush1.bf16.msra.mxu0 %v7792_v55  ;;  %5985 = vmatpush3.bf16.msra.mxu1 %v7794_v24 }
 0x2ae   :  { %5962 = vmatprep.subr.bf16.mxu0 %v7798_v27  ;;  %5986 = vmatprep.subr.bf16.mxu1 %v8926_v52 }
 0x2b1   :  { %5964 = vmatpush1.bf16.msra.mxu0 %v7802_v48  ;;  %5988 = vmatpush3.bf16.msra.mxu1 %v7804_v49 }
 0x2b2   :  { %5990 = vmatprep.subr.bf16.mxu0 %v7465_v12  ;;  %6021 = vmatprep.subr.bf16.mxu1 %v8926_v52 }
 0x2b4   :  { %1377 = vmatmul.mubr.f32.vlgmr.msra.gmra.mrb[18].mxu0 %v7912_v54  ;;  %5013 = vmatmul.mubr.f32.vlgmr.msra.gmra.mrb[18].mxu1 %v7912_v54 }
 0x2b5   :  { %5992 = vmatpush1.bf16.msra.mxu0 %v7467_v15  ;;  %6023 = vmatpush3.bf16.msra.mxu1 %v7501_v40 }
 0x2b6   :  { %5994 = vmatprep.subr.bf16.mxu0 %v7470_v16  ;;  %6024 = vmatprep.subr.bf16.mxu1 %v8926_v52 }
 0x2b7   :  { %1538 = vmatprep.mubr.f32.mxu0 %v8928_v5  ;;  %5047 = vmatprep.mubr.msk.f32.mxu1 %vm7366_vm1, %v8928_v5 }
 0x2b9   :  { %5996 = vmatpush1.bf16.msra.mxu0 %v7478_v22  ;;  %6026 = vmatpush3.bf16.msra.mxu1 %v7517_v51 }
 0x2ba   :  { %5998 = vmatprep.subr.bf16.mxu0 %v7481_v23  ;;  %6027 = vmatprep.subr.bf16.mxu1 %v8926_v52 }
 0x2bd   :  { %6000 = vmatpush1.bf16.msra.mxu0 %v7495_v31  ;;  %6029 = vmatpush3.bf16.msra.mxu1 %v7533_v61 }
 0x2be   :  { %6002 = vmatprep.subr.bf16.mxu0 %v7498_v33  ;;  %6030 = vmatprep.subr.bf16.mxu1 %v8926_v52 }
 0x2c1   :  { %6004 = vmatpush1.bf16.msra.mxu0 %v7508_v42  ;;  %6032 = vmatpush3.bf16.msra.mxu1 %v7549_v8 }
 0x2c2   :  { %6006 = vmatprep.subr.bf16.mxu0 %v7511_v45  ;;  %6033 = vmatprep.subr.bf16.mxu1 %v8926_v52 }
 0x2c5   :  { %6008 = vmatpush1.bf16.msra.mxu0 %v7524_v53  ;;  %6035 = vmatpush3.bf16.msra.mxu1 %v7565_v19 }
 0x2c6   :  { %6010 = vmatprep.subr.bf16.mxu0 %v7527_v56  ;;  %6036 = vmatprep.subr.bf16.mxu1 %v8926_v52 }
 0x2c9   :  { %6012 = vmatpush1.bf16.msra.mxu0 %v7540_v63  ;;  %6038 = vmatpush3.bf16.msra.mxu1 %v7579_v26  ;;  %v8988_v26 = vld [vmem:[#allocation51_spill] sm:$0xff] }
 0x2ca   :  { %6014 = vmatprep.subr.bf16.mxu0 %v7543_v3  ;;  %6039 = vmatprep.subr.bf16.mxu1 %v8926_v52 }
 0x2cd   :  { %6016 = vmatpush1.bf16.msra.mxu0 %v7556_v10  ;;  %6041 = vmatpush3.bf16.msra.mxu1 %v7588_v29 }
 0x2ce   :  { %6018 = vmatprep.subr.bf16.mxu0 %v7559_v14  ;;  %6042 = vmatprep.subr.bf16.mxu1 %v8926_v52 }
 0x2d1   :  { %6020 = vmatpush1.bf16.msra.mxu0 %v7572_v21  ;;  %6044 = vmatpush3.bf16.msra.mxu1 %v7595_v34  ;;  %v8986_v34 = vld [vmem:[#allocation54_spill] sm:$0xff] }
 0x2d2   :  { %6046 = vmatprep.subr.bf16.mxu0 %v7603_v37  ;;  %6077 = vmatprep.subr.bf16.mxu1 %v8926_v52 }
 0x2d4   :  { %1539 = vmatmul.mubr.f32.vlgmr.msra.gmra.mrb[4].mxu0 %v7917_v47  ;;  %5048 = vmatmul.mubr.f32.vlgmr.msra.gmra.mrb[20].mxu1 %v7917_v47 }
 0x2d5   :  { %6048 = vmatpush1.bf16.msra.mxu0 %v7605_v43  ;;  %6079 = vmatpush3.bf16.msra.mxu1 %v7608_v46  ;;  %v8972_v46 = vld [vmem:[#allocation37_spill] sm:$0xff]  ;;  %v8973_v43 = vld [vmem:[#allocation38_spill] sm:$0xff] }
 0x2d6   :  { %6050 = vmatprep.subr.bf16.mxu0 %v7612_v50  ;;  %6080 = vmatprep.subr.bf16.mxu1 %v8926_v52  ;;  %v8971_v50 = vld [vmem:[#allocation36_spill] sm:$0xff] }
 0x2d7   :  { %1700 = vmatprep.mubr.f32.mxu0 %v8928_v5  ;;  %5082 = vmatprep.mubr.msk.f32.mxu1 %vm7366_vm1, %v8928_v5 }
 0x2d9   :  { %6052 = vmatpush1.bf16.msra.mxu0 %v7615_v57  ;;  %6082 = vmatpush3.bf16.msra.mxu1 %v7618_v59  ;;  %v8974_v59 = vld [vmem:[#allocation39_spill] sm:$0xff]  ;;  %v8976_v57 = vld [vmem:[#allocation41_spill] sm:$0xff] }
 0x2da   :  { %6054 = vmatprep.subr.bf16.mxu0 %v8967_v4  ;;  %6083 = vmatprep.subr.bf16.mxu1 %v8926_v52  ;;  %v8975_v4 = vld [vmem:[#allocation40_spill] sm:$0xff] }
 0x2dd   :  { %6056 = vmatpush1.bf16.msra.mxu0 %v8968_v0  ;;  %6085 = vmatpush3.bf16.msra.mxu1 %v8969_v18  ;;  %v8977_v18 = vld [vmem:[#allocation42_spill] sm:$0xff]  ;;  %v8979_v0 = vld [vmem:[#allocation44_spill] sm:$0xff] }
 0x2de   :  { %6058 = vmatprep.subr.bf16.mxu0 %v8970_v7  ;;  %6086 = vmatprep.subr.bf16.mxu1 %v8926_v52  ;;  %v8978_v7 = vld [vmem:[#allocation43_spill] sm:$0xff] }
 0x2e1   :  { %6060 = vmatpush1.bf16.msra.mxu0 %v8971_v50  ;;  %6088 = vmatpush3.bf16.msra.mxu1 %v8972_v46  ;;  %v8980_v46 = vld [vmem:[#allocation45_spill] sm:$0xff]  ;;  %v8982_v50 = vld [vmem:[#allocation47_spill] sm:$0xff] }
 0x2e2   :  { %6062 = vmatprep.subr.bf16.mxu0 %v8973_v43  ;;  %6089 = vmatprep.subr.bf16.mxu1 %v8926_v52  ;;  %v8981_v43 = vld [vmem:[#allocation46_spill] sm:$0xff] }
 0x2e5   :  { %6064 = vmatpush1.bf16.msra.mxu0 %v8974_v59  ;;  %6091 = vmatpush3.bf16.msra.mxu1 %v8975_v4  ;;  %v8983_v4 = vld [vmem:[#allocation48_spill] sm:$0xff]  ;;  %v8985_v59 = vld [vmem:[#allocation50_spill] sm:$0xff] }
 0x2e6   :  { %6066 = vmatprep.subr.bf16.mxu0 %v8976_v57  ;;  %6092 = vmatprep.subr.bf16.mxu1 %v8926_v52  ;;  %v8984_v57 = vld [vmem:[#allocation49_spill] sm:$0xff] }
 0x2e9   :  { %6068 = vmatpush1.bf16.msra.mxu0 %v8977_v18  ;;  %6094 = vmatpush3.bf16.msra.mxu1 %v8978_v7 }
 0x2ea   :  { %6070 = vmatprep.subr.bf16.mxu0 %v8979_v0  ;;  %6095 = vmatprep.subr.bf16.mxu1 %v8926_v52 }
 0x2ed   :  { %6072 = vmatpush1.bf16.msra.mxu0 %v8980_v46  ;;  %6097 = vmatpush3.bf16.msra.mxu1 %v8981_v43 }
 0x2ee   :  { %6074 = vmatprep.subr.bf16.mxu0 %v8982_v50  ;;  %6098 = vmatprep.subr.bf16.mxu1 %v8926_v52  ;;  %v8987_v50 = vld [vmem:[#allocation56_spill] sm:$0xff] }
 0x2f1   :  { %6076 = vmatpush1.bf16.msra.mxu0 %v8983_v4  ;;  %6100 = vmatpush3.bf16.msra.mxu1 %v8984_v57 }
 0x2f2   :  { %6102 = vmatprep.subr.bf16.mxu0 %v8985_v59  ;;  %6133 = vmatprep.subr.bf16.mxu1 %v8926_v52 }
 0x367   :  { %v1308_v7 = vpop.f32.mrb[16].mxu1 }
 0x368   :  { %v4979_v0 = vpop.f32.mrb[17].mxu1  ;;  %v1309_v56 = vadd.f32 %v1308_v7, %v7906_v58 }
 0x387   :  { %v1378_v18 = vpop.f32.mrb[18].mxu0  ;;  %v1449_v37 = vpop.f32.mrb[18].mxu1 }
 0x388   :  { %v7034_v46 = vadd.f32 %v8986_v34, %v1378_v18  ;;  %v1380_v21 = vpop.f32.mrb[19].mxu0  ;;  %v5014_v43 = vpop.f32.mrb[19].mxu1  ;;  %v1450_v63 = vadd.f32 %v1449_v37, %v8988_v26 }
 0x389   :  { %v7036_v29 = vadd.f32 %v8987_v50, %v1380_v21 }
 0x38a   :  { %v4343_v14 = vmul.f32 -1.442695, %v7034_v46 }
 0x38b   :  { %v4344_v10 = vmul.f32 -1.442695, %v7036_v29 }
 0x38c   :  { %7132 = vpow2.f32 %v4343_v14 }
 0x38d   :  { %7134 = vpow2.f32 %v4344_v10 }
 0x396   :  { %v7133_v4 = vpop.eup %7132 }
 0x397   :  { %v1457_v57 = vadd.f32 1.0, %v7133_v4  ;;  %v7135_v59 = vpop.eup %7134  ;;  %v8989_v4 = vld [vmem:[#allocation60_spill] sm:$0xff] }
 0x398   :  { %v1464_v3 = vadd.f32 1.0, %v7135_v59 }
 0x399   :  { %7136 = vrcp.f32 %v1457_v57 }
 0x39a   :  { %7138 = vrcp.f32 %v1464_v3 }
 0x3a3   :  { %v7137_v0 = vpop.eup %7136 }
 0x3a4   :  { %v1467_v19 = vmul.f32 %v7137_v0, %v1450_v63  ;;  %v7139_v59 = vpop.eup %7138 }
 0x3a5   :  { %v1470_v37 = vsub.f32 1.0, %v7139_v59  ;;  %v1472_v63 = vmul.f32 %v7139_v59, %v7912_v54 }
 0x3a6   :  { %v1468_v18 = vadd.f32 %v1467_v19, %v1309_v56 }
 0x3a7   :  { %v1540_v43 = vpop.f32.mrb[4].mxu0  ;;  %v1611_v46 = vpop.f32.mrb[20].mxu1 }
 0x3a8   :  { %7140 = vtanh.f32 %v1468_v18  ;;  %v7006_v14 = vadd.f32 %v8950_v6, %v1540_v43  ;;  %v1542_v21 = vpop.f32.mrb[5].mxu0  ;;  %v5049_v10 = vpop.f32.mrb[21].mxu1  ;;  %v1612_v43 = vadd.f32 %v1611_v46, %v7724_v60  ;;  %v8992_v46 = vld [vmem:[#allocation16_spill] sm:$0xff] }
 0x3a9   :  { %v7008_v57 = vadd.f32 %v8989_v4, %v1542_v21  ;;  %v8990_v10 = vld [vmem:[#allocation55_spill] sm:$0xff] }
 0x3aa   :  { %v4345_v29 = vmul.f32 -1.442695, %v7006_v14 }
 0x3ab   :  { %v4346_v50 = vmul.f32 -1.442695, %v7008_v57 }
 0x3ac   :  { %7142 = vpow2.f32 %v4345_v29 }
 0x3ad   :  { %7144 = vpow2.f32 %v4346_v50 }
 0x3b2   :  { %v7141_v26 = vpop.eup %7140 }
 0x3b3   :  { %v1471_v7 = vmul.f32 %v7141_v26, %v1470_v37 }
 0x3b5   :  { %v8037_v56 = vadd.f32 %v1472_v63, %v1471_v7  ;;  %v8993_v7 = vld [vmem:[#allocation17_spill] sm:$0xff]  ;;  %v8994_v63 = vld [vmem:[#allocation23_spill] sm:$0xff] }
 0x3b6   :  { %v7143_v3 = vpop.eup %7142 }
 0x3b7   :  { %v1619_v19 = vadd.f32 1.0, %v7143_v3  ;;  %v7145_v0 = vpop.eup %7144  ;;  %v8995_v3 = vld [vmem:[#allocation18_spill] sm:$0xff] }
 0x3b8   :  { %v1626_v18 = vadd.f32 1.0, %v7145_v0  ;;  %v8997_v0 = vld [vmem:[#allocation24_spill] sm:$0xff] }
 0x3b9   :  { %7146 = vrcp.f32 %v1619_v19  ;;  %v8996_v19 = vld [vmem:[#allocation19_spill] sm:$0xff] }
 0x3ba   :  { %7148 = vrcp.f32 %v1626_v18  ;;  %v8998_v18 = vld [vmem:[#allocation20_spill] sm:$0xff] }
 0x3c3   :  { %v7147_v14 = vpop.eup %7146 }
 0x3c4   :  { %v1629_v21 = vmul.f32 %v7147_v14, %v1612_v43  ;;  %v7149_v57 = vpop.eup %7148  ;;  %v8999_v43 = vld [vmem:[#allocation22_spill] sm:$0xff]  ;;  %v9000_v14 = vld [vmem:[#allocation25_spill] sm:$0xff] }
 0x3c5   :  { %v1632_v50 = vsub.f32 1.0, %v7149_v57  ;;  %v1634_v54 = vmul.f32 %v7149_v57, %v7917_v47  ;;  %v8991_v47 = vld [vmem:[#allocation21_spill] sm:$0xff] }
 0x3c6   :  { %v1630_v29 = vadd.f32 %v1629_v21, %v8990_v10  ;;  %v9001_v21 = vld [vmem:[#allocation26_spill] sm:$0xff]  ;;  %v9002_v10 = vld [vmem:[#allocation27_spill] sm:$0xff]  ;;  %v9004_v57 = vld [vmem:[#allocation29_spill] sm:$0xff] }
 0x3c8   :  { %7150 = vtanh.f32 %v1630_v29  ;;  %v9003_v29 = vld [vmem:[#allocation28_spill] sm:$0xff] }
 0x3d2   :  { %v7151_v26 = vpop.eup %7150 }
 0x3d3   :  { %v1633_v37 = vmul.f32 %v7151_v26, %v1632_v50  ;;  %v9005_v50 = vld [vmem:[#allocation30_spill] sm:$0xff]  ;;  %v9006_v26 = vld [vmem:[#allocation31_spill] sm:$0xff] }
 0x3d5   :  { %v8042_v59 = vadd.f32 %v1634_v54, %v1633_v37  ;;  %v9007_v37 = vld [vmem:[#allocation32_spill] sm:$0xff]  ;;  %v9008_v54 = vld [vmem:[#allocation33_spill] sm:$0xff] }
 0x3d7   :  { %1701 = vmatmul.mubr.f32.vlgmr.msra.gmra.mrb[20].mxu0 %v8042_v59  ;;  %5083 = vmatmul.mubr.f32.vlgmr.msra.gmra.mrb[22].mxu1 %v8042_v59 }
 0x3d8   :  { %6104 = vmatpush1.bf16.msra.mxu0 %v8953_v44  ;;  %6135 = vmatpush3.bf16.msra.mxu1 %v8954_v35 }
 0x3d9   :  { %6106 = vmatprep.subr.bf16.mxu0 %v8955_v30  ;;  %6136 = vmatprep.subr.bf16.mxu1 %v8926_v52 }
 0x3da   :  { %1841 = vmatprep.mubr.f32.mxu0 %v8928_v5  ;;  %5117 = vmatprep.mubr.msk.f32.mxu1 %vm7366_vm1, %v8928_v5 }
 0x3dc   :  { %6108 = vmatpush1.bf16.msra.mxu0 %v8956_v1  ;;  %6138 = vmatpush3.bf16.msra.mxu1 %v8957_v39 }
 0x3dd   :  { %6110 = vmatprep.subr.bf16.mxu0 %v8958_v28  ;;  %6139 = vmatprep.subr.bf16.mxu1 %v8926_v52 }
 0x3e0   :  { %6112 = vmatpush1.bf16.msra.mxu0 %v8959_v41  ;;  %6141 = vmatpush3.bf16.msra.mxu1 %v8960_v25 }
 0x3e1   :  { %6114 = vmatprep.subr.bf16.mxu0 %v8961_v17  ;;  %6142 = vmatprep.subr.bf16.mxu1 %v8926_v52 }
 0x3e4   :  { %6116 = vmatpush1.bf16.msra.mxu0 %v8962_v11  ;;  %6144 = vmatpush3.bf16.msra.mxu1 %v8963_v9 }
 0x3e5   :  { %6118 = vmatprep.subr.bf16.mxu0 %v8964_v2  ;;  %6145 = vmatprep.subr.bf16.mxu1 %v8926_v52 }
 0x3e8   :  { %6120 = vmatpush1.bf16.msra.mxu0 %v7772_v38  ;;  %6147 = vmatpush3.bf16.msra.mxu1 %v7774_v36 }
 0x3e9   :  { %6122 = vmatprep.subr.bf16.mxu0 %v8965_v62  ;;  %6148 = vmatprep.subr.bf16.mxu1 %v8926_v52 }
 0x3ec   :  { %6124 = vmatpush1.bf16.msra.mxu0 %v8966_v32  ;;  %6150 = vmatpush3.bf16.msra.mxu1 %v7784_v13 }
 0x3ed   :  { %6126 = vmatprep.subr.bf16.mxu0 %v7788_v20  ;;  %6151 = vmatprep.subr.bf16.mxu1 %v8926_v52 }
 0x3f0   :  { %6128 = vmatpush1.bf16.msra.mxu0 %v7792_v55  ;;  %6153 = vmatpush3.bf16.msra.mxu1 %v7794_v24 }
 0x3f1   :  { %6130 = vmatprep.subr.bf16.mxu0 %v7798_v27  ;;  %6154 = vmatprep.subr.bf16.mxu1 %v8926_v52 }
 0x3f4   :  { %6132 = vmatpush1.bf16.msra.mxu0 %v7802_v48  ;;  %6156 = vmatpush3.bf16.msra.mxu1 %v7804_v49 }
 0x3f5   :  { %6158 = vmatprep.subr.bf16.mxu0 %v7465_v12  ;;  %6189 = vmatprep.subr.bf16.mxu1 %v8926_v52 }
 0x3f7   :  { %1842 = vmatmul.mubr.f32.vlgmr.msra.gmra.mrb[20].mxu0 %v8037_v56  ;;  %5118 = vmatmul.mubr.f32.vlgmr.msra.gmra.mrb[24].mxu1 %v8037_v56 }
 0x3f8   :  { %6160 = vmatpush1.bf16.msra.mxu0 %v7467_v15  ;;  %6191 = vmatpush3.bf16.msra.mxu1 %v7501_v40 }
 0x3f9   :  { %6162 = vmatprep.subr.bf16.mxu0 %v7470_v16  ;;  %6192 = vmatprep.subr.bf16.mxu1 %v8926_v52 }
 0x3fa   :  { %2003 = vmatprep.mubr.f32.mxu0 %v8928_v5  ;;  %5152 = vmatprep.mubr.msk.f32.mxu1 %vm7366_vm1, %v8928_v5 }
 0x3fc   :  { %6164 = vmatpush1.bf16.msra.mxu0 %v7478_v22  ;;  %6194 = vmatpush3.bf16.msra.mxu1 %v7517_v51 }
 0x3fd   :  { %6166 = vmatprep.subr.bf16.mxu0 %v7481_v23  ;;  %6195 = vmatprep.subr.bf16.mxu1 %v8926_v52 }
 0x400   :  { %6168 = vmatpush1.bf16.msra.mxu0 %v7495_v31  ;;  %6197 = vmatpush3.bf16.msra.mxu1 %v7533_v61 }
 0x401   :  { %6170 = vmatprep.subr.bf16.mxu0 %v7498_v33  ;;  %6198 = vmatprep.subr.bf16.mxu1 %v8926_v52 }
 0x404   :  { %6172 = vmatpush1.bf16.msra.mxu0 %v7508_v42  ;;  %6200 = vmatpush3.bf16.msra.mxu1 %v7549_v8 }
 0x405   :  { %6174 = vmatprep.subr.bf16.mxu0 %v7511_v45  ;;  %6201 = vmatprep.subr.bf16.mxu1 %v8926_v52 }
 0x408   :  { %6176 = vmatpush1.bf16.msra.mxu0 %v7524_v53  ;;  %6203 = vmatpush3.bf16.msra.mxu1 %v8991_v47 }
 0x409   :  { %6178 = vmatprep.subr.bf16.mxu0 %v8992_v46  ;;  %6204 = vmatprep.subr.bf16.mxu1 %v8926_v52 }
 0x40c   :  { %6180 = vmatpush1.bf16.msra.mxu0 %v8993_v7  ;;  %6206 = vmatpush3.bf16.msra.mxu1 %v8994_v63  ;;  %v9027_v7 = vld [vmem:[#allocation51_spill] sm:$0xff] }
 0x40d   :  { %6182 = vmatprep.subr.bf16.mxu0 %v8995_v3  ;;  %6207 = vmatprep.subr.bf16.mxu1 %v8926_v52 }
 0x410   :  { %6184 = vmatpush1.bf16.msra.mxu0 %v8996_v19  ;;  %6209 = vmatpush3.bf16.msra.mxu1 %v8997_v0 }
 0x411   :  { %6186 = vmatprep.subr.bf16.mxu0 %v8998_v18  ;;  %6210 = vmatprep.subr.bf16.mxu1 %v8926_v52 }
 0x414   :  { %6188 = vmatpush1.bf16.msra.mxu0 %v8999_v43  ;;  %6212 = vmatpush3.bf16.msra.mxu1 %v9000_v14  ;;  %v9013_v14 = vld [vmem:[#allocation38_spill] sm:$0xff] }
 0x415   :  { %6214 = vmatprep.subr.bf16.mxu0 %v9001_v21  ;;  %6245 = vmatprep.subr.bf16.mxu1 %v8926_v52  ;;  %v9012_v21 = vld [vmem:[#allocation37_spill] sm:$0xff] }
 0x417   :  { %2004 = vmatmul.mubr.f32.vlgmr.msra.gmra.mrb[6].mxu0 %v8042_v59  ;;  %5153 = vmatmul.mubr.f32.vlgmr.msra.gmra.mrb[26].mxu1 %v8042_v59 }
 0x418   :  { %6216 = vmatpush1.bf16.msra.mxu0 %v9002_v10  ;;  %6247 = vmatpush3.bf16.msra.mxu1 %v9003_v29  ;;  %v9009_v29 = vld [vmem:[#allocation34_spill] sm:$0xff]  ;;  %v9011_v10 = vld [vmem:[#allocation36_spill] sm:$0xff] }
 0x419   :  { %6218 = vmatprep.subr.bf16.mxu0 %v9004_v57  ;;  %6248 = vmatprep.subr.bf16.mxu1 %v8926_v52  ;;  %v9010_v57 = vld [vmem:[#allocation35_spill] sm:$0xff] }
 0x41a   :  { %2165 = vmatprep.mubr.f32.mxu0 %v8928_v5  ;;  %5187 = vmatprep.mubr.msk.f32.mxu1 %vm7366_vm1, %v8928_v5 }
 0x41c   :  { %6220 = vmatpush1.bf16.msra.mxu0 %v9005_v50  ;;  %6250 = vmatpush3.bf16.msra.mxu1 %v9006_v26  ;;  %v9014_v26 = vld [vmem:[#allocation39_spill] sm:$0xff]  ;;  %v9016_v50 = vld [vmem:[#allocation41_spill] sm:$0xff] }
 0x41d   :  { %6222 = vmatprep.subr.bf16.mxu0 %v9007_v37  ;;  %6251 = vmatprep.subr.bf16.mxu1 %v8926_v52  ;;  %v9015_v37 = vld [vmem:[#allocation40_spill] sm:$0xff] }
 0x420   :  { %6224 = vmatpush1.bf16.msra.mxu0 %v9008_v54  ;;  %6253 = vmatpush3.bf16.msra.mxu1 %v9009_v29  ;;  %v9017_v29 = vld [vmem:[#allocation42_spill] sm:$0xff]  ;;  %v9019_v54 = vld [vmem:[#allocation44_spill] sm:$0xff] }
 0x421   :  { %6226 = vmatprep.subr.bf16.mxu0 %v9010_v57  ;;  %6254 = vmatprep.subr.bf16.mxu1 %v8926_v52  ;;  %v9018_v57 = vld [vmem:[#allocation43_spill] sm:$0xff] }
 0x424   :  { %6228 = vmatpush1.bf16.msra.mxu0 %v9011_v10  ;;  %6256 = vmatpush3.bf16.msra.mxu1 %v9012_v21  ;;  %v9020_v21 = vld [vmem:[#allocation45_spill] sm:$0xff]  ;;  %v9022_v10 = vld [vmem:[#allocation47_spill] sm:$0xff] }
 0x425   :  { %6230 = vmatprep.subr.bf16.mxu0 %v9013_v14  ;;  %6257 = vmatprep.subr.bf16.mxu1 %v8926_v52  ;;  %v9021_v14 = vld [vmem:[#allocation46_spill] sm:$0xff] }
 0x428   :  { %6232 = vmatpush1.bf16.msra.mxu0 %v9014_v26  ;;  %6259 = vmatpush3.bf16.msra.mxu1 %v9015_v37  ;;  %v9023_v37 = vld [vmem:[#allocation48_spill] sm:$0xff]  ;;  %v9025_v26 = vld [vmem:[#allocation50_spill] sm:$0xff] }
 0x429   :  { %6234 = vmatprep.subr.bf16.mxu0 %v9016_v50  ;;  %6260 = vmatprep.subr.bf16.mxu1 %v8926_v52  ;;  %v9024_v50 = vld [vmem:[#allocation49_spill] sm:$0xff] }
 0x42c   :  { %6236 = vmatpush1.bf16.msra.mxu0 %v9017_v29  ;;  %6262 = vmatpush3.bf16.msra.mxu1 %v9018_v57 }
 0x42d   :  { %6238 = vmatprep.subr.bf16.mxu0 %v9019_v54  ;;  %6263 = vmatprep.subr.bf16.mxu1 %v8926_v52 }
 0x430   :  { %6240 = vmatpush1.bf16.msra.mxu0 %v9020_v21  ;;  %6265 = vmatpush3.bf16.msra.mxu1 %v9021_v14 }
 0x431   :  { %6242 = vmatprep.subr.bf16.mxu0 %v9022_v10  ;;  %6266 = vmatprep.subr.bf16.mxu1 %v8926_v52  ;;  %v9026_v10 = vld [vmem:[#allocation56_spill] sm:$0xff] }
 0x434   :  { %6244 = vmatpush1.bf16.msra.mxu0 %v9023_v37  ;;  %6268 = vmatpush3.bf16.msra.mxu1 %v9024_v50 }
 0x435   :  { %6270 = vmatprep.subr.bf16.mxu0 %v9025_v26  ;;  %6301 = vmatprep.subr.bf16.mxu1 %v8926_v52 }
 0x4aa   :  { %v1773_v57 = vpop.f32.mrb[22].mxu1 }
 0x4ab   :  { %v5084_v54 = vpop.f32.mrb[23].mxu1  ;;  %v1774_v47 = vadd.f32 %v1773_v57, %v7906_v58 }
 0x4ca   :  { %v1843_v29 = vpop.f32.mrb[20].mxu0  ;;  %v1914_v43 = vpop.f32.mrb[24].mxu1 }
 0x4cb   :  { %v7038_v21 = vadd.f32 %v8986_v34, %v1843_v29  ;;  %v1845_v18 = vpop.f32.mrb[21].mxu0  ;;  %v5119_v14 = vpop.f32.mrb[25].mxu1  ;;  %v1915_v46 = vadd.f32 %v1914_v43, %v9027_v7 }
 0x4cc   :  { %v7040_v19 = vadd.f32 %v9026_v10, %v1845_v18 }
 0x4cd   :  { %v4347_v0 = vmul.f32 -1.442695, %v7038_v21 }
 0x4ce   :  { %v4348_v3 = vmul.f32 -1.442695, %v7040_v19 }
 0x4cf   :  { %7152 = vpow2.f32 %v4347_v0 }
 0x4d0   :  { %7154 = vpow2.f32 %v4348_v3 }
 0x4d9   :  { %v7153_v37 = vpop.eup %7152 }
 0x4da   :  { %v1922_v50 = vadd.f32 1.0, %v7153_v37  ;;  %v7155_v26 = vpop.eup %7154 }
 0x4db   :  { %v1929_v63 = vadd.f32 1.0, %v7155_v26 }
 0x4dc   :  { %7156 = vrcp.f32 %v1922_v50 }
 0x4dd   :  { %7158 = vrcp.f32 %v1929_v63 }
 0x4e6   :  { %v7157_v54 = vpop.eup %7156 }
 0x4e7   :  { %v1932_v53 = vmul.f32 %v7157_v54, %v1915_v46  ;;  %v7159_v26 = vpop.eup %7158 }
 0x4e8   :  { %v1935_v43 = vsub.f32 1.0, %v7159_v26  ;;  %v1937_v46 = vmul.f32 %v7159_v26, %v8037_v56 }
 0x4e9   :  { %v1933_v29 = vadd.f32 %v1932_v53, %v1774_v47 }
 0x4ea   :  { %v2005_v14 = vpop.f32.mrb[6].mxu0  ;;  %v2076_v21 = vpop.f32.mrb[26].mxu1 }
 0x4eb   :  { %7160 = vtanh.f32 %v1933_v29  ;;  %v7010_v0 = vadd.f32 %v8950_v6, %v2005_v14  ;;  %v2007_v19 = vpop.f32.mrb[7].mxu0  ;;  %v5154_v3 = vpop.f32.mrb[27].mxu1  ;;  %v2077_v14 = vadd.f32 %v2076_v21, %v7724_v60  ;;  %v9030_v21 = vld [vmem:[#allocation21_spill] sm:$0xff] }
 0x4ec   :  { %v7012_v50 = vadd.f32 %v8989_v4, %v2007_v19  ;;  %v9028_v3 = vld [vmem:[#allocation53_spill] sm:$0xff] }
 0x4ed   :  { %v4349_v18 = vmul.f32 -1.442695, %v7010_v0 }
 0x4ee   :  { %v4350_v37 = vmul.f32 -1.442695, %v7012_v50 }
 0x4ef   :  { %7162 = vpow2.f32 %v4349_v18 }
 0x4f0   :  { %7164 = vpow2.f32 %v4350_v37 }
 0x4f5   :  { %v7161_v7 = vpop.eup %7160 }
 0x4f6   :  { %v1936_v57 = vmul.f32 %v7161_v7, %v1935_v43 }
 0x4f8   :  { %v8162_v53 = vadd.f32 %v1937_v46, %v1936_v57  ;;  %v9031_v57 = vld [vmem:[#allocation16_spill] sm:$0xff]  ;;  %v9032_v46 = vld [vmem:[#allocation17_spill] sm:$0xff] }
 0x4f9   :  { %v7163_v47 = vpop.eup %7162 }
 0x4fa   :  { %v2084_v63 = vadd.f32 1.0, %v7163_v47  ;;  %v7165_v54 = vpop.eup %7164  ;;  %v9033_v47 = vld [vmem:[#allocation23_spill] sm:$0xff] }
 0x4fb   :  { %v2091_v29 = vadd.f32 1.0, %v7165_v54  ;;  %v9035_v54 = vld [vmem:[#allocation19_spill] sm:$0xff] }
 0x4fc   :  { %7166 = vrcp.f32 %v2084_v63  ;;  %v9034_v63 = vld [vmem:[#allocation18_spill] sm:$0xff] }
 0x4fd   :  { %7168 = vrcp.f32 %v2091_v29  ;;  %v9036_v29 = vld [vmem:[#allocation24_spill] sm:$0xff] }
 0x506   :  { %v7167_v0 = vpop.eup %7166 }
 0x507   :  { %v2094_v19 = vmul.f32 %v7167_v0, %v2077_v14  ;;  %v7169_v50 = vpop.eup %7168  ;;  %v9037_v14 = vld [vmem:[#allocation20_spill] sm:$0xff]  ;;  %v9038_v0 = vld [vmem:[#allocation22_spill] sm:$0xff] }
 0x508   :  { %v2097_v37 = vsub.f32 1.0, %v7169_v50  ;;  %v2099_v56 = vmul.f32 %v7169_v50, %v8042_v59  ;;  %v9029_v59 = vld [vmem:[#allocation15_spill] sm:$0xff]  ;;  %v9042_v50 = vld [vmem:[#allocation28_spill] sm:$0xff] }
 0x509   :  { %v2095_v18 = vadd.f32 %v2094_v19, %v9028_v3  ;;  %v9039_v19 = vld [vmem:[#allocation25_spill] sm:$0xff]  ;;  %v9040_v3 = vld [vmem:[#allocation26_spill] sm:$0xff] }
 0x50b   :  { %7170 = vtanh.f32 %v2095_v18  ;;  %v9041_v18 = vld [vmem:[#allocation27_spill] sm:$0xff] }
 0x515   :  { %v7171_v7 = vpop.eup %7170 }
 0x516   :  { %v2098_v43 = vmul.f32 %v7171_v7, %v2097_v37  ;;  %v9043_v37 = vld [vmem:[#allocation29_spill] sm:$0xff]  ;;  %v9044_v7 = vld [vmem:[#allocation30_spill] sm:$0xff] }
 0x518   :  { %v8167_v26 = vadd.f32 %v2099_v56, %v2098_v43  ;;  %v9045_v43 = vld [vmem:[#allocation31_spill] sm:$0xff]  ;;  %v9046_v56 = vld [vmem:[#allocation32_spill] sm:$0xff] }
 0x51a   :  { %2166 = vmatmul.mubr.f32.vlgmr.msra.gmra.mrb[22].mxu0 %v8167_v26  ;;  %5188 = vmatmul.mubr.f32.vlgmr.msra.gmra.mrb[28].mxu1 %v8167_v26 }
 0x51b   :  { %6272 = vmatpush1.bf16.msra.mxu0 %v8953_v44  ;;  %6303 = vmatpush3.bf16.msra.mxu1 %v8954_v35 }
 0x51c   :  { %6274 = vmatprep.subr.bf16.mxu0 %v8955_v30  ;;  %6304 = vmatprep.subr.bf16.mxu1 %v8926_v52 }
 0x51d   :  { %2306 = vmatprep.mubr.f32.mxu0 %v8928_v5  ;;  %5222 = vmatprep.mubr.msk.f32.mxu1 %vm7366_vm1, %v8928_v5 }
 0x51f   :  { %6276 = vmatpush1.bf16.msra.mxu0 %v8956_v1  ;;  %6306 = vmatpush3.bf16.msra.mxu1 %v8957_v39 }
 0x520   :  { %6278 = vmatprep.subr.bf16.mxu0 %v8958_v28  ;;  %6307 = vmatprep.subr.bf16.mxu1 %v8926_v52 }
 0x523   :  { %6280 = vmatpush1.bf16.msra.mxu0 %v8959_v41  ;;  %6309 = vmatpush3.bf16.msra.mxu1 %v8960_v25 }
 0x524   :  { %6282 = vmatprep.subr.bf16.mxu0 %v8961_v17  ;;  %6310 = vmatprep.subr.bf16.mxu1 %v8926_v52 }
 0x527   :  { %6284 = vmatpush1.bf16.msra.mxu0 %v8962_v11  ;;  %6312 = vmatpush3.bf16.msra.mxu1 %v8963_v9 }
 0x528   :  { %6286 = vmatprep.subr.bf16.mxu0 %v8964_v2  ;;  %6313 = vmatprep.subr.bf16.mxu1 %v8926_v52 }
 0x52b   :  { %6288 = vmatpush1.bf16.msra.mxu0 %v7772_v38  ;;  %6315 = vmatpush3.bf16.msra.mxu1 %v7774_v36 }
 0x52c   :  { %6290 = vmatprep.subr.bf16.mxu0 %v8965_v62  ;;  %6316 = vmatprep.subr.bf16.mxu1 %v8926_v52 }
 0x52f   :  { %6292 = vmatpush1.bf16.msra.mxu0 %v8966_v32  ;;  %6318 = vmatpush3.bf16.msra.mxu1 %v7784_v13 }
 0x530   :  { %6294 = vmatprep.subr.bf16.mxu0 %v7788_v20  ;;  %6319 = vmatprep.subr.bf16.mxu1 %v8926_v52 }
 0x533   :  { %6296 = vmatpush1.bf16.msra.mxu0 %v7792_v55  ;;  %6321 = vmatpush3.bf16.msra.mxu1 %v7794_v24 }
 0x534   :  { %6298 = vmatprep.subr.bf16.mxu0 %v7798_v27  ;;  %6322 = vmatprep.subr.bf16.mxu1 %v8926_v52 }
 0x537   :  { %6300 = vmatpush1.bf16.msra.mxu0 %v7802_v48  ;;  %6324 = vmatpush3.bf16.msra.mxu1 %v7804_v49 }
 0x538   :  { %6326 = vmatprep.subr.bf16.mxu0 %v7465_v12  ;;  %6357 = vmatprep.subr.bf16.mxu1 %v8926_v52 }
 0x53a   :  { %2307 = vmatmul.mubr.f32.vlgmr.msra.gmra.mrb[22].mxu0 %v8162_v53  ;;  %5223 = vmatmul.mubr.f32.vlgmr.msra.gmra.mrb[30].mxu1 %v8162_v53 }
 0x53b   :  { %6328 = vmatpush1.bf16.msra.mxu0 %v7467_v15  ;;  %6359 = vmatpush3.bf16.msra.mxu1 %v7501_v40 }
 0x53c   :  { %6330 = vmatprep.subr.bf16.mxu0 %v7470_v16  ;;  %6360 = vmatprep.subr.bf16.mxu1 %v8926_v52 }
 0x53d   :  { %2468 = vmatprep.mubr.f32.mxu0 %v8928_v5  ;;  %5257 = vmatprep.mubr.msk.f32.mxu1 %vm7366_vm1, %v8928_v5 }
 0x53f   :  { %6332 = vmatpush1.bf16.msra.mxu0 %v7478_v22  ;;  %6362 = vmatpush3.bf16.msra.mxu1 %v7517_v51 }
 0x540   :  { %6334 = vmatprep.subr.bf16.mxu0 %v7481_v23  ;;  %6363 = vmatprep.subr.bf16.mxu1 %v8926_v52 }
 0x543   :  { %6336 = vmatpush1.bf16.msra.mxu0 %v7495_v31  ;;  %6365 = vmatpush3.bf16.msra.mxu1 %v7533_v61 }
 0x544   :  { %6338 = vmatprep.subr.bf16.mxu0 %v7498_v33  ;;  %6366 = vmatprep.subr.bf16.mxu1 %v8926_v52 }
 0x547   :  { %6340 = vmatpush1.bf16.msra.mxu0 %v7508_v42  ;;  %6368 = vmatpush3.bf16.msra.mxu1 %v7549_v8 }
 0x548   :  { %6342 = vmatprep.subr.bf16.mxu0 %v7511_v45  ;;  %6369 = vmatprep.subr.bf16.mxu1 %v8926_v52 }
 0x54b   :  { %6344 = vmatpush1.bf16.msra.mxu0 %v9029_v59  ;;  %6371 = vmatpush3.bf16.msra.mxu1 %v9030_v21 }
 0x54c   :  { %6346 = vmatprep.subr.bf16.mxu0 %v9031_v57  ;;  %6372 = vmatprep.subr.bf16.mxu1 %v8926_v52 }
 0x54f   :  { %6348 = vmatpush1.bf16.msra.mxu0 %v9032_v46  ;;  %6374 = vmatpush3.bf16.msra.mxu1 %v9033_v47  ;;  %v9065_v46 = vld [vmem:[#allocation51_spill] sm:$0xff] }
 0x550   :  { %6350 = vmatprep.subr.bf16.mxu0 %v9034_v63  ;;  %6375 = vmatprep.subr.bf16.mxu1 %v8926_v52 }
 0x553   :  { %6352 = vmatpush1.bf16.msra.mxu0 %v9035_v54  ;;  %6377 = vmatpush3.bf16.msra.mxu1 %v9036_v29 }
 0x554   :  { %6354 = vmatprep.subr.bf16.mxu0 %v9037_v14  ;;  %6378 = vmatprep.subr.bf16.mxu1 %v8926_v52 }
 0x557   :  { %6356 = vmatpush1.bf16.msra.mxu0 %v9038_v0  ;;  %6380 = vmatpush3.bf16.msra.mxu1 %v9039_v19  ;;  %v9051_v19 = vld [vmem:[#allocation37_spill] sm:$0xff]  ;;  %v9052_v0 = vld [vmem:[#allocation38_spill] sm:$0xff] }
 0x558   :  { %6382 = vmatprep.subr.bf16.mxu0 %v9040_v3  ;;  %6413 = vmatprep.subr.bf16.mxu1 %v8926_v52  ;;  %v9050_v3 = vld [vmem:[#allocation36_spill] sm:$0xff] }
 0x55a   :  { %2469 = vmatmul.mubr.f32.vlgmr.msra.gmra.mrb[8].mxu0 %v8167_v26  ;;  %5258 = vmatmul.mubr.f32.vlgmr.msra.gmra.mrb[32].mxu1 %v8167_v26 }
 0x55b   :  { %6384 = vmatpush1.bf16.msra.mxu0 %v9041_v18  ;;  %6415 = vmatpush3.bf16.msra.mxu1 %v9042_v50  ;;  %v9047_v18 = vld [vmem:[#allocation33_spill] sm:$0xff]  ;;  %v9048_v50 = vld [vmem:[#allocation34_spill] sm:$0xff] }
 0x55c   :  { %6386 = vmatprep.subr.bf16.mxu0 %v9043_v37  ;;  %6416 = vmatprep.subr.bf16.mxu1 %v8926_v52  ;;  %v9049_v37 = vld [vmem:[#allocation35_spill] sm:$0xff] }
 0x55d   :  { %2630 = vmatprep.mubr.f32.mxu0 %v8928_v5  ;;  %5292 = vmatprep.mubr.msk.f32.mxu1 %vm7366_vm1, %v8928_v5 }
 0x55f   :  { %6388 = vmatpush1.bf16.msra.mxu0 %v9044_v7  ;;  %6418 = vmatpush3.bf16.msra.mxu1 %v9045_v43  ;;  %v9053_v43 = vld [vmem:[#allocation39_spill] sm:$0xff]  ;;  %v9055_v7 = vld [vmem:[#allocation41_spill] sm:$0xff] }
 0x560   :  { %6390 = vmatprep.subr.bf16.mxu0 %v9046_v56  ;;  %6419 = vmatprep.subr.bf16.mxu1 %v8926_v52  ;;  %v9054_v56 = vld [vmem:[#allocation40_spill] sm:$0xff] }
 0x563   :  { %6392 = vmatpush1.bf16.msra.mxu0 %v9047_v18  ;;  %6421 = vmatpush3.bf16.msra.mxu1 %v9048_v50  ;;  %v9056_v50 = vld [vmem:[#allocation42_spill] sm:$0xff]  ;;  %v9058_v18 = vld [vmem:[#allocation44_spill] sm:$0xff] }
 0x564   :  { %6394 = vmatprep.subr.bf16.mxu0 %v9049_v37  ;;  %6422 = vmatprep.subr.bf16.mxu1 %v8926_v52  ;;  %v9057_v37 = vld [vmem:[#allocation43_spill] sm:$0xff] }
 0x567   :  { %6396 = vmatpush1.bf16.msra.mxu0 %v9050_v3  ;;  %6424 = vmatpush3.bf16.msra.mxu1 %v9051_v19  ;;  %v9059_v19 = vld [vmem:[#allocation45_spill] sm:$0xff]  ;;  %v9061_v3 = vld [vmem:[#allocation47_spill] sm:$0xff] }
 0x568   :  { %6398 = vmatprep.subr.bf16.mxu0 %v9052_v0  ;;  %6425 = vmatprep.subr.bf16.mxu1 %v8926_v52  ;;  %v9060_v0 = vld [vmem:[#allocation46_spill] sm:$0xff] }
 0x56b   :  { %6400 = vmatpush1.bf16.msra.mxu0 %v9053_v43  ;;  %6427 = vmatpush3.bf16.msra.mxu1 %v9054_v56  ;;  %v9062_v56 = vld [vmem:[#allocation48_spill] sm:$0xff]  ;;  %v9064_v43 = vld [vmem:[#allocation50_spill] sm:$0xff] }
 0x56c   :  { %6402 = vmatprep.subr.bf16.mxu0 %v9055_v7  ;;  %6428 = vmatprep.subr.bf16.mxu1 %v8926_v52  ;;  %v9063_v7 = vld [vmem:[#allocation49_spill] sm:$0xff] }
 0x56f   :  { %6404 = vmatpush1.bf16.msra.mxu0 %v9056_v50  ;;  %6430 = vmatpush3.bf16.msra.mxu1 %v9057_v37 }
 0x570   :  { %6406 = vmatprep.subr.bf16.mxu0 %v9058_v18  ;;  %6431 = vmatprep.subr.bf16.mxu1 %v8926_v52 }
 0x573   :  { %6408 = vmatpush1.bf16.msra.mxu0 %v9059_v19  ;;  %6433 = vmatpush3.bf16.msra.mxu1 %v9060_v0 }
 0x574   :  { %6410 = vmatprep.subr.bf16.mxu0 %v9061_v3  ;;  %6434 = vmatprep.subr.bf16.mxu1 %v8926_v52 }
 0x577   :  { %6412 = vmatpush1.bf16.msra.mxu0 %v9062_v56  ;;  %6436 = vmatpush3.bf16.msra.mxu1 %v9063_v7 }
 0x578   :  { %6438 = vmatprep.subr.bf16.mxu0 %v9064_v43  ;;  %6469 = vmatprep.subr.bf16.mxu1 %v8926_v52 }
 0x5ed   :  { %v2238_v37 = vpop.f32.mrb[28].mxu1 }
 0x5ee   :  { %v5189_v18 = vpop.f32.mrb[29].mxu1  ;;  %v2239_v21 = vadd.f32 %v2238_v37, %v7906_v58 }
 0x60d   :  { %v2308_v50 = vpop.f32.mrb[22].mxu0  ;;  %v2379_v14 = vpop.f32.mrb[30].mxu1 }
 0x60e   :  { %v7042_v19 = vadd.f32 %v8986_v34, %v2308_v50  ;;  %v2310_v29 = vpop.f32.mrb[23].mxu0  ;;  %v5224_v0 = vpop.f32.mrb[31].mxu1  ;;  %v2380_v57 = vadd.f32 %v2379_v14, %v9065_v46 }
 0x60f   :  { %v7044_v3 = vadd.f32 %v9026_v10, %v2310_v29 }
 0x610   :  { %v4351_v54 = vmul.f32 -1.442695, %v7042_v19 }
 0x611   :  { %v4352_v63 = vmul.f32 -1.442695, %v7044_v3 }
 0x612   :  { %7172 = vpow2.f32 %v4351_v54 }
 0x613   :  { %7174 = vpow2.f32 %v4352_v63 }
 0x61c   :  { %v7173_v56 = vpop.eup %7172 }
 0x61d   :  { %v2387_v7 = vadd.f32 1.0, %v7173_v56  ;;  %v7175_v43 = vpop.eup %7174 }
 0x61e   :  { %v2394_v47 = vadd.f32 1.0, %v7175_v43 }
 0x61f   :  { %7176 = vrcp.f32 %v2387_v7 }
 0x620   :  { %7178 = vrcp.f32 %v2394_v47 }
 0x629   :  { %v7177_v18 = vpop.eup %7176 }
 0x62a   :  { %v2397_v59 = vmul.f32 %v7177_v18, %v2380_v57  ;;  %v7179_v43 = vpop.eup %7178 }
 0x62b   :  { %v2400_v14 = vsub.f32 1.0, %v7179_v43  ;;  %v2402_v57 = vmul.f32 %v7179_v43, %v8162_v53 }
 0x62c   :  { %v2398_v50 = vadd.f32 %v2397_v59, %v2239_v21 }
 0x62d   :  { %v2470_v0 = vpop.f32.mrb[8].mxu0  ;;  %v2541_v19 = vpop.f32.mrb[32].mxu1 }
 0x62e   :  { %7180 = vtanh.f32 %v2398_v50  ;;  %v7014_v54 = vadd.f32 %v8950_v6, %v2470_v0  ;;  %v2472_v29 = vpop.f32.mrb[9].mxu0  ;;  %v5259_v63 = vpop.f32.mrb[33].mxu1  ;;  %v2542_v0 = vadd.f32 %v2541_v19, %v7724_v60  ;;  %v9068_v19 = vld [vmem:[#allocation21_spill] sm:$0xff] }
 0x62f   :  { %v7016_v7 = vadd.f32 %v8989_v4, %v2472_v29  ;;  %v9066_v63 = vld [vmem:[#allocation59_spill] sm:$0xff] }
 0x630   :  { %v4353_v3 = vmul.f32 -1.442695, %v7014_v54 }
 0x631   :  { %v4354_v56 = vmul.f32 -1.442695, %v7016_v7 }
 0x632   :  { %7182 = vpow2.f32 %v4353_v3 }
 0x633   :  { %7184 = vpow2.f32 %v4354_v56 }
 0x638   :  { %v7181_v46 = vpop.eup %7180 }
 0x639   :  { %v2401_v37 = vmul.f32 %v7181_v46, %v2400_v14 }
 0x63b   :  { %v8287_v59 = vadd.f32 %v2402_v57, %v2401_v37  ;;  %v9069_v37 = vld [vmem:[#allocation16_spill] sm:$0xff]  ;;  %v9070_v57 = vld [vmem:[#allocation17_spill] sm:$0xff] }
 0x63c   :  { %v7183_v21 = vpop.eup %7182 }
 0x63d   :  { %v2549_v47 = vadd.f32 1.0, %v7183_v21  ;;  %v7185_v18 = vpop.eup %7184  ;;  %v9071_v21 = vld [vmem:[#allocation23_spill] sm:$0xff] }
 0x63e   :  { %v2556_v50 = vadd.f32 1.0, %v7185_v18  ;;  %v9073_v18 = vld [vmem:[#allocation19_spill] sm:$0xff] }
 0x63f   :  { %7186 = vrcp.f32 %v2549_v47  ;;  %v9072_v47 = vld [vmem:[#allocation18_spill] sm:$0xff] }
 0x640   :  { %7188 = vrcp.f32 %v2556_v50  ;;  %v9074_v50 = vld [vmem:[#allocation24_spill] sm:$0xff] }
 0x649   :  { %v7187_v54 = vpop.eup %7186 }
 0x64a   :  { %v2559_v29 = vmul.f32 %v7187_v54, %v2542_v0  ;;  %v7189_v7 = vpop.eup %7188  ;;  %v9075_v0 = vld [vmem:[#allocation20_spill] sm:$0xff]  ;;  %v9076_v54 = vld [vmem:[#allocation22_spill] sm:$0xff] }
 0x64b   :  { %v2562_v56 = vsub.f32 1.0, %v7189_v7  ;;  %v2564_v53 = vmul.f32 %v7189_v7, %v8167_v26  ;;  %v9067_v26 = vld [vmem:[#allocation15_spill] sm:$0xff]  ;;  %v9080_v7 = vld [vmem:[#allocation28_spill] sm:$0xff] }
 0x64c   :  { %v2560_v3 = vadd.f32 %v2559_v29, %v9066_v63  ;;  %v9077_v29 = vld [vmem:[#allocation25_spill] sm:$0xff]  ;;  %v9078_v63 = vld [vmem:[#allocation26_spill] sm:$0xff] }
 0x64e   :  { %7190 = vtanh.f32 %v2560_v3  ;;  %v9079_v3 = vld [vmem:[#allocation27_spill] sm:$0xff] }
 0x658   :  { %v7191_v46 = vpop.eup %7190 }
 0x659   :  { %v2563_v14 = vmul.f32 %v7191_v46, %v2562_v56  ;;  %v9081_v56 = vld [vmem:[#allocation29_spill] sm:$0xff]  ;;  %v9082_v46 = vld [vmem:[#allocation30_spill] sm:$0xff] }
 0x65b   :  { %v8292_v43 = vadd.f32 %v2564_v53, %v2563_v14  ;;  %v9083_v14 = vld [vmem:[#allocation31_spill] sm:$0xff]  ;;  %v9084_v53 = vld [vmem:[#allocation32_spill] sm:$0xff] }
 0x65d   :  { %2631 = vmatmul.mubr.f32.vlgmr.msra.gmra.mrb[24].mxu0 %v8292_v43  ;;  %5293 = vmatmul.mubr.f32.vlgmr.msra.gmra.mrb[34].mxu1 %v8292_v43 }
 0x65e   :  { %6440 = vmatpush1.bf16.msra.mxu0 %v8953_v44  ;;  %6471 = vmatpush3.bf16.msra.mxu1 %v8954_v35 }
 0x65f   :  { %6442 = vmatprep.subr.bf16.mxu0 %v8955_v30  ;;  %6472 = vmatprep.subr.bf16.mxu1 %v8926_v52 }
 0x660   :  { %2771 = vmatprep.mubr.f32.mxu0 %v8928_v5  ;;  %5327 = vmatprep.mubr.msk.f32.mxu1 %vm7366_vm1, %v8928_v5 }
 0x662   :  { %6444 = vmatpush1.bf16.msra.mxu0 %v8956_v1  ;;  %6474 = vmatpush3.bf16.msra.mxu1 %v8957_v39 }
 0x663   :  { %6446 = vmatprep.subr.bf16.mxu0 %v8958_v28  ;;  %6475 = vmatprep.subr.bf16.mxu1 %v8926_v52 }
 0x666   :  { %6448 = vmatpush1.bf16.msra.mxu0 %v8959_v41  ;;  %6477 = vmatpush3.bf16.msra.mxu1 %v8960_v25 }
 0x667   :  { %6450 = vmatprep.subr.bf16.mxu0 %v8961_v17  ;;  %6478 = vmatprep.subr.bf16.mxu1 %v8926_v52 }
 0x66a   :  { %6452 = vmatpush1.bf16.msra.mxu0 %v8962_v11  ;;  %6480 = vmatpush3.bf16.msra.mxu1 %v8963_v9 }
 0x66b   :  { %6454 = vmatprep.subr.bf16.mxu0 %v8964_v2  ;;  %6481 = vmatprep.subr.bf16.mxu1 %v8926_v52 }
 0x66e   :  { %6456 = vmatpush1.bf16.msra.mxu0 %v7772_v38  ;;  %6483 = vmatpush3.bf16.msra.mxu1 %v7774_v36 }
 0x66f   :  { %6458 = vmatprep.subr.bf16.mxu0 %v8965_v62  ;;  %6484 = vmatprep.subr.bf16.mxu1 %v8926_v52 }
 0x672   :  { %6460 = vmatpush1.bf16.msra.mxu0 %v8966_v32  ;;  %6486 = vmatpush3.bf16.msra.mxu1 %v7784_v13 }
 0x673   :  { %6462 = vmatprep.subr.bf16.mxu0 %v7788_v20  ;;  %6487 = vmatprep.subr.bf16.mxu1 %v8926_v52 }
 0x676   :  { %6464 = vmatpush1.bf16.msra.mxu0 %v7792_v55  ;;  %6489 = vmatpush3.bf16.msra.mxu1 %v7794_v24 }
 0x677   :  { %6466 = vmatprep.subr.bf16.mxu0 %v7798_v27  ;;  %6490 = vmatprep.subr.bf16.mxu1 %v8926_v52 }
 0x67a   :  { %6468 = vmatpush1.bf16.msra.mxu0 %v7802_v48  ;;  %6492 = vmatpush3.bf16.msra.mxu1 %v7804_v49 }
 0x67b   :  { %6494 = vmatprep.subr.bf16.mxu0 %v7465_v12  ;;  %6525 = vmatprep.subr.bf16.mxu1 %v8926_v52 }
 0x67d   :  { %2772 = vmatmul.mubr.f32.vlgmr.msra.gmra.mrb[24].mxu0 %v8287_v59  ;;  %5328 = vmatmul.mubr.f32.vlgmr.msra.gmra.mrb[36].mxu1 %v8287_v59 }
 0x67e   :  { %6496 = vmatpush1.bf16.msra.mxu0 %v7467_v15  ;;  %6527 = vmatpush3.bf16.msra.mxu1 %v7501_v40 }
 0x67f   :  { %6498 = vmatprep.subr.bf16.mxu0 %v7470_v16  ;;  %6528 = vmatprep.subr.bf16.mxu1 %v8926_v52 }
 0x680   :  { %2933 = vmatprep.mubr.f32.mxu0 %v8928_v5  ;;  %5362 = vmatprep.mubr.msk.f32.mxu1 %vm7366_vm1, %v8928_v5 }
 0x682   :  { %6500 = vmatpush1.bf16.msra.mxu0 %v7478_v22  ;;  %6530 = vmatpush3.bf16.msra.mxu1 %v7517_v51 }
 0x683   :  { %6502 = vmatprep.subr.bf16.mxu0 %v7481_v23  ;;  %6531 = vmatprep.subr.bf16.mxu1 %v8926_v52 }
 0x686   :  { %6504 = vmatpush1.bf16.msra.mxu0 %v7495_v31  ;;  %6533 = vmatpush3.bf16.msra.mxu1 %v7533_v61 }
 0x687   :  { %6506 = vmatprep.subr.bf16.mxu0 %v7498_v33  ;;  %6534 = vmatprep.subr.bf16.mxu1 %v8926_v52 }
 0x68a   :  { %6508 = vmatpush1.bf16.msra.mxu0 %v7508_v42  ;;  %6536 = vmatpush3.bf16.msra.mxu1 %v7549_v8 }
 0x68b   :  { %6510 = vmatprep.subr.bf16.mxu0 %v7511_v45  ;;  %6537 = vmatprep.subr.bf16.mxu1 %v8926_v52 }
 0x68e   :  { %6512 = vmatpush1.bf16.msra.mxu0 %v9067_v26  ;;  %6539 = vmatpush3.bf16.msra.mxu1 %v9068_v19 }
 0x68f   :  { %6514 = vmatprep.subr.bf16.mxu0 %v9069_v37  ;;  %6540 = vmatprep.subr.bf16.mxu1 %v8926_v52 }
 0x692   :  { %6516 = vmatpush1.bf16.msra.mxu0 %v9070_v57  ;;  %6542 = vmatpush3.bf16.msra.mxu1 %v9071_v21  ;;  %v9103_v57 = vld [vmem:[#allocation51_spill] sm:$0xff] }
 0x693   :  { %6518 = vmatprep.subr.bf16.mxu0 %v9072_v47  ;;  %6543 = vmatprep.subr.bf16.mxu1 %v8926_v52 }
 0x696   :  { %6520 = vmatpush1.bf16.msra.mxu0 %v9073_v18  ;;  %6545 = vmatpush3.bf16.msra.mxu1 %v9074_v50 }
 0x697   :  { %6522 = vmatprep.subr.bf16.mxu0 %v9075_v0  ;;  %6546 = vmatprep.subr.bf16.mxu1 %v8926_v52 }
 0x69a   :  { %6524 = vmatpush1.bf16.msra.mxu0 %v9076_v54  ;;  %6548 = vmatpush3.bf16.msra.mxu1 %v9077_v29  ;;  %v9089_v29 = vld [vmem:[#allocation37_spill] sm:$0xff]  ;;  %v9090_v54 = vld [vmem:[#allocation38_spill] sm:$0xff] }
 0x69b   :  { %6550 = vmatprep.subr.bf16.mxu0 %v9078_v63  ;;  %6581 = vmatprep.subr.bf16.mxu1 %v8926_v52  ;;  %v9088_v63 = vld [vmem:[#allocation36_spill] sm:$0xff] }
 0x69d   :  { %2934 = vmatmul.mubr.f32.vlgmr.msra.gmra.mrb[10].mxu0 %v8292_v43  ;;  %5363 = vmatmul.mubr.f32.vlgmr.msra.gmra.mrb[38].mxu1 %v8292_v43 }
 0x69e   :  { %6552 = vmatpush1.bf16.msra.mxu0 %v9079_v3  ;;  %6583 = vmatpush3.bf16.msra.mxu1 %v9080_v7  ;;  %v9085_v3 = vld [vmem:[#allocation33_spill] sm:$0xff]  ;;  %v9086_v7 = vld [vmem:[#allocation34_spill] sm:$0xff] }
 0x69f   :  { %6554 = vmatprep.subr.bf16.mxu0 %v9081_v56  ;;  %6584 = vmatprep.subr.bf16.mxu1 %v8926_v52  ;;  %v9087_v56 = vld [vmem:[#allocation35_spill] sm:$0xff] }
 0x6a0   :  { %3095 = vmatprep.mubr.f32.mxu0 %v8928_v5  ;;  %5397 = vmatprep.mubr.msk.f32.mxu1 %vm7366_vm1, %v8928_v5 }
 0x6a2   :  { %6556 = vmatpush1.bf16.msra.mxu0 %v9082_v46  ;;  %6586 = vmatpush3.bf16.msra.mxu1 %v9083_v14  ;;  %v9091_v14 = vld [vmem:[#allocation39_spill] sm:$0xff]  ;;  %v9093_v46 = vld [vmem:[#allocation41_spill] sm:$0xff] }
 0x6a3   :  { %6558 = vmatprep.subr.bf16.mxu0 %v9084_v53  ;;  %6587 = vmatprep.subr.bf16.mxu1 %v8926_v52  ;;  %v9092_v53 = vld [vmem:[#allocation40_spill] sm:$0xff] }
 0x6a6   :  { %6560 = vmatpush1.bf16.msra.mxu0 %v9085_v3  ;;  %6589 = vmatpush3.bf16.msra.mxu1 %v9086_v7  ;;  %v9094_v7 = vld [vmem:[#allocation42_spill] sm:$0xff]  ;;  %v9096_v3 = vld [vmem:[#allocation44_spill] sm:$0xff] }
 0x6a7   :  { %6562 = vmatprep.subr.bf16.mxu0 %v9087_v56  ;;  %6590 = vmatprep.subr.bf16.mxu1 %v8926_v52  ;;  %v9095_v56 = vld [vmem:[#allocation43_spill] sm:$0xff] }
 0x6aa   :  { %6564 = vmatpush1.bf16.msra.mxu0 %v9088_v63  ;;  %6592 = vmatpush3.bf16.msra.mxu1 %v9089_v29  ;;  %v9097_v29 = vld [vmem:[#allocation45_spill] sm:$0xff]  ;;  %v9099_v63 = vld [vmem:[#allocation47_spill] sm:$0xff] }
 0x6ab   :  { %6566 = vmatprep.subr.bf16.mxu0 %v9090_v54  ;;  %6593 = vmatprep.subr.bf16.mxu1 %v8926_v52  ;;  %v9098_v54 = vld [vmem:[#allocation46_spill] sm:$0xff] }
 0x6ae   :  { %6568 = vmatpush1.bf16.msra.mxu0 %v9091_v14  ;;  %6595 = vmatpush3.bf16.msra.mxu1 %v9092_v53  ;;  %v9100_v53 = vld [vmem:[#allocation48_spill] sm:$0xff]  ;;  %v9102_v14 = vld [vmem:[#allocation50_spill] sm:$0xff] }
 0x6af   :  { %6570 = vmatprep.subr.bf16.mxu0 %v9093_v46  ;;  %6596 = vmatprep.subr.bf16.mxu1 %v8926_v52  ;;  %v9101_v46 = vld [vmem:[#allocation49_spill] sm:$0xff] }
 0x6b2   :  { %6572 = vmatpush1.bf16.msra.mxu0 %v9094_v7  ;;  %6598 = vmatpush3.bf16.msra.mxu1 %v9095_v56 }
 0x6b3   :  { %6574 = vmatprep.subr.bf16.mxu0 %v9096_v3  ;;  %6599 = vmatprep.subr.bf16.mxu1 %v8926_v52 }
 0x6b6   :  { %6576 = vmatpush1.bf16.msra.mxu0 %v9097_v29  ;;  %6601 = vmatpush3.bf16.msra.mxu1 %v9098_v54 }
 0x6b7   :  { %6578 = vmatprep.subr.bf16.mxu0 %v9099_v63  ;;  %6602 = vmatprep.subr.bf16.mxu1 %v8926_v52 }
 0x6ba   :  { %6580 = vmatpush1.bf16.msra.mxu0 %v9100_v53  ;;  %6604 = vmatpush3.bf16.msra.mxu1 %v9101_v46 }
 0x6bb   :  { %6606 = vmatprep.subr.bf16.mxu0 %v9102_v14  ;;  %6637 = vmatprep.subr.bf16.mxu1 %v8926_v52 }
 0x730   :  { %v2703_v56 = vpop.f32.mrb[34].mxu1 }
 0x731   :  { %v5294_v3 = vpop.f32.mrb[35].mxu1  ;;  %v2704_v19 = vadd.f32 %v2703_v56, %v7906_v58 }
 0x750   :  { %v2773_v7 = vpop.f32.mrb[24].mxu0  ;;  %v2844_v0 = vpop.f32.mrb[36].mxu1 }
 0x751   :  { %v7046_v29 = vadd.f32 %v8986_v34, %v2773_v7  ;;  %v2775_v50 = vpop.f32.mrb[25].mxu0  ;;  %v5329_v54 = vpop.f32.mrb[37].mxu1  ;;  %v2845_v37 = vadd.f32 %v2844_v0, %v9103_v57 }
 0x752   :  { %v7048_v63 = vadd.f32 %v9026_v10, %v2775_v50 }
 0x753   :  { %v4355_v18 = vmul.f32 -1.442695, %v7046_v29 }
 0x754   :  { %v4356_v47 = vmul.f32 -1.442695, %v7048_v63 }
 0x755   :  { %7192 = vpow2.f32 %v4355_v18 }
 0x756   :  { %7194 = vpow2.f32 %v4356_v47 }
 0x75f   :  { %v7193_v53 = vpop.eup %7192 }
 0x760   :  { %v2852_v46 = vadd.f32 1.0, %v7193_v53  ;;  %v7195_v14 = vpop.eup %7194 }
 0x761   :  { %v2859_v21 = vadd.f32 1.0, %v7195_v14 }
 0x762   :  { %7196 = vrcp.f32 %v2852_v46 }
 0x763   :  { %7198 = vrcp.f32 %v2859_v21 }
 0x76c   :  { %v7197_v3 = vpop.eup %7196 }
 0x76d   :  { %v2862_v26 = vmul.f32 %v7197_v3, %v2845_v37  ;;  %v7199_v14 = vpop.eup %7198 }
 0x76e   :  { %v2865_v0 = vsub.f32 1.0, %v7199_v14  ;;  %v2867_v37 = vmul.f32 %v7199_v14, %v8287_v59 }
 0x76f   :  { %v2863_v7 = vadd.f32 %v2862_v26, %v2704_v19 }
 0x770   :  { %v2935_v54 = vpop.f32.mrb[10].mxu0  ;;  %v3006_v29 = vpop.f32.mrb[38].mxu1 }
 0x771   :  { %7200 = vtanh.f32 %v2863_v7  ;;  %v7018_v18 = vadd.f32 %v8950_v6, %v2935_v54  ;;  %v2937_v50 = vpop.f32.mrb[11].mxu0  ;;  %v5364_v47 = vpop.f32.mrb[39].mxu1  ;;  %v3007_v54 = vadd.f32 %v3006_v29, %v7724_v60  ;;  %v9106_v29 = vld [vmem:[#allocation21_spill] sm:$0xff] }
 0x772   :  { %v7020_v46 = vadd.f32 %v8989_v4, %v2937_v50  ;;  %v9104_v47 = vld [vmem:[#allocation57_spill] sm:$0xff] }
 0x773   :  { %v4357_v63 = vmul.f32 -1.442695, %v7018_v18 }
 0x774   :  { %v4358_v53 = vmul.f32 -1.442695, %v7020_v46 }
 0x775   :  { %7202 = vpow2.f32 %v4357_v63 }
 0x776   :  { %7204 = vpow2.f32 %v4358_v53 }
 0x77b   :  { %v7201_v57 = vpop.eup %7200 }
 0x77c   :  { %v2866_v56 = vmul.f32 %v7201_v57, %v2865_v0 }
 0x77e   :  { %v8412_v26 = vadd.f32 %v2867_v37, %v2866_v56  ;;  %v9107_v56 = vld [vmem:[#allocation16_spill] sm:$0xff]  ;;  %v9108_v37 = vld [vmem:[#allocation17_spill] sm:$0xff] }
 0x77f   :  { %v7203_v19 = vpop.eup %7202 }
 0x780   :  { %v3014_v21 = vadd.f32 1.0, %v7203_v19  ;;  %v7205_v3 = vpop.eup %7204  ;;  %v9109_v19 = vld [vmem:[#allocation23_spill] sm:$0xff] }
 0x781   :  { %v3021_v7 = vadd.f32 1.0, %v7205_v3  ;;  %v9111_v3 = vld [vmem:[#allocation19_spill] sm:$0xff] }
 0x782   :  { %7206 = vrcp.f32 %v3014_v21  ;;  %v9110_v21 = vld [vmem:[#allocation18_spill] sm:$0xff] }
 0x783   :  { %7208 = vrcp.f32 %v3021_v7  ;;  %v9112_v7 = vld [vmem:[#allocation24_spill] sm:$0xff] }
 0x78c   :  { %v7207_v18 = vpop.eup %7206 }
 0x78d   :  { %v3024_v50 = vmul.f32 %v7207_v18, %v3007_v54  ;;  %v7209_v46 = vpop.eup %7208  ;;  %v9113_v54 = vld [vmem:[#allocation20_spill] sm:$0xff]  ;;  %v9114_v18 = vld [vmem:[#allocation22_spill] sm:$0xff] }
 0x78e   :  { %v3027_v53 = vsub.f32 1.0, %v7209_v46  ;;  %v3029_v59 = vmul.f32 %v7209_v46, %v8292_v43  ;;  %v9105_v43 = vld [vmem:[#allocation15_spill] sm:$0xff]  ;;  %v9118_v46 = vld [vmem:[#allocation28_spill] sm:$0xff] }
 0x78f   :  { %v3025_v63 = vadd.f32 %v3024_v50, %v9104_v47  ;;  %v9115_v50 = vld [vmem:[#allocation25_spill] sm:$0xff]  ;;  %v9116_v47 = vld [vmem:[#allocation26_spill] sm:$0xff] }
 0x791   :  { %7210 = vtanh.f32 %v3025_v63  ;;  %v9117_v63 = vld [vmem:[#allocation27_spill] sm:$0xff] }
 0x79b   :  { %v7211_v57 = vpop.eup %7210 }
 0x79c   :  { %v3028_v0 = vmul.f32 %v7211_v57, %v3027_v53  ;;  %v9119_v53 = vld [vmem:[#allocation29_spill] sm:$0xff]  ;;  %v9120_v57 = vld [vmem:[#allocation30_spill] sm:$0xff] }
 0x79e   :  { %v8417_v14 = vadd.f32 %v3029_v59, %v3028_v0  ;;  %v9121_v0 = vld [vmem:[#allocation31_spill] sm:$0xff]  ;;  %v9122_v59 = vld [vmem:[#allocation32_spill] sm:$0xff] }
 0x7a0   :  { %3096 = vmatmul.mubr.f32.vlgmr.msra.gmra.mrb[26].mxu0 %v8417_v14  ;;  %5398 = vmatmul.mubr.f32.vlgmr.msra.gmra.mrb[40].mxu1 %v8417_v14 }
 0x7a1   :  { %6608 = vmatpush1.bf16.msra.mxu0 %v8953_v44  ;;  %6639 = vmatpush3.bf16.msra.mxu1 %v8954_v35 }
 0x7a2   :  { %6610 = vmatprep.subr.bf16.mxu0 %v8955_v30  ;;  %6640 = vmatprep.subr.bf16.mxu1 %v8926_v52 }
 0x7a3   :  { %3236 = vmatprep.mubr.f32.mxu0 %v8928_v5  ;;  %5432 = vmatprep.mubr.msk.f32.mxu1 %vm7366_vm1, %v8928_v5 }
 0x7a5   :  { %6612 = vmatpush1.bf16.msra.mxu0 %v8956_v1  ;;  %6642 = vmatpush3.bf16.msra.mxu1 %v8957_v39 }
 0x7a6   :  { %6614 = vmatprep.subr.bf16.mxu0 %v8958_v28  ;;  %6643 = vmatprep.subr.bf16.mxu1 %v8926_v52 }
 0x7a9   :  { %6616 = vmatpush1.bf16.msra.mxu0 %v8959_v41  ;;  %6645 = vmatpush3.bf16.msra.mxu1 %v8960_v25 }
 0x7aa   :  { %6618 = vmatprep.subr.bf16.mxu0 %v8961_v17  ;;  %6646 = vmatprep.subr.bf16.mxu1 %v8926_v52 }
 0x7ad   :  { %6620 = vmatpush1.bf16.msra.mxu0 %v8962_v11  ;;  %6648 = vmatpush3.bf16.msra.mxu1 %v8963_v9 }
 0x7ae   :  { %6622 = vmatprep.subr.bf16.mxu0 %v8964_v2  ;;  %6649 = vmatprep.subr.bf16.mxu1 %v8926_v52 }
 0x7b1   :  { %6624 = vmatpush1.bf16.msra.mxu0 %v7772_v38  ;;  %6651 = vmatpush3.bf16.msra.mxu1 %v7774_v36 }
 0x7b2   :  { %6626 = vmatprep.subr.bf16.mxu0 %v8965_v62  ;;  %6652 = vmatprep.subr.bf16.mxu1 %v8926_v52 }
 0x7b5   :  { %6628 = vmatpush1.bf16.msra.mxu0 %v8966_v32  ;;  %6654 = vmatpush3.bf16.msra.mxu1 %v7784_v13 }
 0x7b6   :  { %6630 = vmatprep.subr.bf16.mxu0 %v7788_v20  ;;  %6655 = vmatprep.subr.bf16.mxu1 %v8926_v52 }
 0x7b9   :  { %6632 = vmatpush1.bf16.msra.mxu0 %v7792_v55  ;;  %6657 = vmatpush3.bf16.msra.mxu1 %v7794_v24 }
 0x7ba   :  { %6634 = vmatprep.subr.bf16.mxu0 %v7798_v27  ;;  %6658 = vmatprep.subr.bf16.mxu1 %v8926_v52 }
 0x7bd   :  { %6636 = vmatpush1.bf16.msra.mxu0 %v7802_v48  ;;  %6660 = vmatpush3.bf16.msra.mxu1 %v7804_v49 }
 0x7be   :  { %6662 = vmatprep.subr.bf16.mxu0 %v7465_v12  ;;  %6693 = vmatprep.subr.bf16.mxu1 %v8926_v52 }
 0x7c0   :  { %3237 = vmatmul.mubr.f32.vlgmr.msra.gmra.mrb[26].mxu0 %v8412_v26  ;;  %5433 = vmatmul.mubr.f32.vlgmr.msra.gmra.mrb[42].mxu1 %v8412_v26 }
 0x7c1   :  { %6664 = vmatpush1.bf16.msra.mxu0 %v7467_v15  ;;  %6695 = vmatpush3.bf16.msra.mxu1 %v7501_v40 }
 0x7c2   :  { %6666 = vmatprep.subr.bf16.mxu0 %v7470_v16  ;;  %6696 = vmatprep.subr.bf16.mxu1 %v8926_v52 }
 0x7c3   :  { %3398 = vmatprep.mubr.f32.mxu0 %v8928_v5  ;;  %5467 = vmatprep.mubr.msk.f32.mxu1 %vm7366_vm1, %v8928_v5 }
 0x7c5   :  { %6668 = vmatpush1.bf16.msra.mxu0 %v7478_v22  ;;  %6698 = vmatpush3.bf16.msra.mxu1 %v7517_v51 }
 0x7c6   :  { %6670 = vmatprep.subr.bf16.mxu0 %v7481_v23  ;;  %6699 = vmatprep.subr.bf16.mxu1 %v8926_v52 }
 0x7c9   :  { %6672 = vmatpush1.bf16.msra.mxu0 %v7495_v31  ;;  %6701 = vmatpush3.bf16.msra.mxu1 %v7533_v61 }
 0x7ca   :  { %6674 = vmatprep.subr.bf16.mxu0 %v7498_v33  ;;  %6702 = vmatprep.subr.bf16.mxu1 %v8926_v52 }
 0x7cd   :  { %6676 = vmatpush1.bf16.msra.mxu0 %v7508_v42  ;;  %6704 = vmatpush3.bf16.msra.mxu1 %v7549_v8 }
 0x7ce   :  { %6678 = vmatprep.subr.bf16.mxu0 %v7511_v45  ;;  %6705 = vmatprep.subr.bf16.mxu1 %v8926_v52 }
 0x7d1   :  { %6680 = vmatpush1.bf16.msra.mxu0 %v9105_v43  ;;  %6707 = vmatpush3.bf16.msra.mxu1 %v9106_v29 }
 0x7d2   :  { %6682 = vmatprep.subr.bf16.mxu0 %v9107_v56  ;;  %6708 = vmatprep.subr.bf16.mxu1 %v8926_v52 }
 0x7d5   :  { %6684 = vmatpush1.bf16.msra.mxu0 %v9108_v37  ;;  %6710 = vmatpush3.bf16.msra.mxu1 %v9109_v19  ;;  %v9141_v37 = vld [vmem:[#allocation51_spill] sm:$0xff] }
 0x7d6   :  { %6686 = vmatprep.subr.bf16.mxu0 %v9110_v21  ;;  %6711 = vmatprep.subr.bf16.mxu1 %v8926_v52 }
 0x7d9   :  { %6688 = vmatpush1.bf16.msra.mxu0 %v9111_v3  ;;  %6713 = vmatpush3.bf16.msra.mxu1 %v9112_v7 }
 0x7da   :  { %6690 = vmatprep.subr.bf16.mxu0 %v9113_v54  ;;  %6714 = vmatprep.subr.bf16.mxu1 %v8926_v52 }
 0x7dd   :  { %6692 = vmatpush1.bf16.msra.mxu0 %v9114_v18  ;;  %6716 = vmatpush3.bf16.msra.mxu1 %v9115_v50  ;;  %v9127_v50 = vld [vmem:[#allocation37_spill] sm:$0xff]  ;;  %v9128_v18 = vld [vmem:[#allocation38_spill] sm:$0xff] }
 0x7de   :  { %6718 = vmatprep.subr.bf16.mxu0 %v9116_v47  ;;  %6749 = vmatprep.subr.bf16.mxu1 %v8926_v52  ;;  %v9126_v47 = vld [vmem:[#allocation36_spill] sm:$0xff] }
 0x7e0   :  { %3399 = vmatmul.mubr.f32.vlgmr.msra.gmra.mrb[12].mxu0 %v8417_v14  ;;  %5468 = vmatmul.mubr.f32.vlgmr.msra.gmra.mrb[44].mxu1 %v8417_v14 }
 0x7e1   :  { %6720 = vmatpush1.bf16.msra.mxu0 %v9117_v63  ;;  %6751 = vmatpush3.bf16.msra.mxu1 %v9118_v46  ;;  %v9123_v63 = vld [vmem:[#allocation33_spill] sm:$0xff]  ;;  %v9124_v46 = vld [vmem:[#allocation34_spill] sm:$0xff] }
 0x7e2   :  { %6722 = vmatprep.subr.bf16.mxu0 %v9119_v53  ;;  %6752 = vmatprep.subr.bf16.mxu1 %v8926_v52  ;;  %v9125_v53 = vld [vmem:[#allocation35_spill] sm:$0xff] }
 0x7e3   :  { %3560 = vmatprep.mubr.f32.mxu0 %v8928_v5  ;;  %5502 = vmatprep.mubr.msk.f32.mxu1 %vm7366_vm1, %v8928_v5 }
 0x7e5   :  { %6724 = vmatpush1.bf16.msra.mxu0 %v9120_v57  ;;  %6754 = vmatpush3.bf16.msra.mxu1 %v9121_v0  ;;  %v9129_v0 = vld [vmem:[#allocation39_spill] sm:$0xff]  ;;  %v9131_v57 = vld [vmem:[#allocation41_spill] sm:$0xff] }
 0x7e6   :  { %6726 = vmatprep.subr.bf16.mxu0 %v9122_v59  ;;  %6755 = vmatprep.subr.bf16.mxu1 %v8926_v52  ;;  %v9130_v59 = vld [vmem:[#allocation40_spill] sm:$0xff] }
 0x7e9   :  { %6728 = vmatpush1.bf16.msra.mxu0 %v9123_v63  ;;  %6757 = vmatpush3.bf16.msra.mxu1 %v9124_v46  ;;  %v9132_v46 = vld [vmem:[#allocation42_spill] sm:$0xff]  ;;  %v9134_v63 = vld [vmem:[#allocation44_spill] sm:$0xff] }
 0x7ea   :  { %6730 = vmatprep.subr.bf16.mxu0 %v9125_v53  ;;  %6758 = vmatprep.subr.bf16.mxu1 %v8926_v52  ;;  %v9133_v53 = vld [vmem:[#allocation43_spill] sm:$0xff] }
 0x7ed   :  { %6732 = vmatpush1.bf16.msra.mxu0 %v9126_v47  ;;  %6760 = vmatpush3.bf16.msra.mxu1 %v9127_v50  ;;  %v9135_v50 = vld [vmem:[#allocation45_spill] sm:$0xff]  ;;  %v9137_v47 = vld [vmem:[#allocation47_spill] sm:$0xff] }
 0x7ee   :  { %6734 = vmatprep.subr.bf16.mxu0 %v9128_v18  ;;  %6761 = vmatprep.subr.bf16.mxu1 %v8926_v52  ;;  %v9136_v18 = vld [vmem:[#allocation46_spill] sm:$0xff] }
 0x7f1   :  { %6736 = vmatpush1.bf16.msra.mxu0 %v9129_v0  ;;  %6763 = vmatpush3.bf16.msra.mxu1 %v9130_v59  ;;  %v9138_v59 = vld [vmem:[#allocation48_spill] sm:$0xff]  ;;  %v9140_v0 = vld [vmem:[#allocation50_spill] sm:$0xff] }
 0x7f2   :  { %6738 = vmatprep.subr.bf16.mxu0 %v9131_v57  ;;  %6764 = vmatprep.subr.bf16.mxu1 %v8926_v52  ;;  %v9139_v57 = vld [vmem:[#allocation49_spill] sm:$0xff] }
 0x7f5   :  { %6740 = vmatpush1.bf16.msra.mxu0 %v9132_v46  ;;  %6766 = vmatpush3.bf16.msra.mxu1 %v9133_v53 }
 0x7f6   :  { %6742 = vmatprep.subr.bf16.mxu0 %v9134_v63  ;;  %6767 = vmatprep.subr.bf16.mxu1 %v8926_v52 }
 0x7f9   :  { %6744 = vmatpush1.bf16.msra.mxu0 %v9135_v50  ;;  %6769 = vmatpush3.bf16.msra.mxu1 %v9136_v18 }
 0x7fa   :  { %6746 = vmatprep.subr.bf16.mxu0 %v9137_v47  ;;  %6770 = vmatprep.subr.bf16.mxu1 %v8926_v52 }
 0x7fd   :  { %6748 = vmatpush1.bf16.msra.mxu0 %v9138_v59  ;;  %6772 = vmatpush3.bf16.msra.mxu1 %v9139_v57 }
 0x7fe   :  { %6774 = vmatprep.subr.bf16.mxu0 %v9140_v0  ;;  %6805 = vmatprep.subr.bf16.mxu1 %v8926_v52 }
 0x873   :  { %v3168_v53 = vpop.f32.mrb[40].mxu1 }
 0x874   :  { %v5399_v63 = vpop.f32.mrb[41].mxu1  ;;  %v3169_v29 = vadd.f32 %v3168_v53, %v7906_v58 }
 0x893   :  { %v3238_v46 = vpop.f32.mrb[26].mxu0  ;;  %v3309_v54 = vpop.f32.mrb[42].mxu1 }
 0x894   :  { %v7050_v50 = vadd.f32 %v8986_v34, %v3238_v46  ;;  %v3240_v7 = vpop.f32.mrb[27].mxu0  ;;  %v5434_v18 = vpop.f32.mrb[43].mxu1  ;;  %v3310_v56 = vadd.f32 %v3309_v54, %v9141_v37 }
 0x895   :  { %v7052_v47 = vadd.f32 %v9026_v10, %v3240_v7 }
 0x896   :  { %v4359_v3 = vmul.f32 -1.442695, %v7050_v50 }
 0x897   :  { %v4360_v21 = vmul.f32 -1.442695, %v7052_v47 }
 0x898   :  { %7212 = vpow2.f32 %v4359_v3 }
 0x899   :  { %7214 = vpow2.f32 %v4360_v21 }
 0x8a2   :  { %v7213_v59 = vpop.eup %7212 }
 0x8a3   :  { %v3317_v57 = vadd.f32 1.0, %v7213_v59  ;;  %v7215_v0 = vpop.eup %7214 }
 0x8a4   :  { %v3324_v19 = vadd.f32 1.0, %v7215_v0 }
 0x8a5   :  { %7216 = vrcp.f32 %v3317_v57 }
 0x8a6   :  { %7218 = vrcp.f32 %v3324_v19 }
 0x8af   :  { %v7217_v63 = vpop.eup %7216 }
 0x8b0   :  { %v3327_v43 = vmul.f32 %v7217_v63, %v3310_v56  ;;  %v7219_v0 = vpop.eup %7218 }
 0x8b1   :  { %v3330_v54 = vsub.f32 1.0, %v7219_v0  ;;  %v3332_v56 = vmul.f32 %v7219_v0, %v8412_v26 }
 0x8b2   :  { %v3328_v46 = vadd.f32 %v3327_v43, %v3169_v29 }
 0x8b3   :  { %v3400_v18 = vpop.f32.mrb[12].mxu0  ;;  %v3471_v50 = vpop.f32.mrb[44].mxu1 }
 0x8b4   :  { %7220 = vtanh.f32 %v3328_v46  ;;  %v7022_v3 = vadd.f32 %v8950_v6, %v3400_v18  ;;  %v3402_v7 = vpop.f32.mrb[13].mxu0  ;;  %v5469_v21 = vpop.f32.mrb[45].mxu1  ;;  %v3472_v18 = vadd.f32 %v3471_v50, %v7724_v60  ;;  %v9157_v50 = vld [vmem:[#allocation29_spill] sm:$0xff] }
 0x8b5   :  { %v7024_v57 = vadd.f32 %v8989_v4, %v3402_v7  ;;  %v9142_v21 = vld [vmem:[#allocation62_spill] sm:$0xff] }
 0x8b6   :  { %v4361_v47 = vmul.f32 -1.442695, %v7022_v3 }
 0x8b7   :  { %v4362_v59 = vmul.f32 -1.442695, %v7024_v57 }
 0x8b8   :  { %7222 = vpow2.f32 %v4361_v47 }
 0x8b9   :  { %7224 = vpow2.f32 %v4362_v59 }
 0x8be   :  { %v7221_v37 = vpop.eup %7220 }
 0x8bf   :  { %v3331_v53 = vmul.f32 %v7221_v37, %v3330_v54 }
 0x8c1   :  { %v8537_v43 = vadd.f32 %v3332_v56, %v3331_v53  ;;  %v9158_v53 = vld [vmem:[#allocation30_spill] sm:$0xff]  ;;  %v9159_v56 = vld [vmem:[#allocation31_spill] sm:$0xff] }
 0x8c2   :  { %v7223_v29 = vpop.eup %7222 }
 0x8c3   :  { %v3479_v19 = vadd.f32 1.0, %v7223_v29  ;;  %v7225_v63 = vpop.eup %7224  ;;  %v9160_v29 = vld [vmem:[#allocation32_spill] sm:$0xff] }
 0x8c4   :  { %v3486_v46 = vadd.f32 1.0, %v7225_v63  ;;  %v9162_v63 = vld [vmem:[#allocation34_spill] sm:$0xff] }
 0x8c5   :  { %7226 = vrcp.f32 %v3479_v19  ;;  %v9161_v19 = vld [vmem:[#allocation33_spill] sm:$0xff] }
 0x8c6   :  { %7228 = vrcp.f32 %v3486_v46  ;;  %v9163_v46 = vld [vmem:[#allocation35_spill] sm:$0xff] }
 0x8cf   :  { %v7227_v3 = vpop.eup %7226 }
 0x8d0   :  { %v3489_v7 = vmul.f32 %v7227_v3, %v3472_v18  ;;  %v7229_v57 = vpop.eup %7228  ;;  %v9164_v18 = vld [vmem:[#allocation36_spill] sm:$0xff]  ;;  %v9165_v3 = vld [vmem:[#allocation37_spill] sm:$0xff] }
 0x8d1   :  { %v3492_v59 = vsub.f32 1.0, %v7229_v57  ;;  %v3494_v26 = vmul.f32 %v7229_v57, %v8417_v14  ;;  %v9156_v14 = vld [vmem:[#allocation28_spill] sm:$0xff]  ;;  %v9169_v57 = vld [vmem:[#allocation41_spill] sm:$0xff] }
 0x8d2   :  { %v3490_v47 = vadd.f32 %v3489_v7, %v9142_v21  ;;  %v9166_v7 = vld [vmem:[#allocation38_spill] sm:$0xff]  ;;  %v9167_v21 = vld [vmem:[#allocation39_spill] sm:$0xff] }
 0x8d4   :  { %7230 = vtanh.f32 %v3490_v47  ;;  %v9168_v47 = vld [vmem:[#allocation40_spill] sm:$0xff] }
 0x8de   :  { %v7231_v37 = vpop.eup %7230 }
 0x8df   :  { %v3493_v54 = vmul.f32 %v7231_v37, %v3492_v59  ;;  %v9170_v59 = vld [vmem:[#allocation42_spill] sm:$0xff]  ;;  %v9171_v37 = vld [vmem:[#allocation43_spill] sm:$0xff] }
 0x8e1   :  { %v8542_v0 = vadd.f32 %v3494_v26, %v3493_v54  ;;  %v9172_v54 = vld [vmem:[#allocation44_spill] sm:$0xff]  ;;  %v9173_v26 = vld [vmem:[#allocation45_spill] sm:$0xff] }
 0x8e3   :  { %3561 = vmatmul.mubr.f32.vlgmr.msra.gmra.mrb[28].mxu0 %v8542_v0  ;;  %5503 = vmatmul.mubr.f32.vlgmr.msra.gmra.mrb[46].mxu1 %v8542_v0 }
 0x8e4   :  { %6776 = vmatpush1.bf16.msra.mxu0 %v8953_v44  ;;  %6807 = vmatpush3.bf16.msra.mxu1 %v8954_v35 }
 0x8e5   :  { %6778 = vmatprep.subr.bf16.mxu0 %v8955_v30  ;;  %6808 = vmatprep.subr.bf16.mxu1 %v8926_v52 }
 0x8e6   :  { %3701 = vmatprep.mubr.f32.mxu0 %v8928_v5  ;;  %5537 = vmatprep.mubr.msk.f32.mxu1 %vm7366_vm1, %v8928_v5 }
 0x8e8   :  { %6780 = vmatpush1.bf16.msra.mxu0 %v8956_v1  ;;  %6810 = vmatpush3.bf16.msra.mxu1 %v8957_v39 }
 0x8e9   :  { %6782 = vmatprep.subr.bf16.mxu0 %v8958_v28  ;;  %6811 = vmatprep.subr.bf16.mxu1 %v8926_v52 }
 0x8ec   :  { %6784 = vmatpush1.bf16.msra.mxu0 %v8959_v41  ;;  %6813 = vmatpush3.bf16.msra.mxu1 %v8960_v25 }
 0x8ed   :  { %6786 = vmatprep.subr.bf16.mxu0 %v8961_v17  ;;  %6814 = vmatprep.subr.bf16.mxu1 %v8926_v52 }
 0x8f0   :  { %6788 = vmatpush1.bf16.msra.mxu0 %v8962_v11  ;;  %6816 = vmatpush3.bf16.msra.mxu1 %v8963_v9 }
 0x8f1   :  { %6790 = vmatprep.subr.bf16.mxu0 %v8964_v2  ;;  %6817 = vmatprep.subr.bf16.mxu1 %v8926_v52 }
 0x8f4   :  { %6792 = vmatpush1.bf16.msra.mxu0 %v7772_v38  ;;  %6819 = vmatpush3.bf16.msra.mxu1 %v7774_v36 }
 0x8f5   :  { %6794 = vmatprep.subr.bf16.mxu0 %v8965_v62  ;;  %6820 = vmatprep.subr.bf16.mxu1 %v8926_v52 }
 0x8f8   :  { %6796 = vmatpush1.bf16.msra.mxu0 %v8966_v32  ;;  %6822 = vmatpush3.bf16.msra.mxu1 %v7784_v13 }
 0x8f9   :  { %6798 = vmatprep.subr.bf16.mxu0 %v7788_v20  ;;  %6823 = vmatprep.subr.bf16.mxu1 %v8926_v52 }
 0x8fc   :  { %6800 = vmatpush1.bf16.msra.mxu0 %v7792_v55  ;;  %6825 = vmatpush3.bf16.msra.mxu1 %v7794_v24 }
 0x8fd   :  { %6802 = vmatprep.subr.bf16.mxu0 %v7798_v27  ;;  %6826 = vmatprep.subr.bf16.mxu1 %v8926_v52 }
 0x900   :  { %6804 = vmatpush1.bf16.msra.mxu0 %v7802_v48  ;;  %6828 = vmatpush3.bf16.msra.mxu1 %v7804_v49 }
 0x901   :  { %6830 = vmatprep.subr.bf16.mxu0 %v7465_v12  ;;  %6861 = vmatprep.subr.bf16.mxu1 %v8926_v52  ;;  %v9143_v12 = vld [vmem:[#allocation15_spill] sm:$0xff] }
 0x903   :  { %3702 = vmatmul.mubr.f32.vlgmr.msra.gmra.mrb[28].mxu0 %v8537_v43  ;;  %5538 = vmatmul.mubr.f32.vlgmr.msra.gmra.mrb[48].mxu1 %v8537_v43 }
 0x904   :  { %6832 = vmatpush1.bf16.msra.mxu0 %v7467_v15  ;;  %6863 = vmatpush3.bf16.msra.mxu1 %v7501_v40  ;;  %v9144_v15 = vld [vmem:[#allocation21_spill] sm:$0xff]  ;;  %v9150_v40 = vld [vmem:[#allocation24_spill] sm:$0xff] }
 0x905   :  { %6834 = vmatprep.subr.bf16.mxu0 %v7470_v16  ;;  %6864 = vmatprep.subr.bf16.mxu1 %v8926_v52  ;;  %v9145_v16 = vld [vmem:[#allocation16_spill] sm:$0xff] }
 0x906   :  { %3863 = vmatprep.mubr.f32.mxu0 %v8928_v5  ;;  %5572 = vmatprep.mubr.msk.f32.mxu1 %vm7366_vm1, %v8928_v5 }
 0x908   :  { %6836 = vmatpush1.bf16.msra.mxu0 %v7478_v22  ;;  %6866 = vmatpush3.bf16.msra.mxu1 %v7517_v51  ;;  %v9146_v22 = vld [vmem:[#allocation17_spill] sm:$0xff] }
 0x909   :  { %6838 = vmatprep.subr.bf16.mxu0 %v7481_v23  ;;  %6867 = vmatprep.subr.bf16.mxu1 %v8926_v52  ;;  %v9147_v23 = vld [vmem:[#allocation23_spill] sm:$0xff]  ;;  %v9153_v51 = vld [vmem:[#allocation25_spill] sm:$0xff] }
 0x90c   :  { %6840 = vmatpush1.bf16.msra.mxu0 %v7495_v31  ;;  %6869 = vmatpush3.bf16.msra.mxu1 %v7533_v61  ;;  %v9148_v31 = vld [vmem:[#allocation18_spill] sm:$0xff] }
 0x90d   :  { %6842 = vmatprep.subr.bf16.mxu0 %v7498_v33  ;;  %6870 = vmatprep.subr.bf16.mxu1 %v8926_v52  ;;  %v9149_v33 = vld [vmem:[#allocation19_spill] sm:$0xff]  ;;  %v9154_v61 = vld [vmem:[#allocation26_spill] sm:$0xff] }
 0x910   :  { %6844 = vmatpush1.bf16.msra.mxu0 %v7508_v42  ;;  %6872 = vmatpush3.bf16.msra.mxu1 %v7549_v8  ;;  %v9151_v42 = vld [vmem:[#allocation20_spill] sm:$0xff]  ;;  %v9155_v8 = vld [vmem:[#allocation27_spill] sm:$0xff] }
 0x911   :  { %6846 = vmatprep.subr.bf16.mxu0 %v7511_v45  ;;  %6873 = vmatprep.subr.bf16.mxu1 %v8926_v52  ;;  %v9152_v45 = vld [vmem:[#allocation22_spill] sm:$0xff] }
 0x914   :  { %6848 = vmatpush1.bf16.msra.mxu0 %v9143_v12  ;;  %6875 = vmatpush3.bf16.msra.mxu1 %v9144_v15  ;;  %v9174_v12 = vld [vmem:[#allocation46_spill] sm:$0xff]  ;;  %v9175_v15 = vld [vmem:[#allocation47_spill] sm:$0xff] }
 0x915   :  { %6850 = vmatprep.subr.bf16.mxu0 %v9145_v16  ;;  %6876 = vmatprep.subr.bf16.mxu1 %v8926_v52  ;;  %v9176_v16 = vld [vmem:[#allocation48_spill] sm:$0xff] }
 0x918   :  { %6852 = vmatpush1.bf16.msra.mxu0 %v9146_v22  ;;  %6878 = vmatpush3.bf16.msra.mxu1 %v9147_v23  ;;  %v9177_v22 = vld [vmem:[#allocation49_spill] sm:$0xff]  ;;  %v9178_v23 = vld [vmem:[#allocation50_spill] sm:$0xff] }
 0x919   :  { %6854 = vmatprep.subr.bf16.mxu0 %v9148_v31  ;;  %6879 = vmatprep.subr.bf16.mxu1 %v8926_v52 }
 0x91c   :  { %6856 = vmatpush1.bf16.msra.mxu0 %v9149_v33  ;;  %6881 = vmatpush3.bf16.msra.mxu1 %v9150_v40 }
 0x91d   :  { %6858 = vmatprep.subr.bf16.mxu0 %v9151_v42  ;;  %6882 = vmatprep.subr.bf16.mxu1 %v8926_v52 }
 0x920   :  { %6860 = vmatpush1.bf16.msra.mxu0 %v9152_v45  ;;  %6884 = vmatpush3.bf16.msra.mxu1 %v9153_v51 }
 0x921   :  { %6886 = vmatprep.subr.bf16.mxu0 %v9154_v61  ;;  %6917 = vmatprep.subr.bf16.mxu1 %v8926_v52 }
 0x923   :  { %3864 = vmatmul.mubr.f32.vlgmr.msra.gmra.mrb[14].mxu0 %v8542_v0  ;;  %5573 = vmatmul.mubr.f32.vlgmr.msra.gmra.mrb[50].mxu1 %v8542_v0 }
 0x924   :  { %6888 = vmatpush1.bf16.msra.mxu0 %v9155_v8  ;;  %6919 = vmatpush3.bf16.msra.mxu1 %v9156_v14 }
 0x925   :  { %6890 = vmatprep.subr.bf16.mxu0 %v9157_v50  ;;  %6920 = vmatprep.subr.bf16.mxu1 %v8926_v52 }
 0x926   :  { %4025 = vmatprep.mubr.f32.mxu0 %v8928_v5  ;;  %5607 = vmatprep.mubr.msk.f32.mxu1 %vm7366_vm1, %v8928_v5 }
 0x928   :  { %6892 = vmatpush1.bf16.msra.mxu0 %v9158_v53  ;;  %6922 = vmatpush3.bf16.msra.mxu1 %v9159_v56 }
 0x929   :  { %6894 = vmatprep.subr.bf16.mxu0 %v9160_v29  ;;  %6923 = vmatprep.subr.bf16.mxu1 %v8926_v52 }
 0x92c   :  { %6896 = vmatpush1.bf16.msra.mxu0 %v9161_v19  ;;  %6925 = vmatpush3.bf16.msra.mxu1 %v9162_v63  ;;  %v9179_v63 = vld [vmem:[#allocation51_spill] sm:$0xff] }
 0x92d   :  { %6898 = vmatprep.subr.bf16.mxu0 %v9163_v46  ;;  %6926 = vmatprep.subr.bf16.mxu1 %v8926_v52 }
 0x930   :  { %6900 = vmatpush1.bf16.msra.mxu0 %v9164_v18  ;;  %6928 = vmatpush3.bf16.msra.mxu1 %v9165_v3 }
 0x931   :  { %6902 = vmatprep.subr.bf16.mxu0 %v9166_v7  ;;  %6929 = vmatprep.subr.bf16.mxu1 %v8926_v52 }
 0x934   :  { %6904 = vmatpush1.bf16.msra.mxu0 %v9167_v21  ;;  %6931 = vmatpush3.bf16.msra.mxu1 %v9168_v47 }
 0x935   :  { %6906 = vmatprep.subr.bf16.mxu0 %v9169_v57  ;;  %6932 = vmatprep.subr.bf16.mxu1 %v8926_v52 }
 0x938   :  { %6908 = vmatpush1.bf16.msra.mxu0 %v9170_v59  ;;  %6934 = vmatpush3.bf16.msra.mxu1 %v9171_v37 }
 0x939   :  { %6910 = vmatprep.subr.bf16.mxu0 %v9172_v54  ;;  %6935 = vmatprep.subr.bf16.mxu1 %v8926_v52 }
 0x93c   :  { %6912 = vmatpush1.bf16.msra.mxu0 %v9173_v26  ;;  %6937 = vmatpush3.bf16.msra.mxu1 %v9174_v12 }
 0x93d   :  { %6914 = vmatprep.subr.bf16.mxu0 %v9175_v15  ;;  %6938 = vmatprep.subr.bf16.mxu1 %v8926_v52 }
 0x940   :  { %6916 = vmatpush1.bf16.msra.mxu0 %v9176_v16  ;;  %6940 = vmatpush3.bf16.msra.mxu1 %v9177_v22 }
 0x941   :  { %6942 = vmatprep.subr.bf16.mxu0 %v9178_v23  ;;  %6973 = vmatprep.subr.bf16.mxu1 %v8926_v52 }
 0x9b6   :  { %v3633_v31 = vpop.f32.mrb[46].mxu1 }
 0x9b7   :  { %v5504_v33 = vpop.f32.mrb[47].mxu1  ;;  %v3634_v3 = vadd.f32 %v3633_v31, %v7906_v58 }
 0x9d6   :  { %v3703_v40 = vpop.f32.mrb[28].mxu0  ;;  %v3774_v42 = vpop.f32.mrb[48].mxu1 }
 0x9d7   :  { %v7054_v45 = vadd.f32 %v8986_v34, %v3703_v40  ;;  %v3705_v51 = vpop.f32.mrb[29].mxu0  ;;  %v5539_v61 = vpop.f32.mrb[49].mxu1  ;;  %v3775_v46 = vadd.f32 %v3774_v42, %v9179_v63 }
 0x9d8   :  { %v7056_v14 = vadd.f32 %v9026_v10, %v3705_v51 }
 0x9d9   :  { %v4363_v8 = vmul.f32 -1.442695, %v7054_v45 }
 0x9da   :  { %v4364_v50 = vmul.f32 -1.442695, %v7056_v14  ;;  %v9180_v14 = vld [vmem:[#allocation61_spill] sm:$0xff] }
 0x9db   :  { %7232 = vpow2.f32 %v4363_v8 }
 0x9dc   :  { %7234 = vpow2.f32 %v4364_v50 }
 0x9e5   :  { %v7233_v53 = vpop.eup %7232 }
 0x9e6   :  { %v3782_v56 = vadd.f32 1.0, %v7233_v53  ;;  %v7235_v29 = vpop.eup %7234 }
 0x9e7   :  { %v3789_v19 = vadd.f32 1.0, %v7235_v29 }
 0x9e8   :  { %7236 = vrcp.f32 %v3782_v56 }
 0x9e9   :  { %7238 = vrcp.f32 %v3789_v19 }
 0x9f2   :  { %v7237_v18 = vpop.eup %7236 }
 0x9f3   :  { %v3792_v7 = vmul.f32 %v7237_v18, %v3775_v46  ;;  %v7239_v15 = vpop.eup %7238 }
 0x9f4   :  { %v3795_v22 = vsub.f32 1.0, %v7239_v15  ;;  %v3797_v33 = vmul.f32 %v7239_v15, %v8537_v43 }
 0x9f5   :  { %v3793_v21 = vadd.f32 %v3792_v7, %v3634_v3 }
 0x9f6   :  { %v3865_v47 = vpop.f32.mrb[14].mxu0  ;;  %v3936_v57 = vpop.f32.mrb[50].mxu1 }
 0x9f7   :  { %7240 = vtanh.f32 %v3793_v21  ;;  %v7026_v59 = vadd.f32 %v8950_v6, %v3865_v47  ;;  %v3867_v37 = vpop.f32.mrb[15].mxu0  ;;  %v5574_v54 = vpop.f32.mrb[51].mxu1  ;;  %v3937_v61 = vadd.f32 %v3936_v57, %v7724_v60 }
 0x9f8   :  { %v7028_v12 = vadd.f32 %v8989_v4, %v3867_v37 }
 0x9f9   :  { %v4365_v26 = vmul.f32 -1.442695, %v7026_v59 }
 0x9fa   :  { %v4366_v16 = vmul.f32 -1.442695, %v7028_v12 }
 0x9fb   :  { %7242 = vpow2.f32 %v4365_v26 }
 0x9fc   :  { %7244 = vpow2.f32 %v4366_v16 }
 0xa01   :  { %v7241_v23 = vpop.eup %7240 }
 0xa02   :  { %v3796_v31 = vmul.f32 %v7241_v23, %v3795_v22 }
 0xa04   :  { %v8662_v40 = vadd.f32 %v3797_v33, %v3796_v31 }
 0xa05   :  { %v7243_v42 = vpop.eup %7242 }
 0xa06   :  { %v3944_v45 = vadd.f32 1.0, %v7243_v42  ;;  %v7245_v6 = vpop.eup %7244 }
 0xa07   :  { %v3951_v51 = vadd.f32 1.0, %v7245_v6 }
 0xa08   :  { %7246 = vrcp.f32 %v3944_v45 }
 0xa09   :  { %7248 = vrcp.f32 %v3951_v51 }
 0xa12   :  { %v7247_v8 = vpop.eup %7246 }
 0xa13   :  { %v3954_v4 = vmul.f32 %v7247_v8, %v3937_v61  ;;  %v7249_v53 = vpop.eup %7248 }
 0xa14   :  { %v3957_v56 = vsub.f32 1.0, %v7249_v53  ;;  %v3959_v43 = vmul.f32 %v7249_v53, %v8542_v0 }
 0xa15   :  { %v3955_v50 = vadd.f32 %v3954_v4, %v9180_v14 }
 0xa17   :  { %7250 = vtanh.f32 %v3955_v50 }
 0xa21   :  { %v7251_v29 = vpop.eup %7250 }
 0xa22   :  { %v3958_v19 = vmul.f32 %v7251_v29, %v3957_v56 }
 0xa24   :  { %v8667_v46 = vadd.f32 %v3959_v43, %v3958_v19 }
 0xa26   :  { %4026 = vmatmul.mubr.f32.vlgmr.msra.gmra.mrb[30].mxu0 %v8667_v46  ;;  %5608 = vmatmul.mubr.f32.vlgmr.msra.gmra.mrb[52].mxu1 %v8667_v46 }
 0xa27   :  { %6944 = vmatpush1.bf16.msra.mxu0 %v8953_v44  ;;  %6975 = vmatpush3.bf16.msra.mxu1 %v8954_v35 }
 0xa28   :  { %6946 = vmatprep.subr.bf16.mxu0 %v8955_v30  ;;  %6976 = vmatprep.subr.bf16.mxu1 %v8926_v52 }
 0xa29   :  { %4166 = vmatprep.mubr.f32.mxu0 %v8928_v5  ;;  %5642 = vmatprep.mubr.msk.f32.mxu1 %vm7366_vm1, %v8928_v5 }
 0xa2b   :  { %6948 = vmatpush1.bf16.msra.mxu0 %v8956_v1  ;;  %6978 = vmatpush3.bf16.msra.mxu1 %v8957_v39 }
 0xa2c   :  { %6950 = vmatprep.subr.bf16.mxu0 %v8958_v28  ;;  %6979 = vmatprep.subr.bf16.mxu1 %v8926_v52 }
 0xa2f   :  { %6952 = vmatpush1.bf16.msra.mxu0 %v8959_v41  ;;  %6981 = vmatpush3.bf16.msra.mxu1 %v8960_v25 }
 0xa30   :  { %6954 = vmatprep.subr.bf16.mxu0 %v8961_v17  ;;  %6982 = vmatprep.subr.bf16.mxu1 %v8926_v52 }
 0xa33   :  { %6956 = vmatpush1.bf16.msra.mxu0 %v8962_v11  ;;  %6984 = vmatpush3.bf16.msra.mxu1 %v8963_v9 }
 0xa34   :  { %6958 = vmatprep.subr.bf16.mxu0 %v8964_v2  ;;  %6985 = vmatprep.subr.bf16.mxu1 %v8926_v52 }
 0xa37   :  { %6960 = vmatpush1.bf16.msra.mxu0 %v7772_v38  ;;  %6987 = vmatpush3.bf16.msra.mxu1 %v7774_v36 }
 0xa38   :  { %6962 = vmatprep.subr.bf16.mxu0 %v8965_v62  ;;  %6988 = vmatprep.subr.bf16.mxu1 %v8926_v52 }
 0xa3b   :  { %6964 = vmatpush1.bf16.msra.mxu0 %v8966_v32  ;;  %6990 = vmatpush3.bf16.msra.mxu1 %v7784_v13  ;;  %v4369_v32 = vld [vmem:[%s8749_s7] ss:$0 sm:$0xff] }
 0xa3c   :  { %6966 = vmatprep.subr.bf16.mxu0 %v7788_v20  ;;  %6991 = vmatprep.subr.bf16.mxu1 %v8926_v52 }
 0xa3f   :  { %6968 = vmatpush1.bf16.msra.mxu0 %v7792_v55  ;;  %6993 = vmatpush3.bf16.msra.mxu1 %v7794_v24 }
 0xa40   :  { %6970 = vmatprep.subr.bf16.mxu0 %v7798_v27  ;;  %6994 = vmatprep.subr.bf16.mxu1 %v8926_v52 }
 0xa43   :  { %6972 = vmatpush1.bf16.msra.mxu0 %v7802_v48  ;;  %6996 = vmatpush3.bf16.msra.mxu1 %v7804_v49 }
 0xa46   :  { %4167 = vmatmul.mubr.f32.vlgmr.msra.gmra.mrb[30].mxu0 %v8662_v40  ;;  %5643 = vmatmul.mubr.f32.vlgmr.msra.gmra.mrb[54].mxu1 %v8662_v40 }
 0xaf9   :  { %v4098_v60 = vpop.f32.mrb[52].mxu1 }
 0xafa   :  { %v5609_v5 = vpop.f32.mrb[53].mxu1  ;;  %v4099_v39 = vadd.f32 %v4098_v60, %v7906_v58 }
 0xb19   :  { %v4168_v38 = vpop.f32.mrb[30].mxu0  ;;  %v4239_v36 = vpop.f32.mrb[54].mxu1 }
 0xb1a   :  { %v7058_v13 = vadd.f32 %v8986_v34, %v4168_v38  ;;  %v4170_v20 = vpop.f32.mrb[31].mxu0  ;;  %v5644_v55 = vpop.f32.mrb[55].mxu1  ;;  %v4240_v30 = vadd.f32 %v4239_v36, %v9179_v63 }
 0xb1b   :  { %v7060_v27 = vadd.f32 %v9026_v10, %v4170_v20  ;;  %v4370_v10 = vld [vmem:[%s8750_s8] ss:$0 sm:$0xff] }
 0xb1c   :  { %v4367_v24 = vmul.f32 -1.442695, %v7058_v13 }
 0xb1d   :  { %v4368_v52 = vmul.f32 -1.442695, %v7060_v27 }
 0xb1e   :  { %7252 = vpow2.f32 %v4367_v24 }
 0xb1f   :  { %7254 = vpow2.f32 %v4368_v52 }
 0xb28   :  { %v7253_v48 = vpop.eup %7252 }
 0xb29   :  { %v4247_v49 = vadd.f32 1.0, %v7253_v48  ;;  %v7255_v44 = vpop.eup %7254 }
 0xb2a   :  { %v4254_v35 = vadd.f32 1.0, %v7255_v44 }
 0xb2b   :  { %7256 = vrcp.f32 %v4247_v49 }
 0xb2c   :  { %7258 = vrcp.f32 %v4254_v35 }
 0xb35   :  { %v7257_v1 = vpop.eup %7256 }
 0xb36   :  { %v4257_v28 = vmul.f32 %v7257_v1, %v4240_v30  ;;  %v7259_v41 = vpop.eup %7258 }
 0xb37   :  { %v4260_v25 = vsub.f32 1.0, %v7259_v41  ;;  %v4262_v9 = vmul.f32 %v7259_v41, %v8662_v40 }
 0xb38   :  { %v4258_v34 = vadd.f32 %v4257_v28, %v4099_v39 }
 0xb3a   :  { %7260 = vtanh.f32 %v4258_v34 }
 0xb44   :  { %v7261_v17 = vpop.eup %7260 }
 0xb45   :  { %v4261_v11 = vmul.f32 %v7261_v17, %v4260_v25 }
 0xb47   :  { %v4263_v2 = vadd.f32 %v4262_v9, %v4261_v11 }
 0xb49   :  { %v4269_v62 = vadd.f32 %v4263_v2, %v8667_v46 }
 0xb4b   :  { %v4270_v58 = vmul.f32 0.5, %v4269_v62 }
 0xb4d   :  { %4271 = vst [vmem:[#allocation8] sm:$0xff] %v4270_v58  ;;  %v4279_v0 = vmul.f32 %v4369_v32, %v4270_v58 }
 0xb4e   :  { %7319 = shalt.err (!%p7316_p6)
}
 0xb4f   :  { %s7320_s1 = scalar_lea.hbm %s8751_s9, 128 }
 0xb50   :  { %p7321_p7 = scmp.ne.s32.totalorder %s8751_s9, %s7320_s1  ;;  %p7324_p8 = scmp.lt.u32.totalorder %s7320_s1, %s8751_s9 }
 0xb52   :  { %p7326_p9 = pnand %p7324_p8, %p7321_p7 }
 0xb54   :  { %7329 = shalt.err (!%p7326_p9)
}
 0xb55   :  { %4299 = dma.vmem_to_hbm [thread:$0]  %s4297_s6, 128, %s8751_s9, [#allocation5]   ;;  %v4287_v63 = vadd.f32 %v4370_v10, %v4279_v0 }
 0xb56   :  { %s7368_s18 = smov [#allocation9]  }
 0xb57   :  { %7262 = vtanh.f32 %v4287_v63  ;;  %s4306_s19 = sshll.u32 %s7368_s18, 4  ;;  %s4307_s19 = int_to_ptr.vmem [resolvable:$true] %s4306_s19 }
 0xb58   :  { %s7330_s20 = scalar_lea.vmem %s4307_s19, 128  ;;  %p7335_p11 = scmp.lt.s32.totalorder %s4307_s19, %s4307_s19 }
 0xb59   :  { %p7331_p10 = scmp.ne.s32.totalorder %s4307_s19, %s7330_s20  ;;  %p7336_p12 = scmp.lt.s32.totalorder %s7330_s20, %s7330_s20 }
 0xb5b   :  { %p7337_p13 = por %p7336_p12, %p7335_p11 }
 0xb5d   :  { %p7338_p0 = pnand %p7337_p13, %p7331_p10 }
 0xb61   :  { %v7263_v18 = vpop.eup %7262 }
 0xb62   :  { %4289 = vst [vmem:[#allocation9] sm:$0xff] %v7263_v18 }
 0xb63   :  { %7341 = shalt.err (!%p7338_p0)
}
 0xb64   :  { %s7342_s0 = scalar_lea.hbm %s8752_s10, 128 }
 0xb65   :  { %p7343_p1 = scmp.ne.s32.totalorder %s8752_s10, %s7342_s0  ;;  %p7346_p2 = scmp.lt.u32.totalorder %s7342_s0, %s8752_s10 }
 0xb67   :  { %p7348_p3 = pnand %p7346_p2, %p7343_p1 }
 0xb69   :  { %7351 = shalt.err (!%p7348_p3)
}
 0xb6a   :  { %4309 = dma.vmem_to_hbm [thread:$0]  %s4307_s19, 128, %s8752_s10, [#allocation10]  }
 0xb6b   :  { %7356 = dma.done.wait [#allocation5], 128  }
 0xb6c   :  { %7357 = vsyncadd [#allocation5], 4294967168 }
 0xb6d   :  { %7358 = dma.done.wait [#allocation10], 128  }
 0xb6e   :  { %7359 = vsyncadd [#allocation10], 4294967168 }
 0xb6f   :  { %4316 = vsyncpa [#allocation4], 1 }
 0xb70   :  { %4317 = vsyncpa [#allocation7], 1 }
 0xb71   :  { %4318 = vsyncpa [#allocation5], 1 }
 0xb72   :  { %4319 = vsyncpa [#allocation10], 1 }

</bundles_post_ra>
